<compile_context>
chip_gen: v7x
topology: tpu7x:2x2x1
jax: 0.10.0
libtpu: 0.0.40
codegen_flags: <defaults>
</compile_context>

<pallas_src>
import functools

import jax
import jax.numpy as jnp
from jax import lax
from jax.experimental import pallas as pl
from jax.experimental.pallas import tpu as pltpu

EPS = 1e-5                 # torch.nn.InstanceNorm2d default eps
ACT_DTYPE = jnp.bfloat16   # inter-layer activation / matmul operand dtype


# ----------------------------------------------------------------------------
# In-kernel helpers
# ----------------------------------------------------------------------------
def _instance_norm(acc, g, gt, count):
    """acc: (Ho, Wo*Cout) f32.  Per-channel stats over all Ho*Wo positions of
    the current sample, computed in one pass (sum / sum-of-squares).
    g:  (Wo*Cout, Cout) channel-group sum matrix, gt = g.T (broadcast back)."""
    inv_cnt = 1.0 / float(count)
    ch_sum = jnp.sum(jnp.dot(acc, g, preferred_element_type=jnp.float32),
                     axis=0, keepdims=True)                       # (1, Cout)
    ch_sq = jnp.sum(jnp.dot(acc * acc, g, preferred_element_type=jnp.float32),
                    axis=0, keepdims=True)                        # (1, Cout)
    mean = ch_sum * inv_cnt
    var = jnp.maximum(ch_sq * inv_cnt - mean * mean, 0.0)
    scale = lax.rsqrt(var + EPS)                                  # EUP
    shift = -mean * scale
    scale_b = jnp.dot(scale, gt, preferred_element_type=jnp.float32)
    shift_b = jnp.dot(shift, gt, preferred_element_type=jnp.float32)
    return acc * scale_b + shift_b


def _conv_in_relu_kernel(x_ref, w_ref, g_ref, gt_ref, o_ref):
    """Fused conv -> InstanceNorm -> ReLU for one sample.

    x_ref: (1, Ho+KH-1, InCols)  row-padded input (bf16)
    w_ref: (KH, InCols, Wo*Cout) banded weights (bf16)
    o_ref: (1, Ho, Wo*Cout)      (bf16, lane dense)
    """
    kh = w_ref.shape[0]
    ho = o_ref.shape[1]
    out_cols = o_ref.shape[2]
    cout = g_ref.shape[1]
    wo = out_cols // cout

    acc = jnp.zeros((ho, out_cols), jnp.float32)
    for a in range(kh):                       # implicit GEMM over row taps
        acc = acc + jnp.dot(x_ref[0, a:a + ho, :], w_ref[a],
                            preferred_element_type=jnp.float32)

    y = _instance_norm(acc, g_ref[...], gt_ref[...], ho * wo)
    y = jnp.maximum(y, 0.0)
    o_ref[0] = y.astype(o_ref.dtype)


def _res_block_kernel(last, *refs):
    """Fully fused ResBlock for one sample:
       conv1 -> IN -> ReLU -> conv2 -> (IN | +bias) -> +identity -> (ReLU).
    The identity (= un-padded rows of x_ref) and h1 stay in VMEM/vregs."""
    if last:
        x_ref, w1_ref, w2_ref, g_ref, gt_ref, b2_ref, o_ref = refs
    else:
        x_ref, w1_ref, w2_ref, g_ref, gt_ref, o_ref = refs
        b2_ref = None
    ho = o_ref.shape[1]
    out_cols = o_ref.shape[2]
    cout = g_ref.shape[1]
    wo = out_cols // cout
    g = g_ref[...]
    gt = gt_ref[...]

    # conv1 -> IN -> ReLU
    acc1 = jnp.zeros((ho, out_cols), jnp.float32)
    for a in range(3):
        acc1 = acc1 + jnp.dot(x_ref[0, a:a + ho, :], w1_ref[a],
                              preferred_element_type=jnp.float32)
    h1 = jnp.maximum(_instance_norm(acc1, g, gt, ho * wo), 0.0).astype(jnp.bfloat16)

    # zero row-padding for conv2 (column padding lives inside the band weights)
    zrow = jnp.zeros((1, out_cols), jnp.bfloat16)
    h1p = jnp.concatenate([zrow, h1, zrow], axis=0)      # (ho+2, out_cols)

    # conv2
    acc2 = jnp.zeros((ho, out_cols), jnp.float32)
    for a in range(3):
        acc2 = acc2 + jnp.dot(h1p[a:a + ho, :], w2_ref[a],
                              preferred_element_type=jnp.float32)
    if last:
        acc2 = acc2 + b2_ref[...]          # bias, no norm (last ResBlock)
    else:
        acc2 = _instance_norm(acc2, g, gt, ho * wo)

    y = acc2 + x_ref[0, 1:1 + ho, :].astype(jnp.float32)  # residual add
    if not last:
        y = jnp.maximum(y, 0.0)
    o_ref[0] = y.astype(o_ref.dtype)


# ----------------------------------------------------------------------------
# JAX-side glue (pure small-tensor rearrangements, no K^2 amplification)
# ----------------------------------------------------------------------------
def _space_to_depth(x):
    """(N, H, W, C) -> (N, H/2, W/2, 4C), channel blocks ordered (p, q, c)."""
    n, h, wd, c = x.shape
    x = x.reshape(n, h // 2, 2, wd // 2, 2, c)
    x = x.transpose(0, 1, 3, 2, 4, 5)
    return x.reshape(n, h // 2, wd // 2, 4 * c)


def _s2d_weight(w):
    """Rewrite a stride-2 / k=3 / pad=1 weight (3,3,Cin,Cout) as a 2x2 stride-1
    weight over the space-to-depth input: (2, 2, 4*Cin, Cout), taps at
    offsets (di, dj) in {-1, 0}^2."""
    _, _, cin, cout = w.shape
    w2 = jnp.zeros((2, 2, 4 * cin, cout), w.dtype)
    for di in (-1, 0):
        for dj in (-1, 0):
            for p in (0, 1):
                for q in (0, 1):
                    kh = 2 * di + p + 1
                    kw = 2 * dj + q + 1
                    if 0 <= kh < 3 and 0 <= kw < 3:
                        gidx = (p * 2 + q) * cin
                        w2 = w2.at[di + 1, dj + 1, gidx:gidx + cin, :].set(w[kh, kw])
    return w2


def _band_weights(w_taps, in_width, out_width, dj_offsets):
    """w_taps: (KH, KW, Ci, Co) -> (KH, in_width*Ci, out_width*Co) banded
    matrices M_a with M_a[(win, c), (j, co)] = w[a, b, c, co] iff
    win == j + dj_offsets[b] (out-of-range columns -> zero padding)."""
    kh, kw, _, _ = w_taps.shape
    win = jnp.arange(in_width)[:, None]
    j = jnp.arange(out_width)[None, :]
    bands = []
    for a in range(kh):
        m = None
        for b in range(kw):
            sel = (win == (j + dj_offsets[b])).astype(jnp.float32)
            contrib = jnp.kron(sel, w_taps[a, b].astype(jnp.float32))
            m = contrib if m is None else m + contrib
        bands.append(m)
    return jnp.stack(bands, axis=0)


def _group_mats(wo, cout):
    """Channel-group sum matrix (Wo*Cout, Cout) and its transpose."""
    g = jnp.tile(jnp.eye(cout, dtype=jnp.float32), (wo, 1))
    return g, g.T


# ----------------------------------------------------------------------------
# pallas_call wrappers
# ----------------------------------------------------------------------------
def conv_in_relu(x, w, *, stride):
    """Fused Conv2d(k, stride, pad=(k-1)/2, bias=False) -> InstanceNorm -> ReLU.
    x: (N, H, W, Cin) -> (N, Ho, Wo, Cout) in bf16."""
    n, h, wd, _ = x.shape
    k = w.shape[0]
    cout = w.shape[3]

    if stride == 1:
        pad = (k - 1) // 2
        ho, wo = h, wd
        xr = jnp.pad(x, ((0, 0), (pad, pad), (0, 0), (0, 0)))     # rows only
        w_taps = w
        dj = [b - pad for b in range(k)]
    elif stride == 2:
        assert k == 3 and h % 2 == 0 and wd % 2 == 0
        ho, wo = h // 2, wd // 2
        xr = jnp.pad(_space_to_depth(x), ((0, 0), (1, 0), (0, 0), (0, 0)))
        w_taps = _s2d_weight(w)
        dj = [-1, 0]
    else:
        raise ValueError(f"unsupported stride {stride}")

    kh = w_taps.shape[0]
    hrows = ho + kh - 1
    in_w = xr.shape[2]
    in_cols = in_w * xr.shape[3]
    out_cols = wo * cout

    x2 = xr.reshape(n, hrows, in_cols).astype(ACT_DTYPE)
    wband = _band_weights(w_taps, in_w, wo, dj).astype(ACT_DTYPE)
    g, gt = _group_mats(wo, cout)

    out = pl.pallas_call(
        _conv_in_relu_kernel,
        out_shape=jax.ShapeDtypeStruct((n, ho, out_cols), ACT_DTYPE),
        grid=(n,),
        in_specs=[
            pl.BlockSpec((1, hrows, in_cols), lambda i: (i, 0, 0)),
            pl.BlockSpec((kh, in_cols, out_cols), lambda i: (0, 0, 0)),
            pl.BlockSpec((out_cols, cout), lambda i: (0, 0)),
            pl.BlockSpec((cout, out_cols), lambda i: (0, 0)),
        ],
        out_specs=pl.BlockSpec((1, ho, out_cols), lambda i: (i, 0, 0)),
        compiler_params=pltpu.CompilerParams(dimension_semantics=("parallel",)),
    )(x2, wband, g, gt)
    return out.reshape(n, ho, wo, cout)


def res_block(x, w1, w2, b2=None, *, last=False):
    """Fused ResBlock.  x: (N, H, W, C) -> (N, H, W, C) in bf16."""
    n, h, wd, c = x.shape
    out_cols = wd * c

    xr = jnp.pad(x, ((0, 0), (1, 1), (0, 0), (0, 0)))
    xr = xr.reshape(n, h + 2, out_cols).astype(ACT_DTYPE)
    band1 = _band_weights(w1, wd, wd, [-1, 0, 1]).astype(ACT_DTYPE)
    band2 = _band_weights(w2, wd, wd, [-1, 0, 1]).astype(ACT_DTYPE)
    g, gt = _group_mats(wd, c)

    inputs = [xr, band1, band2, g, gt]
    in_specs = [
        pl.BlockSpec((1, h + 2, out_cols), lambda i: (i, 0, 0)),
        pl.BlockSpec((3, out_cols, out_cols), lambda i: (0, 0, 0)),
        pl.BlockSpec((3, out_cols, out_cols), lambda i: (0, 0, 0)),
        pl.BlockSpec((out_cols, c), lambda i: (0, 0)),
        pl.BlockSpec((c, out_cols), lambda i: (0, 0)),
    ]
    if last:
        assert b2 is not None
        b2_tiled = jnp.tile(b2.astype(jnp.float32), wd)[None, :]   # (1, W*C)
        inputs.append(b2_tiled)
        in_specs.append(pl.BlockSpec((1, out_cols), lambda i: (0, 0)))

    kernel = functools.partial(_res_block_kernel, last)
    out = pl.pallas_call(
        kernel,
        out_shape=jax.ShapeDtypeStruct((n, h, out_cols), ACT_DTYPE),
        grid=(n,),
        in_specs=in_specs,
        out_specs=pl.BlockSpec((1, h, out_cols), lambda i: (i, 0, 0)),
        compiler_params=pltpu.CompilerParams(dimension_semantics=("parallel",)),
    )(*inputs)
    return out.reshape(n, h, wd, c)


# ----------------------------------------------------------------------------
# Encoder: parameters + forward (mirrors the PyTorch module structure)
# ----------------------------------------------------------------------------
def init_encoder_params(key, input_channels=3, initial_c=8, n_conv=3, n_res=4):
    params = {"convs": [], "res": []}
    in_c = input_channels
    out_c = initial_c
    for i in range(n_conv):
        k = 7 if i == 0 else 3
        key, sub = jax.random.split(key)
        params["convs"].append(
            jax.random.normal(sub, (k, k, in_c, out_c), jnp.float32) * 0.05)
        in_c = out_c
        out_c *= 2
    c = in_c
    for i in range(n_res):
        last = i == n_res - 1
        key, s1, s2, s3 = jax.random.split(key, 4)
        params["res"].append({
            "w1": jax.random.normal(s1, (3, 3, c, c), jnp.float32) * 0.05,
            "w2": jax.random.normal(s2, (3, 3, c, c), jnp.float32) * 0.05,
            "b2": (jax.random.normal(s3, (c,), jnp.float32) * 0.05) if last else None,
        })
    return params


def encoder_forward(params, x):
    """x: (N, H, W, C_in) float32 -> (z, mu), both (N, H/4, W/4, 4*initial_c)."""
    h = x
    for i, w in enumerate(params["convs"]):                # conv -> IN -> ReLU
        h = conv_in_relu(h, w, stride=1 if i == 0 else 2)
    n_res = len(params["res"])
    for i, blk in enumerate(params["res"]):                # fused ResBlocks
        h = res_block(h, blk["w1"], blk["w2"], blk["b2"], last=(i == n_res - 1))
    mu = h.astype(jnp.float32)
    # TODO(synk): training-mode path (z = mu + randn_like(mu)) not implemented;
    # eval-mode semantics used (z = mu).
    z = mu
    return z, mu


# ----------------------------------------------------------------------------
# Pure-JAX f32 reference (for a correctness smoke test)
# ----------------------------------------------------------------------------
def _conv2d_ref(x, w, stride):
    pad = (w.shape[0] - 1) // 2
    return lax.conv_general_dilated(
        x, w, window_strides=(stride, stride),
        padding=[(pad, pad), (pad, pad)],
        dimension_numbers=("NHWC", "HWIO", "NHWC"))


def _inorm_ref(x):
    mean = jnp.mean(x, axis=(1, 2), keepdims=True)
    var = jnp.mean((x - mean) ** 2, axis=(1, 2), keepdims=True)
    return (x - mean) * lax.rsqrt(var + EPS)


def encoder_ref(params, x):
    h = x
    for i, w in enumerate(params["convs"]):
        h = jnp.maximum(_inorm_ref(_conv2d_ref(h, w, 1 if i == 0 else 2)), 0.0)
    n_res = len(params["res"])
    for i, blk in enumerate(params["res"]):
        last = i == n_res - 1
        idn = h
        h1 = jnp.maximum(_inorm_ref(_conv2d_ref(h, blk["w1"], 1)), 0.0)
        h2 = _conv2d_ref(h1, blk["w2"], 1)
        if last:
            h = h2 + blk["b2"] + idn
        else:
            h = jnp.maximum(_inorm_ref(h2) + idn, 0.0)
    return h, h


if __name__ == "__main__":
    key = jax.random.PRNGKey(0)
    pkey, xkey = jax.random.split(key)

    # Small shapes: batch=2, 3 input channels, 16x16 spatial, initial_c=8.
    # (PyTorch NCHW equivalent input: (2, 3, 16, 16).)
    params = init_encoder_params(pkey, input_channels=3, initial_c=8,
                                 n_conv=3, n_res=4)
    x = jax.random.normal(xkey, (2, 16, 16, 3), jnp.float32)

    fwd = jax.jit(encoder_forward)
    z, mu = fwd(params, x)
    jax.block_until_ready((z, mu))

    # 16 -> 16 (k7,s1) -> 8 (k3,s2) -> 4 (k3,s2); channels 8 -> 16 -> 32.
    assert z.shape == (2, 4, 4, 32), z.shape
    assert mu.shape == (2, 4, 4, 32), mu.shape
    assert bool(jnp.all(jnp.isfinite(mu)))

    # Correctness smoke test vs. f32 XLA reference (bf16 activations => loose tol).
    z_ref, _ = encoder_ref(params, x)
    max_err = float(jnp.max(jnp.abs(z - z_ref)))
    assert max_err < 0.4, max_err

    print("KERNEL_OK")
</pallas_src>

<mosaic_0001>
module attributes {stable_mosaic.version = 11 : i64} {
  func.func @_conv_in_relu_kernel(%arg0: i32, %arg1: memref<1x22x48xbf16, #tpu.memory_space<vmem>>, %arg2: memref<7x48x128xbf16, #tpu.memory_space<vmem>>, %arg3: memref<128x8xf32, #tpu.memory_space<vmem>>, %arg4: memref<8x128xf32, #tpu.memory_space<vmem>>, %arg5: memref<1x16x128xbf16, #tpu.memory_space<vmem>>) attributes {dimension_semantics = [#tpu.dimension_semantics<parallel>], iteration_bounds = array<i64: 2>, scalar_prefetch = 0 : i64, scratch_operands = 0 : i64, tpu.core_type = #tpu.core_type<tc>, window_params = [{transform_indices = @transform_0, window_bounds = array<i64: 1, 22, 48>}, {pipeline_mode = #tpu.pipeline_mode<synchronous>, transform_indices = @transform_1, window_bounds = array<i64: 7, 48, 128>}, {pipeline_mode = #tpu.pipeline_mode<synchronous>, transform_indices = @transform_2, window_bounds = array<i64: 128, 8>}, {pipeline_mode = #tpu.pipeline_mode<synchronous>, transform_indices = @transform_3, window_bounds = array<i64: 8, 128>}, {transform_indices = @transform_4, window_bounds = array<i64: 1, 16, 128>}]} {
    %cst = arith.constant 0.000000e+00 : f32
    %0 = vector.broadcast %cst : f32 to vector<16x128xf32>
    %c0 = arith.constant 0 : index
    %c0_0 = arith.constant 0 : index
    %c0_1 = arith.constant 0 : index
    %1 = vector.load %arg1[%c0, %c0_0, %c0_1] : memref<1x22x48xbf16, #tpu.memory_space<vmem>>, vector<1x16x48xbf16>
    %2 = vector.shape_cast %1 : vector<1x16x48xbf16> to vector<16x48xbf16>
    %c0_2 = arith.constant 0 : index
    %c0_3 = arith.constant 0 : index
    %c0_4 = arith.constant 0 : index
    %3 = vector.load %arg2[%c0_2, %c0_3, %c0_4] : memref<7x48x128xbf16, #tpu.memory_space<vmem>>, vector<1x48x128xbf16>
    %4 = vector.shape_cast %3 : vector<1x48x128xbf16> to vector<48x128xbf16>
    %cst_5 = arith.constant dense<0.000000e+00> : vector<16x128xf32>
    %5 = tpu.matmul %2, %4, %cst_5 {dimension_numbers = #tpu.dot_dimension_numbers<[1], [0], [0], [1], [0, 0, 1, 1], [], []>} : vector<16x48xbf16>, vector<48x128xbf16>, vector<16x128xf32> -> vector<16x128xf32>
    %6 = arith.addf %0, %5 : vector<16x128xf32>
    %c0_6 = arith.constant 0 : index
    %c1 = arith.constant 1 : index
    %c0_7 = arith.constant 0 : index
    %7 = vector.load %arg1[%c0_6, %c1, %c0_7] : memref<1x22x48xbf16, #tpu.memory_space<vmem>>, vector<1x16x48xbf16>
    %8 = vector.shape_cast %7 : vector<1x16x48xbf16> to vector<16x48xbf16>
    %c1_8 = arith.constant 1 : index
    %c0_9 = arith.constant 0 : index
    %c0_10 = arith.constant 0 : index
    %9 = vector.load %arg2[%c1_8, %c0_9, %c0_10] : memref<7x48x128xbf16, #tpu.memory_space<vmem>>, vector<1x48x128xbf16>
    %10 = vector.shape_cast %9 : vector<1x48x128xbf16> to vector<48x128xbf16>
    %cst_11 = arith.constant dense<0.000000e+00> : vector<16x128xf32>
    %11 = tpu.matmul %8, %10, %cst_11 {dimension_numbers = #tpu.dot_dimension_numbers<[1], [0], [0], [1], [0, 0, 1, 1], [], []>} : vector<16x48xbf16>, vector<48x128xbf16>, vector<16x128xf32> -> vector<16x128xf32>
    %12 = arith.addf %6, %11 : vector<16x128xf32>
    %c0_12 = arith.constant 0 : index
    %c2 = arith.constant 2 : index
    %c0_13 = arith.constant 0 : index
    %13 = vector.load %arg1[%c0_12, %c2, %c0_13] : memref<1x22x48xbf16, #tpu.memory_space<vmem>>, vector<1x16x48xbf16>
    %14 = vector.shape_cast %13 : vector<1x16x48xbf16> to vector<16x48xbf16>
    %c2_14 = arith.constant 2 : index
    %c0_15 = arith.constant 0 : index
    %c0_16 = arith.constant 0 : index
    %15 = vector.load %arg2[%c2_14, %c0_15, %c0_16] : memref<7x48x128xbf16, #tpu.memory_space<vmem>>, vector<1x48x128xbf16>
    %16 = vector.shape_cast %15 : vector<1x48x128xbf16> to vector<48x128xbf16>
    %cst_17 = arith.constant dense<0.000000e+00> : vector<16x128xf32>
    %17 = tpu.matmul %14, %16, %cst_17 {dimension_numbers = #tpu.dot_dimension_numbers<[1], [0], [0], [1], [0, 0, 1, 1], [], []>} : vector<16x48xbf16>, vector<48x128xbf16>, vector<16x128xf32> -> vector<16x128xf32>
    %18 = arith.addf %12, %17 : vector<16x128xf32>
    %c0_18 = arith.constant 0 : index
    %c3 = arith.constant 3 : index
    %c0_19 = arith.constant 0 : index
    %19 = vector.load %arg1[%c0_18, %c3, %c0_19] : memref<1x22x48xbf16, #tpu.memory_space<vmem>>, vector<1x16x48xbf16>
    %20 = vector.shape_cast %19 : vector<1x16x48xbf16> to vector<16x48xbf16>
    %c3_20 = arith.constant 3 : index
    %c0_21 = arith.constant 0 : index
    %c0_22 = arith.constant 0 : index
    %21 = vector.load %arg2[%c3_20, %c0_21, %c0_22] : memref<7x48x128xbf16, #tpu.memory_space<vmem>>, vector<1x48x128xbf16>
    %22 = vector.shape_cast %21 : vector<1x48x128xbf16> to vector<48x128xbf16>
    %cst_23 = arith.constant dense<0.000000e+00> : vector<16x128xf32>
    %23 = tpu.matmul %20, %22, %cst_23 {dimension_numbers = #tpu.dot_dimension_numbers<[1], [0], [0], [1], [0, 0, 1, 1], [], []>} : vector<16x48xbf16>, vector<48x128xbf16>, vector<16x128xf32> -> vector<16x128xf32>
    %24 = arith.addf %18, %23 : vector<16x128xf32>
    %c0_24 = arith.constant 0 : index
    %c4 = arith.constant 4 : index
    %c0_25 = arith.constant 0 : index
    %25 = vector.load %arg1[%c0_24, %c4, %c0_25] : memref<1x22x48xbf16, #tpu.memory_space<vmem>>, vector<1x16x48xbf16>
    %26 = vector.shape_cast %25 : vector<1x16x48xbf16> to vector<16x48xbf16>
    %c4_26 = arith.constant 4 : index
    %c0_27 = arith.constant 0 : index
    %c0_28 = arith.constant 0 : index
    %27 = vector.load %arg2[%c4_26, %c0_27, %c0_28] : memref<7x48x128xbf16, #tpu.memory_space<vmem>>, vector<1x48x128xbf16>
    %28 = vector.shape_cast %27 : vector<1x48x128xbf16> to vector<48x128xbf16>
    %cst_29 = arith.constant dense<0.000000e+00> : vector<16x128xf32>
    %29 = tpu.matmul %26, %28, %cst_29 {dimension_numbers = #tpu.dot_dimension_numbers<[1], [0], [0], [1], [0, 0, 1, 1], [], []>} : vector<16x48xbf16>, vector<48x128xbf16>, vector<16x128xf32> -> vector<16x128xf32>
    %30 = arith.addf %24, %29 : vector<16x128xf32>
    %c0_30 = arith.constant 0 : index
    %c5 = arith.constant 5 : index
    %c0_31 = arith.constant 0 : index
    %31 = vector.load %arg1[%c0_30, %c5, %c0_31] : memref<1x22x48xbf16, #tpu.memory_space<vmem>>, vector<1x16x48xbf16>
    %32 = vector.shape_cast %31 : vector<1x16x48xbf16> to vector<16x48xbf16>
    %c5_32 = arith.constant 5 : index
    %c0_33 = arith.constant 0 : index
    %c0_34 = arith.constant 0 : index
    %33 = vector.load %arg2[%c5_32, %c0_33, %c0_34] : memref<7x48x128xbf16, #tpu.memory_space<vmem>>, vector<1x48x128xbf16>
    %34 = vector.shape_cast %33 : vector<1x48x128xbf16> to vector<48x128xbf16>
    %cst_35 = arith.constant dense<0.000000e+00> : vector<16x128xf32>
    %35 = tpu.matmul %32, %34, %cst_35 {dimension_numbers = #tpu.dot_dimension_numbers<[1], [0], [0], [1], [0, 0, 1, 1], [], []>} : vector<16x48xbf16>, vector<48x128xbf16>, vector<16x128xf32> -> vector<16x128xf32>
    %36 = arith.addf %30, %35 : vector<16x128xf32>
    %c0_36 = arith.constant 0 : index
    %c6 = arith.constant 6 : index
    %c0_37 = arith.constant 0 : index
    %37 = vector.load %arg1[%c0_36, %c6, %c0_37] : memref<1x22x48xbf16, #tpu.memory_space<vmem>>, vector<1x16x48xbf16>
    %38 = vector.shape_cast %37 : vector<1x16x48xbf16> to vector<16x48xbf16>
    %c6_38 = arith.constant 6 : index
    %c0_39 = arith.constant 0 : index
    %c0_40 = arith.constant 0 : index
    %39 = vector.load %arg2[%c6_38, %c0_39, %c0_40] : memref<7x48x128xbf16, #tpu.memory_space<vmem>>, vector<1x48x128xbf16>
    %40 = vector.shape_cast %39 : vector<1x48x128xbf16> to vector<48x128xbf16>
    %cst_41 = arith.constant dense<0.000000e+00> : vector<16x128xf32>
    %41 = tpu.matmul %38, %40, %cst_41 {dimension_numbers = #tpu.dot_dimension_numbers<[1], [0], [0], [1], [0, 0, 1, 1], [], []>} : vector<16x48xbf16>, vector<48x128xbf16>, vector<16x128xf32> -> vector<16x128xf32>
    %42 = arith.addf %36, %41 : vector<16x128xf32>
    %c0_42 = arith.constant 0 : index
    %c0_43 = arith.constant 0 : index
    %43 = vector.load %arg3[%c0_42, %c0_43] : memref<128x8xf32, #tpu.memory_space<vmem>>, vector<128x8xf32>
    %c0_44 = arith.constant 0 : index
    %c0_45 = arith.constant 0 : index
    %44 = vector.load %arg4[%c0_44, %c0_45] : memref<8x128xf32, #tpu.memory_space<vmem>>, vector<8x128xf32>
    %cst_46 = arith.constant dense<0.000000e+00> : vector<16x8xf32>
    %45 = tpu.matmul %42, %43, %cst_46 {dimension_numbers = #tpu.dot_dimension_numbers<[1], [0], [0], [1], [0, 0, 1, 1], [], []>} : vector<16x128xf32>, vector<128x8xf32>, vector<16x8xf32> -> vector<16x8xf32>
    %cst_47 = arith.constant dense<0.000000e+00> : vector<8xf32>
    %46 = vector.multi_reduction <add>, %45, %cst_47 [0] : vector<16x8xf32> to vector<8xf32>
    %47 = vector.shape_cast %46 : vector<8xf32> to vector<1x8xf32>
    %48 = arith.mulf %42, %42 : vector<16x128xf32>
    %cst_48 = arith.constant dense<0.000000e+00> : vector<16x8xf32>
    %49 = tpu.matmul %48, %43, %cst_48 {dimension_numbers = #tpu.dot_dimension_numbers<[1], [0], [0], [1], [0, 0, 1, 1], [], []>} : vector<16x128xf32>, vector<128x8xf32>, vector<16x8xf32> -> vector<16x8xf32>
    %cst_49 = arith.constant dense<0.000000e+00> : vector<8xf32>
    %50 = vector.multi_reduction <add>, %49, %cst_49 [0] : vector<16x8xf32> to vector<8xf32>
    %51 = vector.shape_cast %50 : vector<8xf32> to vector<1x8xf32>
    %cst_50 = arith.constant 3.906250e-03 : f32
    %52 = vector.broadcast %cst_50 : f32 to vector<1x8xf32>
    %53 = arith.mulf %47, %52 : vector<1x8xf32>
    %cst_51 = arith.constant 3.906250e-03 : f32
    %54 = vector.broadcast %cst_51 : f32 to vector<1x8xf32>
    %55 = arith.mulf %51, %54 : vector<1x8xf32>
    %56 = arith.mulf %53, %53 : vector<1x8xf32>
    %57 = arith.subf %55, %56 : vector<1x8xf32>
    %cst_52 = arith.constant 0.000000e+00 : f32
    %58 = vector.broadcast %cst_52 : f32 to vector<1x8xf32>
    %59 = arith.maximumf %57, %58 : vector<1x8xf32>
    %cst_53 = arith.constant 9.99999974E-6 : f32
    %60 = vector.broadcast %cst_53 : f32 to vector<1x8xf32>
    %61 = arith.addf %59, %60 : vector<1x8xf32>
    %62 = math.rsqrt %61 : vector<1x8xf32>
    %cst_54 = arith.constant 0.000000e+00 : f32
    %63 = vector.broadcast %cst_54 : f32 to vector<1x8xf32>
    %64 = arith.subf %63, %53 : vector<1x8xf32>
    %65 = arith.mulf %64, %62 : vector<1x8xf32>
    %cst_55 = arith.constant dense<0.000000e+00> : vector<1x128xf32>
    %66 = tpu.matmul %62, %44, %cst_55 {dimension_numbers = #tpu.dot_dimension_numbers<[1], [0], [0], [1], [0, 0, 1, 1], [], []>} : vector<1x8xf32>, vector<8x128xf32>, vector<1x128xf32> -> vector<1x128xf32>
    %cst_56 = arith.constant dense<0.000000e+00> : vector<1x128xf32>
    %67 = tpu.matmul %65, %44, %cst_56 {dimension_numbers = #tpu.dot_dimension_numbers<[1], [0], [0], [1], [0, 0, 1, 1], [], []>} : vector<1x8xf32>, vector<8x128xf32>, vector<1x128xf32> -> vector<1x128xf32>
    %68 = vector.broadcast %66 : vector<1x128xf32> to vector<16x128xf32>
    %69 = arith.mulf %42, %68 : vector<16x128xf32>
    %70 = vector.broadcast %67 : vector<1x128xf32> to vector<16x128xf32>
    %71 = arith.addf %69, %70 : vector<16x128xf32>
    %cst_57 = arith.constant 0.000000e+00 : f32
    %72 = vector.broadcast %cst_57 : f32 to vector<16x128xf32>
    %73 = arith.maximumf %71, %72 : vector<16x128xf32>
    %74 = arith.truncf %73 : vector<16x128xf32> to vector<16x128xbf16>
    %c0_58 = arith.constant 0 : index
    %c0_59 = arith.constant 0 : index
    %c0_60 = arith.constant 0 : index
    %75 = vector.load %arg5[%c0_58, %c0_59, %c0_60] : memref<1x16x128xbf16, #tpu.memory_space<vmem>>, vector<1x16x128xbf16>
    %76 = vector.shape_cast %75 : vector<1x16x128xbf16> to vector<16x128xbf16>
    %77 = vector.shape_cast %74 : vector<16x128xbf16> to vector<1x16x128xbf16>
    tpu.vector_store %arg5[%c0_58, %c0_59, %c0_60], %77 {strides = array<i32>} : memref<1x16x128xbf16, #tpu.memory_space<vmem>>, vector<1x16x128xbf16>,
    return
  }
  func.func @transform_0(%arg0: i32) -> (i32, i32, i32) {
    %c0_i32 = arith.constant 0 : i32
    %c0_i32_0 = arith.constant 0 : i32
    %c0_i32_1 = arith.constant 0 : i32
    return %arg0, %c0_i32, %c0_i32_0 : i32, i32, i32
  }
  func.func @transform_1(%arg0: i32) -> (i32, i32, i32) {
    %c0_i32 = arith.constant 0 : i32
    %c0_i32_0 = arith.constant 0 : i32
    %c0_i32_1 = arith.constant 0 : i32
    %c0_i32_2 = arith.constant 0 : i32
    return %c0_i32, %c0_i32_0, %c0_i32_1 : i32, i32, i32
  }
  func.func @transform_2(%arg0: i32) -> (i32, i32) {
    %c0_i32 = arith.constant 0 : i32
    %c0_i32_0 = arith.constant 0 : i32
    %c0_i32_1 = arith.constant 0 : i32
    return %c0_i32, %c0_i32_0 : i32, i32
  }
  func.func @transform_3(%arg0: i32) -> (i32, i32) {
    %c0_i32 = arith.constant 0 : i32
    %c0_i32_0 = arith.constant 0 : i32
    %c0_i32_1 = arith.constant 0 : i32
    return %c0_i32, %c0_i32_0 : i32, i32
  }
  func.func @transform_4(%arg0: i32) -> (i32, i32, i32) {
    %c0_i32 = arith.constant 0 : i32
    %c0_i32_0 = arith.constant 0 : i32
    %c0_i32_1 = arith.constant 0 : i32
    return %arg0, %c0_i32, %c0_i32_0 : i32, i32, i32
  }
}

module attributes {stable_mosaic.version = 11 : i64} {
  func.func @_conv_in_relu_kernel(%arg0: i32, %arg1: memref<1x9x256xbf16, #tpu.memory_space<vmem>>, %arg2: memref<2x256x128xbf16, #tpu.memory_space<vmem>>, %arg3: memref<128x16xf32, #tpu.memory_space<vmem>>, %arg4: memref<16x128xf32, #tpu.memory_space<vmem>>, %arg5: memref<1x8x128xbf16, #tpu.memory_space<vmem>>) attributes {dimension_semantics = [#tpu.dimension_semantics<parallel>], iteration_bounds = array<i64: 2>, scalar_prefetch = 0 : i64, scratch_operands = 0 : i64, tpu.core_type = #tpu.core_type<tc>, window_params = [{transform_indices = @transform_0, window_bounds = array<i64: 1, 9, 256>}, {pipeline_mode = #tpu.pipeline_mode<synchronous>, transform_indices = @transform_1, window_bounds = array<i64: 2, 256, 128>}, {pipeline_mode = #tpu.pipeline_mode<synchronous>, transform_indices = @transform_2, window_bounds = array<i64: 128, 16>}, {pipeline_mode = #tpu.pipeline_mode<synchronous>, transform_indices = @transform_3, window_bounds = array<i64: 16, 128>}, {transform_indices = @transform_4, window_bounds = array<i64: 1, 8, 128>}]} {
    %cst = arith.constant 0.000000e+00 : f32
    %0 = vector.broadcast %cst : f32 to vector<8x128xf32>
    %c0 = arith.constant 0 : index
    %c0_0 = arith.constant 0 : index
    %c0_1 = arith.constant 0 : index
    %1 = vector.load %arg1[%c0, %c0_0, %c0_1] : memref<1x9x256xbf16, #tpu.memory_space<vmem>>, vector<1x8x256xbf16>
    %2 = vector.shape_cast %1 : vector<1x8x256xbf16> to vector<8x256xbf16>
    %c0_2 = arith.constant 0 : index
    %c0_3 = arith.constant 0 : index
    %c0_4 = arith.constant 0 : index
    %3 = vector.load %arg2[%c0_2, %c0_3, %c0_4] : memref<2x256x128xbf16, #tpu.memory_space<vmem>>, vector<1x256x128xbf16>
    %4 = vector.shape_cast %3 : vector<1x256x128xbf16> to vector<256x128xbf16>
    %cst_5 = arith.constant dense<0.000000e+00> : vector<8x128xf32>
    %5 = tpu.matmul %2, %4, %cst_5 {dimension_numbers = #tpu.dot_dimension_numbers<[1], [0], [0], [1], [0, 0, 1, 1], [], []>} : vector<8x256xbf16>, vector<256x128xbf16>, vector<8x128xf32> -> vector<8x128xf32>
    %6 = arith.addf %0, %5 : vector<8x128xf32>
    %c0_6 = arith.constant 0 : index
    %c1 = arith.constant 1 : index
    %c0_7 = arith.constant 0 : index
    %7 = vector.load %arg1[%c0_6, %c1, %c0_7] : memref<1x9x256xbf16, #tpu.memory_space<vmem>>, vector<1x8x256xbf16>
    %8 = vector.shape_cast %7 : vector<1x8x256xbf16> to vector<8x256xbf16>
    %c1_8 = arith.constant 1 : index
    %c0_9 = arith.constant 0 : index
    %c0_10 = arith.constant 0 : index
    %9 = vector.load %arg2[%c1_8, %c0_9, %c0_10] : memref<2x256x128xbf16, #tpu.memory_space<vmem>>, vector<1x256x128xbf16>
    %10 = vector.shape_cast %9 : vector<1x256x128xbf16> to vector<256x128xbf16>
    %cst_11 = arith.constant dense<0.000000e+00> : vector<8x128xf32>
    %11 = tpu.matmul %8, %10, %cst_11 {dimension_numbers = #tpu.dot_dimension_numbers<[1], [0], [0], [1], [0, 0, 1, 1], [], []>} : vector<8x256xbf16>, vector<256x128xbf16>, vector<8x128xf32> -> vector<8x128xf32>
    %12 = arith.addf %6, %11 : vector<8x128xf32>
    %c0_12 = arith.constant 0 : index
    %c0_13 = arith.constant 0 : index
    %13 = vector.load %arg3[%c0_12, %c0_13] : memref<128x16xf32, #tpu.memory_space<vmem>>, vector<128x16xf32>
    %c0_14 = arith.constant 0 : index
    %c0_15 = arith.constant 0 : index
    %14 = vector.load %arg4[%c0_14, %c0_15] : memref<16x128xf32, #tpu.memory_space<vmem>>, vector<16x128xf32>
    %cst_16 = arith.constant dense<0.000000e+00> : vector<8x16xf32>
    %15 = tpu.matmul %12, %13, %cst_16 {dimension_numbers = #tpu.dot_dimension_numbers<[1], [0], [0], [1], [0, 0, 1, 1], [], []>} : vector<8x128xf32>, vector<128x16xf32>, vector<8x16xf32> -> vector<8x16xf32>
    %cst_17 = arith.constant dense<0.000000e+00> : vector<16xf32>
    %16 = vector.multi_reduction <add>, %15, %cst_17 [0] : vector<8x16xf32> to vector<16xf32>
    %17 = vector.shape_cast %16 : vector<16xf32> to vector<1x16xf32>
    %18 = arith.mulf %12, %12 : vector<8x128xf32>
    %cst_18 = arith.constant dense<0.000000e+00> : vector<8x16xf32>
    %19 = tpu.matmul %18, %13, %cst_18 {dimension_numbers = #tpu.dot_dimension_numbers<[1], [0], [0], [1], [0, 0, 1, 1], [], []>} : vector<8x128xf32>, vector<128x16xf32>, vector<8x16xf32> -> vector<8x16xf32>
    %cst_19 = arith.constant dense<0.000000e+00> : vector<16xf32>
    %20 = vector.multi_reduction <add>, %19, %cst_19 [0] : vector<8x16xf32> to vector<16xf32>
    %21 = vector.shape_cast %20 : vector<16xf32> to vector<1x16xf32>
    %cst_20 = arith.constant 1.562500e-02 : f32
    %22 = vector.broadcast %cst_20 : f32 to vector<1x16xf32>
    %23 = arith.mulf %17, %22 : vector<1x16xf32>
    %cst_21 = arith.constant 1.562500e-02 : f32
    %24 = vector.broadcast %cst_21 : f32 to vector<1x16xf32>
    %25 = arith.mulf %21, %24 : vector<1x16xf32>
    %26 = arith.mulf %23, %23 : vector<1x16xf32>
    %27 = arith.subf %25, %26 : vector<1x16xf32>
    %cst_22 = arith.constant 0.000000e+00 : f32
    %28 = vector.broadcast %cst_22 : f32 to vector<1x16xf32>
    %29 = arith.maximumf %27, %28 : vector<1x16xf32>
    %cst_23 = arith.constant 9.99999974E-6 : f32
    %30 = vector.broadcast %cst_23 : f32 to vector<1x16xf32>
    %31 = arith.addf %29, %30 : vector<1x16xf32>
    %32 = math.rsqrt %31 : vector<1x16xf32>
    %cst_24 = arith.constant 0.000000e+00 : f32
    %33 = vector.broadcast %cst_24 : f32 to vector<1x16xf32>
    %34 = arith.subf %33, %23 : vector<1x16xf32>
    %35 = arith.mulf %34, %32 : vector<1x16xf32>
    %cst_25 = arith.constant dense<0.000000e+00> : vector<1x128xf32>
    %36 = tpu.matmul %32, %14, %cst_25 {dimension_numbers = #tpu.dot_dimension_numbers<[1], [0], [0], [1], [0, 0, 1, 1], [], []>} : vector<1x16xf32>, vector<16x128xf32>, vector<1x128xf32> -> vector<1x128xf32>
    %cst_26 = arith.constant dense<0.000000e+00> : vector<1x128xf32>
    %37 = tpu.matmul %35, %14, %cst_26 {dimension_numbers = #tpu.dot_dimension_numbers<[1], [0], [0], [1], [0, 0, 1, 1], [], []>} : vector<1x16xf32>, vector<16x128xf32>, vector<1x128xf32> -> vector<1x128xf32>
    %38 = vector.broadcast %36 : vector<1x128xf32> to vector<8x128xf32>
    %39 = arith.mulf %12, %38 : vector<8x128xf32>
    %40 = vector.broadcast %37 : vector<1x128xf32> to vector<8x128xf32>
    %41 = arith.addf %39, %40 : vector<8x128xf32>
    %cst_27 = arith.constant 0.000000e+00 : f32
    %42 = vector.broadcast %cst_27 : f32 to vector<8x128xf32>
    %43 = arith.maximumf %41, %42 : vector<8x128xf32>
    %44 = arith.truncf %43 : vector<8x128xf32> to vector<8x128xbf16>
    %c0_28 = arith.constant 0 : index
    %c0_29 = arith.constant 0 : index
    %c0_30 = arith.constant 0 : index
    %45 = vector.load %arg5[%c0_28, %c0_29, %c0_30] : memref<1x8x128xbf16, #tpu.memory_space<vmem>>, vector<1x8x128xbf16>
    %46 = vector.shape_cast %45 : vector<1x8x128xbf16> to vector<8x128xbf16>
    %47 = vector.shape_cast %44 : vector<8x128xbf16> to vector<1x8x128xbf16>
    tpu.vector_store %arg5[%c0_28, %c0_29, %c0_30], %47 {strides = array<i32>} : memref<1x8x128xbf16, #tpu.memory_space<vmem>>, vector<1x8x128xbf16>,
    return
  }
  func.func @transform_0(%arg0: i32) -> (i32, i32, i32) {
    %c0_i32 = arith.constant 0 : i32
    %c0_i32_0 = arith.constant 0 : i32
    %c0_i32_1 = arith.constant 0 : i32
    return %arg0, %c0_i32, %c0_i32_0 : i32, i32, i32
  }
  func.func @transform_1(%arg0: i32) -> (i32, i32, i32) {
    %c0_i32 = arith.constant 0 : i32
    %c0_i32_0 = arith.constant 0 : i32
    %c0_i32_1 = arith.constant 0 : i32
    %c0_i32_2 = arith.constant 0 : i32
    return %c0_i32, %c0_i32_0, %c0_i32_1 : i32, i32, i32
  }
  func.func @transform_2(%arg0: i32) -> (i32, i32) {
    %c0_i32 = arith.constant 0 : i32
    %c0_i32_0 = arith.constant 0 : i32
    %c0_i32_1 = arith.constant 0 : i32
    return %c0_i32, %c0_i32_0 : i32, i32
  }
  func.func @transform_3(%arg0: i32) -> (i32, i32) {
    %c0_i32 = arith.constant 0 : i32
    %c0_i32_0 = arith.constant 0 : i32
    %c0_i32_1 = arith.constant 0 : i32
    return %c0_i32, %c0_i32_0 : i32, i32
  }
  func.func @transform_4(%arg0: i32) -> (i32, i32, i32) {
    %c0_i32 = arith.constant 0 : i32
    %c0_i32_0 = arith.constant 0 : i32
    %c0_i32_1 = arith.constant 0 : i32
    return %arg0, %c0_i32, %c0_i32_0 : i32, i32, i32
  }
}

module attributes {stable_mosaic.version = 11 : i64} {
  func.func @_conv_in_relu_kernel(%arg0: i32, %arg1: memref<1x5x256xbf16, #tpu.memory_space<vmem>>, %arg2: memref<2x256x128xbf16, #tpu.memory_space<vmem>>, %arg3: memref<128x32xf32, #tpu.memory_space<vmem>>, %arg4: memref<32x128xf32, #tpu.memory_space<vmem>>, %arg5: memref<1x4x128xbf16, #tpu.memory_space<vmem>>) attributes {dimension_semantics = [#tpu.dimension_semantics<parallel>], iteration_bounds = array<i64: 2>, scalar_prefetch = 0 : i64, scratch_operands = 0 : i64, tpu.core_type = #tpu.core_type<tc>, window_params = [{transform_indices = @transform_0, window_bounds = array<i64: 1, 5, 256>}, {pipeline_mode = #tpu.pipeline_mode<synchronous>, transform_indices = @transform_1, window_bounds = array<i64: 2, 256, 128>}, {pipeline_mode = #tpu.pipeline_mode<synchronous>, transform_indices = @transform_2, window_bounds = array<i64: 128, 32>}, {pipeline_mode = #tpu.pipeline_mode<synchronous>, transform_indices = @transform_3, window_bounds = array<i64: 32, 128>}, {transform_indices = @transform_4, window_bounds = array<i64: 1, 4, 128>}]} {
    %cst = arith.constant 0.000000e+00 : f32
    %0 = vector.broadcast %cst : f32 to vector<4x128xf32>
    %c0 = arith.constant 0 : index
    %c0_0 = arith.constant 0 : index
    %c0_1 = arith.constant 0 : index
    %1 = vector.load %arg1[%c0, %c0_0, %c0_1] : memref<1x5x256xbf16, #tpu.memory_space<vmem>>, vector<1x4x256xbf16>
    %2 = vector.shape_cast %1 : vector<1x4x256xbf16> to vector<4x256xbf16>
    %c0_2 = arith.constant 0 : index
    %c0_3 = arith.constant 0 : index
    %c0_4 = arith.constant 0 : index
    %3 = vector.load %arg2[%c0_2, %c0_3, %c0_4] : memref<2x256x128xbf16, #tpu.memory_space<vmem>>, vector<1x256x128xbf16>
    %4 = vector.shape_cast %3 : vector<1x256x128xbf16> to vector<256x128xbf16>
    %cst_5 = arith.constant dense<0.000000e+00> : vector<4x128xf32>
    %5 = tpu.matmul %2, %4, %cst_5 {dimension_numbers = #tpu.dot_dimension_numbers<[1], [0], [0], [1], [0, 0, 1, 1], [], []>} : vector<4x256xbf16>, vector<256x128xbf16>, vector<4x128xf32> -> vector<4x128xf32>
    %6 = arith.addf %0, %5 : vector<4x128xf32>
    %c0_6 = arith.constant 0 : index
    %c1 = arith.constant 1 : index
    %c0_7 = arith.constant 0 : index
    %7 = vector.load %arg1[%c0_6, %c1, %c0_7] : memref<1x5x256xbf16, #tpu.memory_space<vmem>>, vector<1x4x256xbf16>
    %8 = vector.shape_cast %7 : vector<1x4x256xbf16> to vector<4x256xbf16>
    %c1_8 = arith.constant 1 : index
    %c0_9 = arith.constant 0 : index
    %c0_10 = arith.constant 0 : index
    %9 = vector.load %arg2[%c1_8, %c0_9, %c0_10] : memref<2x256x128xbf16, #tpu.memory_space<vmem>>, vector<1x256x128xbf16>
    %10 = vector.shape_cast %9 : vector<1x256x128xbf16> to vector<256x128xbf16>
    %cst_11 = arith.constant dense<0.000000e+00> : vector<4x128xf32>
    %11 = tpu.matmul %8, %10, %cst_11 {dimension_numbers = #tpu.dot_dimension_numbers<[1], [0], [0], [1], [0, 0, 1, 1], [], []>} : vector<4x256xbf16>, vector<256x128xbf16>, vector<4x128xf32> -> vector<4x128xf32>
    %12 = arith.addf %6, %11 : vector<4x128xf32>
    %c0_12 = arith.constant 0 : index
    %c0_13 = arith.constant 0 : index
    %13 = vector.load %arg3[%c0_12, %c0_13] : memref<128x32xf32, #tpu.memory_space<vmem>>, vector<128x32xf32>
    %c0_14 = arith.constant 0 : index
    %c0_15 = arith.constant 0 : index
    %14 = vector.load %arg4[%c0_14, %c0_15] : memref<32x128xf32, #tpu.memory_space<vmem>>, vector<32x128xf32>
    %cst_16 = arith.constant dense<0.000000e+00> : vector<4x32xf32>
    %15 = tpu.matmul %12, %13, %cst_16 {dimension_numbers = #tpu.dot_dimension_numbers<[1], [0], [0], [1], [0, 0, 1, 1], [], []>} : vector<4x128xf32>, vector<128x32xf32>, vector<4x32xf32> -> vector<4x32xf32>
    %cst_17 = arith.constant dense<0.000000e+00> : vector<32xf32>
    %16 = vector.multi_reduction <add>, %15, %cst_17 [0] : vector<4x32xf32> to vector<32xf32>
    %17 = vector.shape_cast %16 : vector<32xf32> to vector<1x32xf32>
    %18 = arith.mulf %12, %12 : vector<4x128xf32>
    %cst_18 = arith.constant dense<0.000000e+00> : vector<4x32xf32>
    %19 = tpu.matmul %18, %13, %cst_18 {dimension_numbers = #tpu.dot_dimension_numbers<[1], [0], [0], [1], [0, 0, 1, 1], [], []>} : vector<4x128xf32>, vector<128x32xf32>, vector<4x32xf32> -> vector<4x32xf32>
    %cst_19 = arith.constant dense<0.000000e+00> : vector<32xf32>
    %20 = vector.multi_reduction <add>, %19, %cst_19 [0] : vector<4x32xf32> to vector<32xf32>
    %21 = vector.shape_cast %20 : vector<32xf32> to vector<1x32xf32>
    %cst_20 = arith.constant 6.250000e-02 : f32
    %22 = vector.broadcast %cst_20 : f32 to vector<1x32xf32>
    %23 = arith.mulf %17, %22 : vector<1x32xf32>
    %cst_21 = arith.constant 6.250000e-02 : f32
    %24 = vector.broadcast %cst_21 : f32 to vector<1x32xf32>
    %25 = arith.mulf %21, %24 : vector<1x32xf32>
    %26 = arith.mulf %23, %23 : vector<1x32xf32>
    %27 = arith.subf %25, %26 : vector<1x32xf32>
    %cst_22 = arith.constant 0.000000e+00 : f32
    %28 = vector.broadcast %cst_22 : f32 to vector<1x32xf32>
    %29 = arith.maximumf %27, %28 : vector<1x32xf32>
    %cst_23 = arith.constant 9.99999974E-6 : f32
    %30 = vector.broadcast %cst_23 : f32 to vector<1x32xf32>
    %31 = arith.addf %29, %30 : vector<1x32xf32>
    %32 = math.rsqrt %31 : vector<1x32xf32>
    %cst_24 = arith.constant 0.000000e+00 : f32
    %33 = vector.broadcast %cst_24 : f32 to vector<1x32xf32>
    %34 = arith.subf %33, %23 : vector<1x32xf32>
    %35 = arith.mulf %34, %32 : vector<1x32xf32>
    %cst_25 = arith.constant dense<0.000000e+00> : vector<1x128xf32>
    %36 = tpu.matmul %32, %14, %cst_25 {dimension_numbers = #tpu.dot_dimension_numbers<[1], [0], [0], [1], [0, 0, 1, 1], [], []>} : vector<1x32xf32>, vector<32x128xf32>, vector<1x128xf32> -> vector<1x128xf32>
    %cst_26 = arith.constant dense<0.000000e+00> : vector<1x128xf32>
    %37 = tpu.matmul %35, %14, %cst_26 {dimension_numbers = #tpu.dot_dimension_numbers<[1], [0], [0], [1], [0, 0, 1, 1], [], []>} : vector<1x32xf32>, vector<32x128xf32>, vector<1x128xf32> -> vector<1x128xf32>
    %38 = vector.broadcast %36 : vector<1x128xf32> to vector<4x128xf32>
    %39 = arith.mulf %12, %38 : vector<4x128xf32>
    %40 = vector.broadcast %37 : vector<1x128xf32> to vector<4x128xf32>
    %41 = arith.addf %39, %40 : vector<4x128xf32>
    %cst_27 = arith.constant 0.000000e+00 : f32
    %42 = vector.broadcast %cst_27 : f32 to vector<4x128xf32>
    %43 = arith.maximumf %41, %42 : vector<4x128xf32>
    %44 = arith.truncf %43 : vector<4x128xf32> to vector<4x128xbf16>
    %c0_28 = arith.constant 0 : index
    %c0_29 = arith.constant 0 : index
    %c0_30 = arith.constant 0 : index
    %45 = vector.load %arg5[%c0_28, %c0_29, %c0_30] : memref<1x4x128xbf16, #tpu.memory_space<vmem>>, vector<1x4x128xbf16>
    %46 = vector.shape_cast %45 : vector<1x4x128xbf16> to vector<4x128xbf16>
    %47 = vector.shape_cast %44 : vector<4x128xbf16> to vector<1x4x128xbf16>
    tpu.vector_store %arg5[%c0_28, %c0_29, %c0_30], %47 {strides = array<i32>} : memref<1x4x128xbf16, #tpu.memory_space<vmem>>, vector<1x4x128xbf16>,
    return
  }
  func.func @transform_0(%arg0: i32) -> (i32, i32, i32) {
    %c0_i32 = arith.constant 0 : i32
    %c0_i32_0 = arith.constant 0 : i32
    %c0_i32_1 = arith.constant 0 : i32
    return %arg0, %c0_i32, %c0_i32_0 : i32, i32, i32
  }
  func.func @transform_1(%arg0: i32) -> (i32, i32, i32) {
    %c0_i32 = arith.constant 0 : i32
    %c0_i32_0 = arith.constant 0 : i32
    %c0_i32_1 = arith.constant 0 : i32
    %c0_i32_2 = arith.constant 0 : i32
    return %c0_i32, %c0_i32_0, %c0_i32_1 : i32, i32, i32
  }
  func.func @transform_2(%arg0: i32) -> (i32, i32) {
    %c0_i32 = arith.constant 0 : i32
    %c0_i32_0 = arith.constant 0 : i32
    %c0_i32_1 = arith.constant 0 : i32
    return %c0_i32, %c0_i32_0 : i32, i32
  }
  func.func @transform_3(%arg0: i32) -> (i32, i32) {
    %c0_i32 = arith.constant 0 : i32
    %c0_i32_0 = arith.constant 0 : i32
    %c0_i32_1 = arith.constant 0 : i32
    return %c0_i32, %c0_i32_0 : i32, i32
  }
  func.func @transform_4(%arg0: i32) -> (i32, i32, i32) {
    %c0_i32 = arith.constant 0 : i32
    %c0_i32_0 = arith.constant 0 : i32
    %c0_i32_1 = arith.constant 0 : i32
    return %arg0, %c0_i32, %c0_i32_0 : i32, i32, i32
  }
}

module attributes {stable_mosaic.version = 11 : i64} {
  func.func @_res_block_kernel(%arg0: i32, %arg1: memref<1x6x128xbf16, #tpu.memory_space<vmem>>, %arg2: memref<3x128x128xbf16, #tpu.memory_space<vmem>>, %arg3: memref<3x128x128xbf16, #tpu.memory_space<vmem>>, %arg4: memref<128x32xf32, #tpu.memory_space<vmem>>, %arg5: memref<32x128xf32, #tpu.memory_space<vmem>>, %arg6: memref<1x4x128xbf16, #tpu.memory_space<vmem>>) attributes {dimension_semantics = [#tpu.dimension_semantics<parallel>], iteration_bounds = array<i64: 2>, scalar_prefetch = 0 : i64, scratch_operands = 0 : i64, tpu.core_type = #tpu.core_type<tc>, window_params = [{transform_indices = @transform_0, window_bounds = array<i64: 1, 6, 128>}, {pipeline_mode = #tpu.pipeline_mode<synchronous>, transform_indices = @transform_1, window_bounds = array<i64: 3, 128, 128>}, {pipeline_mode = #tpu.pipeline_mode<synchronous>, transform_indices = @transform_2, window_bounds = array<i64: 3, 128, 128>}, {pipeline_mode = #tpu.pipeline_mode<synchronous>, transform_indices = @transform_3, window_bounds = array<i64: 128, 32>}, {pipeline_mode = #tpu.pipeline_mode<synchronous>, transform_indices = @transform_4, window_bounds = array<i64: 32, 128>}, {transform_indices = @transform_5, window_bounds = array<i64: 1, 4, 128>}]} {
    %c0 = arith.constant 0 : index
    %c0_0 = arith.constant 0 : index
    %0 = vector.load %arg4[%c0, %c0_0] : memref<128x32xf32, #tpu.memory_space<vmem>>, vector<128x32xf32>
    %c0_1 = arith.constant 0 : index
    %c0_2 = arith.constant 0 : index
    %1 = vector.load %arg5[%c0_1, %c0_2] : memref<32x128xf32, #tpu.memory_space<vmem>>, vector<32x128xf32>
    %cst = arith.constant 0.000000e+00 : f32
    %2 = vector.broadcast %cst : f32 to vector<4x128xf32>
    %c0_3 = arith.constant 0 : index
    %c0_4 = arith.constant 0 : index
    %c0_5 = arith.constant 0 : index
    %3 = vector.load %arg1[%c0_3, %c0_4, %c0_5] : memref<1x6x128xbf16, #tpu.memory_space<vmem>>, vector<1x4x128xbf16>
    %4 = vector.shape_cast %3 : vector<1x4x128xbf16> to vector<4x128xbf16>
    %c0_6 = arith.constant 0 : index
    %c0_7 = arith.constant 0 : index
    %c0_8 = arith.constant 0 : index
    %5 = vector.load %arg2[%c0_6, %c0_7, %c0_8] : memref<3x128x128xbf16, #tpu.memory_space<vmem>>, vector<1x128x128xbf16>
    %6 = vector.shape_cast %5 : vector<1x128x128xbf16> to vector<128x128xbf16>
    %cst_9 = arith.constant dense<0.000000e+00> : vector<4x128xf32>
    %7 = tpu.matmul %4, %6, %cst_9 {dimension_numbers = #tpu.dot_dimension_numbers<[1], [0], [0], [1], [0, 0, 1, 1], [], []>} : vector<4x128xbf16>, vector<128x128xbf16>, vector<4x128xf32> -> vector<4x128xf32>
    %8 = arith.addf %2, %7 : vector<4x128xf32>
    %c0_10 = arith.constant 0 : index
    %c1 = arith.constant 1 : index
    %c0_11 = arith.constant 0 : index
    %9 = vector.load %arg1[%c0_10, %c1, %c0_11] : memref<1x6x128xbf16, #tpu.memory_space<vmem>>, vector<1x4x128xbf16>
    %10 = vector.shape_cast %9 : vector<1x4x128xbf16> to vector<4x128xbf16>
    %c1_12 = arith.constant 1 : index
    %c0_13 = arith.constant 0 : index
    %c0_14 = arith.constant 0 : index
    %11 = vector.load %arg2[%c1_12, %c0_13, %c0_14] : memref<3x128x128xbf16, #tpu.memory_space<vmem>>, vector<1x128x128xbf16>
    %12 = vector.shape_cast %11 : vector<1x128x128xbf16> to vector<128x128xbf16>
    %cst_15 = arith.constant dense<0.000000e+00> : vector<4x128xf32>
    %13 = tpu.matmul %10, %12, %cst_15 {dimension_numbers = #tpu.dot_dimension_numbers<[1], [0], [0], [1], [0, 0, 1, 1], [], []>} : vector<4x128xbf16>, vector<128x128xbf16>, vector<4x128xf32> -> vector<4x128xf32>
    %14 = arith.addf %8, %13 : vector<4x128xf32>
    %c0_16 = arith.constant 0 : index
    %c2 = arith.constant 2 : index
    %c0_17 = arith.constant 0 : index
    %15 = vector.load %arg1[%c0_16, %c2, %c0_17] : memref<1x6x128xbf16, #tpu.memory_space<vmem>>, vector<1x4x128xbf16>
    %16 = vector.shape_cast %15 : vector<1x4x128xbf16> to vector<4x128xbf16>
    %c2_18 = arith.constant 2 : index
    %c0_19 = arith.constant 0 : index
    %c0_20 = arith.constant 0 : index
    %17 = vector.load %arg2[%c2_18, %c0_19, %c0_20] : memref<3x128x128xbf16, #tpu.memory_space<vmem>>, vector<1x128x128xbf16>
    %18 = vector.shape_cast %17 : vector<1x128x128xbf16> to vector<128x128xbf16>
    %cst_21 = arith.constant dense<0.000000e+00> : vector<4x128xf32>
    %19 = tpu.matmul %16, %18, %cst_21 {dimension_numbers = #tpu.dot_dimension_numbers<[1], [0], [0], [1], [0, 0, 1, 1], [], []>} : vector<4x128xbf16>, vector<128x128xbf16>, vector<4x128xf32> -> vector<4x128xf32>
    %20 = arith.addf %14, %19 : vector<4x128xf32>
    %cst_22 = arith.constant dense<0.000000e+00> : vector<4x32xf32>
    %21 = tpu.matmul %20, %0, %cst_22 {dimension_numbers = #tpu.dot_dimension_numbers<[1], [0], [0], [1], [0, 0, 1, 1], [], []>} : vector<4x128xf32>, vector<128x32xf32>, vector<4x32xf32> -> vector<4x32xf32>
    %cst_23 = arith.constant dense<0.000000e+00> : vector<32xf32>
    %22 = vector.multi_reduction <add>, %21, %cst_23 [0] : vector<4x32xf32> to vector<32xf32>
    %23 = vector.shape_cast %22 : vector<32xf32> to vector<1x32xf32>
    %24 = arith.mulf %20, %20 : vector<4x128xf32>
    %cst_24 = arith.constant dense<0.000000e+00> : vector<4x32xf32>
    %25 = tpu.matmul %24, %0, %cst_24 {dimension_numbers = #tpu.dot_dimension_numbers<[1], [0], [0], [1], [0, 0, 1, 1], [], []>} : vector<4x128xf32>, vector<128x32xf32>, vector<4x32xf32> -> vector<4x32xf32>
    %cst_25 = arith.constant dense<0.000000e+00> : vector<32xf32>
    %26 = vector.multi_reduction <add>, %25, %cst_25 [0] : vector<4x32xf32> to vector<32xf32>
    %27 = vector.shape_cast %26 : vector<32xf32> to vector<1x32xf32>
    %cst_26 = arith.constant 6.250000e-02 : f32
    %28 = vector.broadcast %cst_26 : f32 to vector<1x32xf32>
    %29 = arith.mulf %23, %28 : vector<1x32xf32>
    %cst_27 = arith.constant 6.250000e-02 : f32
    %30 = vector.broadcast %cst_27 : f32 to vector<1x32xf32>
    %31 = arith.mulf %27, %30 : vector<1x32xf32>
    %32 = arith.mulf %29, %29 : vector<1x32xf32>
    %33 = arith.subf %31, %32 : vector<1x32xf32>
    %cst_28 = arith.constant 0.000000e+00 : f32
    %34 = vector.broadcast %cst_28 : f32 to vector<1x32xf32>
    %35 = arith.maximumf %33, %34 : vector<1x32xf32>
    %cst_29 = arith.constant 9.99999974E-6 : f32
    %36 = vector.broadcast %cst_29 : f32 to vector<1x32xf32>
    %37 = arith.addf %35, %36 : vector<1x32xf32>
    %38 = math.rsqrt %37 : vector<1x32xf32>
    %cst_30 = arith.constant 0.000000e+00 : f32
    %39 = vector.broadcast %cst_30 : f32 to vector<1x32xf32>
    %40 = arith.subf %39, %29 : vector<1x32xf32>
    %41 = arith.mulf %40, %38 : vector<1x32xf32>
    %cst_31 = arith.constant dense<0.000000e+00> : vector<1x128xf32>
    %42 = tpu.matmul %38, %1, %cst_31 {dimension_numbers = #tpu.dot_dimension_numbers<[1], [0], [0], [1], [0, 0, 1, 1], [], []>} : vector<1x32xf32>, vector<32x128xf32>, vector<1x128xf32> -> vector<1x128xf32>
    %cst_32 = arith.constant dense<0.000000e+00> : vector<1x128xf32>
    %43 = tpu.matmul %41, %1, %cst_32 {dimension_numbers = #tpu.dot_dimension_numbers<[1], [0], [0], [1], [0, 0, 1, 1], [], []>} : vector<1x32xf32>, vector<32x128xf32>, vector<1x128xf32> -> vector<1x128xf32>
    %44 = vector.broadcast %42 : vector<1x128xf32> to vector<4x128xf32>
    %45 = arith.mulf %20, %44 : vector<4x128xf32>
    %46 = vector.broadcast %43 : vector<1x128xf32> to vector<4x128xf32>
    %47 = arith.addf %45, %46 : vector<4x128xf32>
    %cst_33 = arith.constant 0.000000e+00 : f32
    %48 = vector.broadcast %cst_33 : f32 to vector<4x128xf32>
    %49 = arith.maximumf %47, %48 : vector<4x128xf32>
    %50 = arith.truncf %49 : vector<4x128xf32> to vector<4x128xbf16>
    %cst_34 = arith.constant 0.000000e+00 : bf16
    %51 = vector.broadcast %cst_34 : bf16 to vector<1x128xbf16>
    %52 = tpu.concatenate %51, %50, %51 in 0 : vector<1x128xbf16>, vector<4x128xbf16>, vector<1x128xbf16> -> vector<6x128xbf16>
    %cst_35 = arith.constant 0.000000e+00 : f32
    %53 = vector.broadcast %cst_35 : f32 to vector<4x128xf32>
    %54 = vector.extract_strided_slice %52 {offsets = [0, 0], sizes = [4, 128], strides = [1, 1]} : vector<6x128xbf16> to vector<4x128xbf16>
    %c0_36 = arith.constant 0 : index
    %c0_37 = arith.constant 0 : index
    %c0_38 = arith.constant 0 : index
    %55 = vector.load %arg3[%c0_36, %c0_37, %c0_38] : memref<3x128x128xbf16, #tpu.memory_space<vmem>>, vector<1x128x128xbf16>
    %56 = vector.shape_cast %55 : vector<1x128x128xbf16> to vector<128x128xbf16>
    %cst_39 = arith.constant dense<0.000000e+00> : vector<4x128xf32>
    %57 = tpu.matmul %54, %56, %cst_39 {dimension_numbers = #tpu.dot_dimension_numbers<[1], [0], [0], [1], [0, 0, 1, 1], [], []>} : vector<4x128xbf16>, vector<128x128xbf16>, vector<4x128xf32> -> vector<4x128xf32>
    %58 = arith.addf %53, %57 : vector<4x128xf32>
    %59 = vector.extract_strided_slice %52 {offsets = [1, 0], sizes = [4, 128], strides = [1, 1]} : vector<6x128xbf16> to vector<4x128xbf16>
    %c1_40 = arith.constant 1 : index
    %c0_41 = arith.constant 0 : index
    %c0_42 = arith.constant 0 : index
    %60 = vector.load %arg3[%c1_40, %c0_41, %c0_42] : memref<3x128x128xbf16, #tpu.memory_space<vmem>>, vector<1x128x128xbf16>
    %61 = vector.shape_cast %60 : vector<1x128x128xbf16> to vector<128x128xbf16>
    %cst_43 = arith.constant dense<0.000000e+00> : vector<4x128xf32>
    %62 = tpu.matmul %59, %61, %cst_43 {dimension_numbers = #tpu.dot_dimension_numbers<[1], [0], [0], [1], [0, 0, 1, 1], [], []>} : vector<4x128xbf16>, vector<128x128xbf16>, vector<4x128xf32> -> vector<4x128xf32>
    %63 = arith.addf %58, %62 : vector<4x128xf32>
    %64 = vector.extract_strided_slice %52 {offsets = [2, 0], sizes = [4, 128], strides = [1, 1]} : vector<6x128xbf16> to vector<4x128xbf16>
    %c2_44 = arith.constant 2 : index
    %c0_45 = arith.constant 0 : index
    %c0_46 = arith.constant 0 : index
    %65 = vector.load %arg3[%c2_44, %c0_45, %c0_46] : memref<3x128x128xbf16, #tpu.memory_space<vmem>>, vector<1x128x128xbf16>
    %66 = vector.shape_cast %65 : vector<1x128x128xbf16> to vector<128x128xbf16>
    %cst_47 = arith.constant dense<0.000000e+00> : vector<4x128xf32>
    %67 = tpu.matmul %64, %66, %cst_47 {dimension_numbers = #tpu.dot_dimension_numbers<[1], [0], [0], [1], [0, 0, 1, 1], [], []>} : vector<4x128xbf16>, vector<128x128xbf16>, vector<4x128xf32> -> vector<4x128xf32>
    %68 = arith.addf %63, %67 : vector<4x128xf32>
    %cst_48 = arith.constant dense<0.000000e+00> : vector<4x32xf32>
    %69 = tpu.matmul %68, %0, %cst_48 {dimension_numbers = #tpu.dot_dimension_numbers<[1], [0], [0], [1], [0, 0, 1, 1], [], []>} : vector<4x128xf32>, vector<128x32xf32>, vector<4x32xf32> -> vector<4x32xf32>
    %cst_49 = arith.constant dense<0.000000e+00> : vector<32xf32>
    %70 = vector.multi_reduction <add>, %69, %cst_49 [0] : vector<4x32xf32> to vector<32xf32>
    %71 = vector.shape_cast %70 : vector<32xf32> to vector<1x32xf32>
    %72 = arith.mulf %68, %68 : vector<4x128xf32>
    %cst_50 = arith.constant dense<0.000000e+00> : vector<4x32xf32>
    %73 = tpu.matmul %72, %0, %cst_50 {dimension_numbers = #tpu.dot_dimension_numbers<[1], [0], [0], [1], [0, 0, 1, 1], [], []>} : vector<4x128xf32>, vector<128x32xf32>, vector<4x32xf32> -> vector<4x32xf32>
    %cst_51 = arith.constant dense<0.000000e+00> : vector<32xf32>
    %74 = vector.multi_reduction <add>, %73, %cst_51 [0] : vector<4x32xf32> to vector<32xf32>
    %75 = vector.shape_cast %74 : vector<32xf32> to vector<1x32xf32>
    %cst_52 = arith.constant 6.250000e-02 : f32
    %76 = vector.broadcast %cst_52 : f32 to vector<1x32xf32>
    %77 = arith.mulf %71, %76 : vector<1x32xf32>
    %cst_53 = arith.constant 6.250000e-02 : f32
    %78 = vector.broadcast %cst_53 : f32 to vector<1x32xf32>
    %79 = arith.mulf %75, %78 : vector<1x32xf32>
    %80 = arith.mulf %77, %77 : vector<1x32xf32>
    %81 = arith.subf %79, %80 : vector<1x32xf32>
    %cst_54 = arith.constant 0.000000e+00 : f32
    %82 = vector.broadcast %cst_54 : f32 to vector<1x32xf32>
    %83 = arith.maximumf %81, %82 : vector<1x32xf32>
    %cst_55 = arith.constant 9.99999974E-6 : f32
    %84 = vector.broadcast %cst_55 : f32 to vector<1x32xf32>
    %85 = arith.addf %83, %84 : vector<1x32xf32>
    %86 = math.rsqrt %85 : vector<1x32xf32>
    %cst_56 = arith.constant 0.000000e+00 : f32
    %87 = vector.broadcast %cst_56 : f32 to vector<1x32xf32>
    %88 = arith.subf %87, %77 : vector<1x32xf32>
    %89 = arith.mulf %88, %86 : vector<1x32xf32>
    %cst_57 = arith.constant dense<0.000000e+00> : vector<1x128xf32>
    %90 = tpu.matmul %86, %1, %cst_57 {dimension_numbers = #tpu.dot_dimension_numbers<[1], [0], [0], [1], [0, 0, 1, 1], [], []>} : vector<1x32xf32>, vector<32x128xf32>, vector<1x128xf32> -> vector<1x128xf32>
    %cst_58 = arith.constant dense<0.000000e+00> : vector<1x128xf32>
    %91 = tpu.matmul %89, %1, %cst_58 {dimension_numbers = #tpu.dot_dimension_numbers<[1], [0], [0], [1], [0, 0, 1, 1], [], []>} : vector<1x32xf32>, vector<32x128xf32>, vector<1x128xf32> -> vector<1x128xf32>
    %92 = vector.broadcast %90 : vector<1x128xf32> to vector<4x128xf32>
    %93 = arith.mulf %68, %92 : vector<4x128xf32>
    %94 = vector.broadcast %91 : vector<1x128xf32> to vector<4x128xf32>
    %95 = arith.addf %93, %94 : vector<4x128xf32>
    %c0_59 = arith.constant 0 : index
    %c1_60 = arith.constant 1 : index
    %c0_61 = arith.constant 0 : index
    %96 = vector.load %arg1[%c0_59, %c1_60, %c0_61] : memref<1x6x128xbf16, #tpu.memory_space<vmem>>, vector<1x4x128xbf16>
    %97 = vector.shape_cast %96 : vector<1x4x128xbf16> to vector<4x128xbf16>
    %98 = arith.extf %97 : vector<4x128xbf16> to vector<4x128xf32>
    %99 = arith.addf %95, %98 : vector<4x128xf32>
    %cst_62 = arith.constant 0.000000e+00 : f32
    %100 = vector.broadcast %cst_62 : f32 to vector<4x128xf32>
    %101 = arith.maximumf %99, %100 : vector<4x128xf32>
    %102 = arith.truncf %101 : vector<4x128xf32> to vector<4x128xbf16>
    %c0_63 = arith.constant 0 : index
    %c0_64 = arith.constant 0 : index
    %c0_65 = arith.constant 0 : index
    %103 = vector.load %arg6[%c0_63, %c0_64, %c0_65] : memref<1x4x128xbf16, #tpu.memory_space<vmem>>, vector<1x4x128xbf16>
    %104 = vector.shape_cast %103 : vector<1x4x128xbf16> to vector<4x128xbf16>
    %105 = vector.shape_cast %102 : vector<4x128xbf16> to vector<1x4x128xbf16>
    tpu.vector_store %arg6[%c0_63, %c0_64, %c0_65], %105 {strides = array<i32>} : memref<1x4x128xbf16, #tpu.memory_space<vmem>>, vector<1x4x128xbf16>,
    return
  }
  func.func @transform_0(%arg0: i32) -> (i32, i32, i32) {
    %c0_i32 = arith.constant 0 : i32
    %c0_i32_0 = arith.constant 0 : i32
    %c0_i32_1 = arith.constant 0 : i32
    return %arg0, %c0_i32, %c0_i32_0 : i32, i32, i32
  }
  func.func @transform_1(%arg0: i32) -> (i32, i32, i32) {
    %c0_i32 = arith.constant 0 : i32
    %c0_i32_0 = arith.constant 0 : i32
    %c0_i32_1 = arith.constant 0 : i32
    %c0_i32_2 = arith.constant 0 : i32
    return %c0_i32, %c0_i32_0, %c0_i32_1 : i32, i32, i32
  }
  func.func @transform_2(%arg0: i32) -> (i32, i32, i32) {
    %c0_i32 = arith.constant 0 : i32
    %c0_i32_0 = arith.constant 0 : i32
    %c0_i32_1 = arith.constant 0 : i32
    %c0_i32_2 = arith.constant 0 : i32
    return %c0_i32, %c0_i32_0, %c0_i32_1 : i32, i32, i32
  }
  func.func @transform_3(%arg0: i32) -> (i32, i32) {
    %c0_i32 = arith.constant 0 : i32
    %c0_i32_0 = arith.constant 0 : i32
    %c0_i32_1 = arith.constant 0 : i32
    return %c0_i32, %c0_i32_0 : i32, i32
  }
  func.func @transform_4(%arg0: i32) -> (i32, i32) {
    %c0_i32 = arith.constant 0 : i32
    %c0_i32_0 = arith.constant 0 : i32
    %c0_i32_1 = arith.constant 0 : i32
    return %c0_i32, %c0_i32_0 : i32, i32
  }
  func.func @transform_5(%arg0: i32) -> (i32, i32, i32) {
    %c0_i32 = arith.constant 0 : i32
    %c0_i32_0 = arith.constant 0 : i32
    %c0_i32_1 = arith.constant 0 : i32
    return %arg0, %c0_i32, %c0_i32_0 : i32, i32, i32
  }
}

module attributes {stable_mosaic.version = 11 : i64} {
  func.func @_res_block_kernel(%arg0: i32, %arg1: memref<1x6x128xbf16, #tpu.memory_space<vmem>>, %arg2: memref<3x128x128xbf16, #tpu.memory_space<vmem>>, %arg3: memref<3x128x128xbf16, #tpu.memory_space<vmem>>, %arg4: memref<128x32xf32, #tpu.memory_space<vmem>>, %arg5: memref<32x128xf32, #tpu.memory_space<vmem>>, %arg6: memref<1x128xf32, #tpu.memory_space<vmem>>, %arg7: memref<1x4x128xbf16, #tpu.memory_space<vmem>>) attributes {dimension_semantics = [#tpu.dimension_semantics<parallel>], iteration_bounds = array<i64: 2>, scalar_prefetch = 0 : i64, scratch_operands = 0 : i64, tpu.core_type = #tpu.core_type<tc>, window_params = [{transform_indices = @transform_0, window_bounds = array<i64: 1, 6, 128>}, {pipeline_mode = #tpu.pipeline_mode<synchronous>, transform_indices = @transform_1, window_bounds = array<i64: 3, 128, 128>}, {pipeline_mode = #tpu.pipeline_mode<synchronous>, transform_indices = @transform_2, window_bounds = array<i64: 3, 128, 128>}, {pipeline_mode = #tpu.pipeline_mode<synchronous>, transform_indices = @transform_3, window_bounds = array<i64: 128, 32>}, {pipeline_mode = #tpu.pipeline_mode<synchronous>, transform_indices = @transform_4, window_bounds = array<i64: 32, 128>}, {pipeline_mode = #tpu.pipeline_mode<synchronous>, transform_indices = @transform_5, window_bounds = array<i64: 1, 128>}, {transform_indices = @transform_6, window_bounds = array<i64: 1, 4, 128>}]} {
    %c0 = arith.constant 0 : index
    %c0_0 = arith.constant 0 : index
    %0 = vector.load %arg4[%c0, %c0_0] : memref<128x32xf32, #tpu.memory_space<vmem>>, vector<128x32xf32>
    %c0_1 = arith.constant 0 : index
    %c0_2 = arith.constant 0 : index
    %1 = vector.load %arg5[%c0_1, %c0_2] : memref<32x128xf32, #tpu.memory_space<vmem>>, vector<32x128xf32>
    %cst = arith.constant 0.000000e+00 : f32
    %2 = vector.broadcast %cst : f32 to vector<4x128xf32>
    %c0_3 = arith.constant 0 : index
    %c0_4 = arith.constant 0 : index
    %c0_5 = arith.constant 0 : index
    %3 = vector.load %arg1[%c0_3, %c0_4, %c0_5] : memref<1x6x128xbf16, #tpu.memory_space<vmem>>, vector<1x4x128xbf16>
    %4 = vector.shape_cast %3 : vector<1x4x128xbf16> to vector<4x128xbf16>
    %c0_6 = arith.constant 0 : index
    %c0_7 = arith.constant 0 : index
    %c0_8 = arith.constant 0 : index
    %5 = vector.load %arg2[%c0_6, %c0_7, %c0_8] : memref<3x128x128xbf16, #tpu.memory_space<vmem>>, vector<1x128x128xbf16>
    %6 = vector.shape_cast %5 : vector<1x128x128xbf16> to vector<128x128xbf16>
    %cst_9 = arith.constant dense<0.000000e+00> : vector<4x128xf32>
    %7 = tpu.matmul %4, %6, %cst_9 {dimension_numbers = #tpu.dot_dimension_numbers<[1], [0], [0], [1], [0, 0, 1, 1], [], []>} : vector<4x128xbf16>, vector<128x128xbf16>, vector<4x128xf32> -> vector<4x128xf32>
    %8 = arith.addf %2, %7 : vector<4x128xf32>
    %c0_10 = arith.constant 0 : index
    %c1 = arith.constant 1 : index
    %c0_11 = arith.constant 0 : index
    %9 = vector.load %arg1[%c0_10, %c1, %c0_11] : memref<1x6x128xbf16, #tpu.memory_space<vmem>>, vector<1x4x128xbf16>
    %10 = vector.shape_cast %9 : vector<1x4x128xbf16> to vector<4x128xbf16>
    %c1_12 = arith.constant 1 : index
    %c0_13 = arith.constant 0 : index
    %c0_14 = arith.constant 0 : index
    %11 = vector.load %arg2[%c1_12, %c0_13, %c0_14] : memref<3x128x128xbf16, #tpu.memory_space<vmem>>, vector<1x128x128xbf16>
    %12 = vector.shape_cast %11 : vector<1x128x128xbf16> to vector<128x128xbf16>
    %cst_15 = arith.constant dense<0.000000e+00> : vector<4x128xf32>
    %13 = tpu.matmul %10, %12, %cst_15 {dimension_numbers = #tpu.dot_dimension_numbers<[1], [0], [0], [1], [0, 0, 1, 1], [], []>} : vector<4x128xbf16>, vector<128x128xbf16>, vector<4x128xf32> -> vector<4x128xf32>
    %14 = arith.addf %8, %13 : vector<4x128xf32>
    %c0_16 = arith.constant 0 : index
    %c2 = arith.constant 2 : index
    %c0_17 = arith.constant 0 : index
    %15 = vector.load %arg1[%c0_16, %c2, %c0_17] : memref<1x6x128xbf16, #tpu.memory_space<vmem>>, vector<1x4x128xbf16>
    %16 = vector.shape_cast %15 : vector<1x4x128xbf16> to vector<4x128xbf16>
    %c2_18 = arith.constant 2 : index
    %c0_19 = arith.constant 0 : index
    %c0_20 = arith.constant 0 : index
    %17 = vector.load %arg2[%c2_18, %c0_19, %c0_20] : memref<3x128x128xbf16, #tpu.memory_space<vmem>>, vector<1x128x128xbf16>
    %18 = vector.shape_cast %17 : vector<1x128x128xbf16> to vector<128x128xbf16>
    %cst_21 = arith.constant dense<0.000000e+00> : vector<4x128xf32>
    %19 = tpu.matmul %16, %18, %cst_21 {dimension_numbers = #tpu.dot_dimension_numbers<[1], [0], [0], [1], [0, 0, 1, 1], [], []>} : vector<4x128xbf16>, vector<128x128xbf16>, vector<4x128xf32> -> vector<4x128xf32>
    %20 = arith.addf %14, %19 : vector<4x128xf32>
    %cst_22 = arith.constant dense<0.000000e+00> : vector<4x32xf32>
    %21 = tpu.matmul %20, %0, %cst_22 {dimension_numbers = #tpu.dot_dimension_numbers<[1], [0], [0], [1], [0, 0, 1, 1], [], []>} : vector<4x128xf32>, vector<128x32xf32>, vector<4x32xf32> -> vector<4x32xf32>
    %cst_23 = arith.constant dense<0.000000e+00> : vector<32xf32>
    %22 = vector.multi_reduction <add>, %21, %cst_23 [0] : vector<4x32xf32> to vector<32xf32>
    %23 = vector.shape_cast %22 : vector<32xf32> to vector<1x32xf32>
    %24 = arith.mulf %20, %20 : vector<4x128xf32>
    %cst_24 = arith.constant dense<0.000000e+00> : vector<4x32xf32>
    %25 = tpu.matmul %24, %0, %cst_24 {dimension_numbers = #tpu.dot_dimension_numbers<[1], [0], [0], [1], [0, 0, 1, 1], [], []>} : vector<4x128xf32>, vector<128x32xf32>, vector<4x32xf32> -> vector<4x32xf32>
    %cst_25 = arith.constant dense<0.000000e+00> : vector<32xf32>
    %26 = vector.multi_reduction <add>, %25, %cst_25 [0] : vector<4x32xf32> to vector<32xf32>
    %27 = vector.shape_cast %26 : vector<32xf32> to vector<1x32xf32>
    %cst_26 = arith.constant 6.250000e-02 : f32
    %28 = vector.broadcast %cst_26 : f32 to vector<1x32xf32>
    %29 = arith.mulf %23, %28 : vector<1x32xf32>
    %cst_27 = arith.constant 6.250000e-02 : f32
    %30 = vector.broadcast %cst_27 : f32 to vector<1x32xf32>
    %31 = arith.mulf %27, %30 : vector<1x32xf32>
    %32 = arith.mulf %29, %29 : vector<1x32xf32>
    %33 = arith.subf %31, %32 : vector<1x32xf32>
    %cst_28 = arith.constant 0.000000e+00 : f32
    %34 = vector.broadcast %cst_28 : f32 to vector<1x32xf32>
    %35 = arith.maximumf %33, %34 : vector<1x32xf32>
    %cst_29 = arith.constant 9.99999974E-6 : f32
    %36 = vector.broadcast %cst_29 : f32 to vector<1x32xf32>
    %37 = arith.addf %35, %36 : vector<1x32xf32>
    %38 = math.rsqrt %37 : vector<1x32xf32>
    %cst_30 = arith.constant 0.000000e+00 : f32
    %39 = vector.broadcast %cst_30 : f32 to vector<1x32xf32>
    %40 = arith.subf %39, %29 : vector<1x32xf32>
    %41 = arith.mulf %40, %38 : vector<1x32xf32>
    %cst_31 = arith.constant dense<0.000000e+00> : vector<1x128xf32>
    %42 = tpu.matmul %38, %1, %cst_31 {dimension_numbers = #tpu.dot_dimension_numbers<[1], [0], [0], [1], [0, 0, 1, 1], [], []>} : vector<1x32xf32>, vector<32x128xf32>, vector<1x128xf32> -> vector<1x128xf32>
    %cst_32 = arith.constant dense<0.000000e+00> : vector<1x128xf32>
    %43 = tpu.matmul %41, %1, %cst_32 {dimension_numbers = #tpu.dot_dimension_numbers<[1], [0], [0], [1], [0, 0, 1, 1], [], []>} : vector<1x32xf32>, vector<32x128xf32>, vector<1x128xf32> -> vector<1x128xf32>
    %44 = vector.broadcast %42 : vector<1x128xf32> to vector<4x128xf32>
    %45 = arith.mulf %20, %44 : vector<4x128xf32>
    %46 = vector.broadcast %43 : vector<1x128xf32> to vector<4x128xf32>
    %47 = arith.addf %45, %46 : vector<4x128xf32>
    %cst_33 = arith.constant 0.000000e+00 : f32
    %48 = vector.broadcast %cst_33 : f32 to vector<4x128xf32>
    %49 = arith.maximumf %47, %48 : vector<4x128xf32>
    %50 = arith.truncf %49 : vector<4x128xf32> to vector<4x128xbf16>
    %cst_34 = arith.constant 0.000000e+00 : bf16
    %51 = vector.broadcast %cst_34 : bf16 to vector<1x128xbf16>
    %52 = tpu.concatenate %51, %50, %51 in 0 : vector<1x128xbf16>, vector<4x128xbf16>, vector<1x128xbf16> -> vector<6x128xbf16>
    %cst_35 = arith.constant 0.000000e+00 : f32
    %53 = vector.broadcast %cst_35 : f32 to vector<4x128xf32>
    %54 = vector.extract_strided_slice %52 {offsets = [0, 0], sizes = [4, 128], strides = [1, 1]} : vector<6x128xbf16> to vector<4x128xbf16>
    %c0_36 = arith.constant 0 : index
    %c0_37 = arith.constant 0 : index
    %c0_38 = arith.constant 0 : index
    %55 = vector.load %arg3[%c0_36, %c0_37, %c0_38] : memref<3x128x128xbf16, #tpu.memory_space<vmem>>, vector<1x128x128xbf16>
    %56 = vector.shape_cast %55 : vector<1x128x128xbf16> to vector<128x128xbf16>
    %cst_39 = arith.constant dense<0.000000e+00> : vector<4x128xf32>
    %57 = tpu.matmul %54, %56, %cst_39 {dimension_numbers = #tpu.dot_dimension_numbers<[1], [0], [0], [1], [0, 0, 1, 1], [], []>} : vector<4x128xbf16>, vector<128x128xbf16>, vector<4x128xf32> -> vector<4x128xf32>
    %58 = arith.addf %53, %57 : vector<4x128xf32>
    %59 = vector.extract_strided_slice %52 {offsets = [1, 0], sizes = [4, 128], strides = [1, 1]} : vector<6x128xbf16> to vector<4x128xbf16>
    %c1_40 = arith.constant 1 : index
    %c0_41 = arith.constant 0 : index
    %c0_42 = arith.constant 0 : index
    %60 = vector.load %arg3[%c1_40, %c0_41, %c0_42] : memref<3x128x128xbf16, #tpu.memory_space<vmem>>, vector<1x128x128xbf16>
    %61 = vector.shape_cast %60 : vector<1x128x128xbf16> to vector<128x128xbf16>
    %cst_43 = arith.constant dense<0.000000e+00> : vector<4x128xf32>
    %62 = tpu.matmul %59, %61, %cst_43 {dimension_numbers = #tpu.dot_dimension_numbers<[1], [0], [0], [1], [0, 0, 1, 1], [], []>} : vector<4x128xbf16>, vector<128x128xbf16>, vector<4x128xf32> -> vector<4x128xf32>
    %63 = arith.addf %58, %62 : vector<4x128xf32>
    %64 = vector.extract_strided_slice %52 {offsets = [2, 0], sizes = [4, 128], strides = [1, 1]} : vector<6x128xbf16> to vector<4x128xbf16>
    %c2_44 = arith.constant 2 : index
    %c0_45 = arith.constant 0 : index
    %c0_46 = arith.constant 0 : index
    %65 = vector.load %arg3[%c2_44, %c0_45, %c0_46] : memref<3x128x128xbf16, #tpu.memory_space<vmem>>, vector<1x128x128xbf16>
    %66 = vector.shape_cast %65 : vector<1x128x128xbf16> to vector<128x128xbf16>
    %cst_47 = arith.constant dense<0.000000e+00> : vector<4x128xf32>
    %67 = tpu.matmul %64, %66, %cst_47 {dimension_numbers = #tpu.dot_dimension_numbers<[1], [0], [0], [1], [0, 0, 1, 1], [], []>} : vector<4x128xbf16>, vector<128x128xbf16>, vector<4x128xf32> -> vector<4x128xf32>
    %68 = arith.addf %63, %67 : vector<4x128xf32>
    %c0_48 = arith.constant 0 : index
    %c0_49 = arith.constant 0 : index
    %69 = vector.load %arg6[%c0_48, %c0_49] : memref<1x128xf32, #tpu.memory_space<vmem>>, vector<1x128xf32>
    %70 = vector.broadcast %69 : vector<1x128xf32> to vector<4x128xf32>
    %71 = arith.addf %68, %70 : vector<4x128xf32>
    %c0_50 = arith.constant 0 : index
    %c1_51 = arith.constant 1 : index
    %c0_52 = arith.constant 0 : index
    %72 = vector.load %arg1[%c0_50, %c1_51, %c0_52] : memref<1x6x128xbf16, #tpu.memory_space<vmem>>, vector<1x4x128xbf16>
    %73 = vector.shape_cast %72 : vector<1x4x128xbf16> to vector<4x128xbf16>
    %74 = arith.extf %73 : vector<4x128xbf16> to vector<4x128xf32>
    %75 = arith.addf %71, %74 : vector<4x128xf32>
    %76 = arith.truncf %75 : vector<4x128xf32> to vector<4x128xbf16>
    %c0_53 = arith.constant 0 : index
    %c0_54 = arith.constant 0 : index
    %c0_55 = arith.constant 0 : index
    %77 = vector.load %arg7[%c0_53, %c0_54, %c0_55] : memref<1x4x128xbf16, #tpu.memory_space<vmem>>, vector<1x4x128xbf16>
    %78 = vector.shape_cast %77 : vector<1x4x128xbf16> to vector<4x128xbf16>
    %79 = vector.shape_cast %76 : vector<4x128xbf16> to vector<1x4x128xbf16>
    tpu.vector_store %arg7[%c0_53, %c0_54, %c0_55], %79 {strides = array<i32>} : memref<1x4x128xbf16, #tpu.memory_space<vmem>>, vector<1x4x128xbf16>,
    return
  }
  func.func @transform_0(%arg0: i32) -> (i32, i32, i32) {
    %c0_i32 = arith.constant 0 : i32
    %c0_i32_0 = arith.constant 0 : i32
    %c0_i32_1 = arith.constant 0 : i32
    return %arg0, %c0_i32, %c0_i32_0 : i32, i32, i32
  }
  func.func @transform_1(%arg0: i32) -> (i32, i32, i32) {
    %c0_i32 = arith.constant 0 : i32
    %c0_i32_0 = arith.constant 0 : i32
    %c0_i32_1 = arith.constant 0 : i32
    %c0_i32_2 = arith.constant 0 : i32
    return %c0_i32, %c0_i32_0, %c0_i32_1 : i32, i32, i32
  }
  func.func @transform_2(%arg0: i32) -> (i32, i32, i32) {
    %c0_i32 = arith.constant 0 : i32
    %c0_i32_0 = arith.constant 0 : i32
    %c0_i32_1 = arith.constant 0 : i32
    %c0_i32_2 = arith.constant 0 : i32
    return %c0_i32, %c0_i32_0, %c0_i32_1 : i32, i32, i32
  }
  func.func @transform_3(%arg0: i32) -> (i32, i32) {
    %c0_i32 = arith.constant 0 : i32
    %c0_i32_0 = arith.constant 0 : i32
    %c0_i32_1 = arith.constant 0 : i32
    return %c0_i32, %c0_i32_0 : i32, i32
  }
  func.func @transform_4(%arg0: i32) -> (i32, i32) {
    %c0_i32 = arith.constant 0 : i32
    %c0_i32_0 = arith.constant 0 : i32
    %c0_i32_1 = arith.constant 0 : i32
    return %c0_i32, %c0_i32_0 : i32, i32
  }
  func.func @transform_5(%arg0: i32) -> (i32, i32) {
    %c0_i32 = arith.constant 0 : i32
    %c0_i32_0 = arith.constant 0 : i32
    %c0_i32_1 = arith.constant 0 : i32
    return %c0_i32, %c0_i32_0 : i32, i32
  }
  func.func @transform_6(%arg0: i32) -> (i32, i32, i32) {
    %c0_i32 = arith.constant 0 : i32
    %c0_i32_0 = arith.constant 0 : i32
    %c0_i32_1 = arith.constant 0 : i32
    return %arg0, %c0_i32, %c0_i32_0 : i32, i32, i32
  }
}

</mosaic_0001>

<bundles_post_ra>
// kernel: tile.44
= control target key start
LH: loop header
LB: loop body
LE: loop exit
PB: predicated region body
PF: predicated region fallthrough
CT: control target
= control target key end

     0   :  { %vm6_vm0 = vcmask 1043458   ;;  %vm10_vm1 = vcmask 1045508   ;;  %vm14_vm2 = vcmask 1047558   ;;  %s19_s6 = smov 3  ;;  %s22_s7 = smov 12  ;;  %vm16_vm3 = vcmask 64512   ;;  %s736_s0 = inlined_call_operand.vmem [shape: f32[16,8,8], index: 0, kind: input, shape index: {}]   ;;  %s737_s1 = inlined_call_operand.vmem [shape: f32[128,8], index: 1, kind: output, shape index: {}]  }
   0x1   :  { %v348_v0 = vld [vmem:[%s736_s0 + $0xf] ss:$16 sm:%s19_s6]   ;;  %s27_s12 = smov 48  ;;  %s32_s13 = smov 192  ;;  %vm38_vm4 = vcmask 1048512   ;;  %vm60_vm5 = vcmask 982912  }
   0x2   :  { %v349_v1 = vld [vmem:[%s736_s0 + $0xf] ss:$16 sm:%s22_s7]   ;;  %s63_s18 = smov 3  ;;  %s66_s21 = smov 12  ;;  %vm82_vm6 = vcmask 917312   ;;  %vm104_vm7 = vcmask 851712  }
   0x3   :  { %v25_v2 = vsel %vm6_vm0, %v349_v1, %v348_v0  ;;  %v350_v3 = vld [vmem:[%s736_s0 + $0xf] ss:$16 sm:%s27_s12]   ;;  %v356_v6 = vld [vmem:[%s736_s0 + $0xd] ss:$16 sm:%s63_s18]   ;;  %s71_s22 = smov 48  ;;  %s76_s27 = smov 192 }
   0x4   :  { %v351_v4 = vld [vmem:[%s736_s0 + $0xf] ss:$16 sm:%s32_s13]   ;;  %v30_v5 = vsel %vm10_vm1, %v350_v3, %v25_v2  ;;  %v357_v8 = vld [vmem:[%s736_s0 + $0xd] ss:$16 sm:%s66_s21]   ;;  %s423_s28 = smov 120   ;;  %s41_s2 = smov 3 }
   0x5   :  { %v35_v7 = vsel %vm14_vm2, %v351_v4, %v30_v5  ;;  %v358_v9 = vld [vmem:[%s736_s0 + $0xd] ss:$16 sm:%s71_s22]   ;;  %v69_v10 = vsel %vm6_vm0, %v357_v8, %v356_v6  ;;  %s44_s3 = smov 12  ;;  %v352_v13 = vld [vmem:[%s736_s0 + $0xe] ss:$16 sm:%s41_s2]   ;;  %s49_s8 = smov 48 }
   0x6   :  { %36 = vrot.lane.b32.xlu0 %v35_v7, %s423_s28  ;;  %v359_v11 = vld [vmem:[%s736_s0 + $0xd] ss:$16 sm:%s76_s27]   ;;  %v74_v12 = vsel %vm10_vm1, %v358_v9, %v69_v10  ;;  %s54_s9 = smov 192  ;;  %s85_s14 = smov 3  ;;  %vm126_vm8 = vcmask 786112   ;;  %vm148_vm9 = vcmask 720512  }
   0x7   :  { %v353_v14 = vld [vmem:[%s736_s0 + $0xe] ss:$16 sm:%s44_s3]   ;;  %v79_v15 = vsel %vm14_vm2, %v359_v11, %v74_v12  ;;  %s424_s15 = smov 104   ;;  %v360_v20 = vld [vmem:[%s736_s0 + $0xc] ss:$16 sm:%s85_s14]   ;;  %s88_s18 = smov 12 }
   0x8   :  { %v47_v16 = vsel %vm6_vm0, %v353_v14, %v352_v13  ;;  %v354_v17 = vld [vmem:[%s736_s0 + $0xe] ss:$16 sm:%s49_s8]   ;;  %80 = vrot.lane.b32.xlu1 %v79_v15, %s424_s15  ;;  %s93_s19 = smov 48  ;;  %s98_s24 = smov 192  ;;  %vm170_vm10 = vcmask 654912   ;;  %vm192_vm11 = vcmask 589312  }
   0x9   :  { %v355_v18 = vld [vmem:[%s736_s0 + $0xe] ss:$16 sm:%s54_s9]   ;;  %v52_v19 = vsel %vm10_vm1, %v354_v17, %v47_v16  ;;  %v361_v22 = vld [vmem:[%s736_s0 + $0xc] ss:$16 sm:%s88_s18]   ;;  %s425_s25 = smov 112   ;;  %s107_s28 = smov 3 }
   0xa   :  { %v57_v21 = vsel %vm14_vm2, %v355_v18, %v52_v19  ;;  %v362_v23 = vld [vmem:[%s736_s0 + $0xc] ss:$16 sm:%s93_s19]   ;;  %v91_v24 = vsel %vm6_vm0, %v361_v22, %v360_v20  ;;  %s110_s29 = smov 12  ;;  %v364_v27 = vld [vmem:[%s736_s0 + $0xb] ss:$16 sm:%s107_s28]   ;;  %s115_s5 = smov 48 }
   0xb   :  { %58 = vrot.lane.b32.xlu0 %v57_v21, %s425_s25  ;;  %v363_v25 = vld [vmem:[%s736_s0 + $0xc] ss:$16 sm:%s98_s24]   ;;  %v96_v26 = vsel %vm10_vm1, %v362_v23, %v91_v24  ;;  %s120_s6 = smov 192  ;;  %s129_s11 = smov 3  ;;  %vm214_vm12 = vcmask 523712   ;;  %vm236_vm13 = vcmask 458112  }
   0xc   :  { %v365_v28 = vld [vmem:[%s736_s0 + $0xb] ss:$16 sm:%s110_s29]   ;;  %v101_v29 = vsel %vm14_vm2, %v363_v25, %v96_v26  ;;  %s426_s12 = smov 96   ;;  %v368_v34 = vld [vmem:[%s736_s0 + $0xa] ss:$16 sm:%s129_s11]   ;;  %s132_s15 = smov 12 }
   0xd   :  { %v113_v30 = vsel %vm6_vm0, %v365_v28, %v364_v27  ;;  %v366_v31 = vld [vmem:[%s736_s0 + $0xb] ss:$16 sm:%s115_s5]   ;;  %102 = vrot.lane.b32.xlu1 %v101_v29, %s426_s12  ;;  %s137_s16 = smov 48  ;;  %s142_s21 = smov 192  ;;  %vm258_vm14 = vcmask 392512   ;;  %vm280_vm15 = vcmask 326912  }
   0xe   :  { %v367_v32 = vld [vmem:[%s736_s0 + $0xb] ss:$16 sm:%s120_s6]   ;;  %v118_v33 = vsel %vm10_vm1, %v366_v31, %v113_v30  ;;  %v369_v36 = vld [vmem:[%s736_s0 + $0xa] ss:$16 sm:%s132_s15]   ;;  %s427_s22 = smov 88   ;;  %s151_s25 = smov 3 }
   0xf   :  { %v123_v35 = vsel %vm14_vm2, %v367_v32, %v118_v33  ;;  %v370_v37 = vld [vmem:[%s736_s0 + $0xa] ss:$16 sm:%s137_s16]   ;;  %v135_v38 = vsel %vm6_vm0, %v369_v36, %v368_v34  ;;  %s154_s26 = smov 12  ;;  %v372_v41 = vld [vmem:[%s736_s0 + $0x9] ss:$16 sm:%s151_s25]   ;;  %s159_s2 = smov 48 }
  0x10   :  { %124 = vrot.lane.b32.xlu0 %v123_v35, %s427_s22  ;;  %v371_v39 = vld [vmem:[%s736_s0 + $0xa] ss:$16 sm:%s142_s21]   ;;  %v140_v40 = vsel %vm10_vm1, %v370_v37, %v135_v38  ;;  %s164_s3 = smov 192  ;;  %s173_s8 = smov 3 }
  0x11   :  { %v373_v42 = vld [vmem:[%s736_s0 + $0x9] ss:$16 sm:%s154_s26]   ;;  %v145_v43 = vsel %vm14_vm2, %v371_v39, %v140_v40  ;;  %s428_s9 = smov 80   ;;  %v376_v48 = vld [vmem:[%s736_s0 + $0x8] ss:$16 sm:%s173_s8]   ;;  %s176_s12 = smov 12 }
  0x12   :  { %v157_v44 = vsel %vm6_vm0, %v373_v42, %v372_v41  ;;  %v374_v45 = vld [vmem:[%s736_s0 + $0x9] ss:$16 sm:%s159_s2]   ;;  %146 = vrot.lane.b32.xlu1 %v145_v43, %s428_s9  ;;  %s181_s13 = smov 48  ;;  %s186_s18 = smov 192 }
  0x13   :  { %v375_v46 = vld [vmem:[%s736_s0 + $0x9] ss:$16 sm:%s164_s3]   ;;  %v162_v47 = vsel %vm10_vm1, %v374_v45, %v157_v44  ;;  %v377_v50 = vld [vmem:[%s736_s0 + $0x8] ss:$16 sm:%s176_s12]   ;;  %s429_s19 = smov 72   ;;  %s195_s22 = smov 3 }
  0x14   :  { %v167_v49 = vsel %vm14_vm2, %v375_v46, %v162_v47  ;;  %v378_v51 = vld [vmem:[%s736_s0 + $0x8] ss:$16 sm:%s181_s13]   ;;  %v179_v52 = vsel %vm6_vm0, %v377_v50, %v376_v48  ;;  %s198_s23 = smov 12  ;;  %v380_v55 = vld [vmem:[%s736_s0 + $0x7] ss:$16 sm:%s195_s22]   ;;  %s203_s28 = smov 48 }
  0x15   :  { %168 = vrot.lane.b32.xlu0 %v167_v49, %s429_s19  ;;  %v379_v53 = vld [vmem:[%s736_s0 + $0x8] ss:$16 sm:%s186_s18]   ;;  %v184_v54 = vsel %vm10_vm1, %v378_v51, %v179_v52  ;;  %s208_s29 = smov 192  ;;  %s217_s5 = smov 3 }
  0x16   :  { %v381_v56 = vld [vmem:[%s736_s0 + $0x7] ss:$16 sm:%s198_s23]   ;;  %v189_v57 = vsel %vm14_vm2, %v379_v53, %v184_v54  ;;  %s430_s6 = smov 64   ;;  %v384_v62 = vld [vmem:[%s736_s0 + $0x6] ss:$16 sm:%s217_s5]   ;;  %s220_s9 = smov 12 }
  0x17   :  { %v201_v58 = vsel %vm6_vm0, %v381_v56, %v380_v55  ;;  %v382_v59 = vld [vmem:[%s736_s0 + $0x7] ss:$16 sm:%s203_s28]   ;;  %190 = vrot.lane.b32.xlu1 %v189_v57, %s430_s6  ;;  %s225_s10 = smov 48  ;;  %s230_s15 = smov 192 }
  0x18   :  { %v383_v60 = vld [vmem:[%s736_s0 + $0x7] ss:$16 sm:%s208_s29]   ;;  %v206_v61 = vsel %vm10_vm1, %v382_v59, %v201_v58  ;;  %v385_v0 = vld [vmem:[%s736_s0 + $0x6] ss:$16 sm:%s220_s9]   ;;  %s431_s16 = smov 56   ;;  %s239_s19 = smov 3 }
  0x19   :  { %v211_v63 = vsel %vm14_vm2, %v383_v60, %v206_v61  ;;  %v386_v1 = vld [vmem:[%s736_s0 + $0x6] ss:$16 sm:%s225_s10]   ;;  %v223_v2 = vsel %vm6_vm0, %v385_v0, %v384_v62  ;;  %s242_s20 = smov 12  ;;  %v388_v5 = vld [vmem:[%s736_s0 + $0x5] ss:$16 sm:%s239_s19]   ;;  %s247_s25 = smov 48 }
  0x1a   :  { %212 = vrot.lane.b32.xlu0 %v211_v63, %s431_s16  ;;  %v387_v3 = vld [vmem:[%s736_s0 + $0x6] ss:$16 sm:%s230_s15]   ;;  %v228_v4 = vsel %vm10_vm1, %v386_v1, %v223_v2  ;;  %s252_s26 = smov 192  ;;  %s261_s2 = smov 3 }
  0x1b   :  { %v389_v6 = vld [vmem:[%s736_s0 + $0x5] ss:$16 sm:%s242_s20]   ;;  %v233_v7 = vsel %vm14_vm2, %v387_v3, %v228_v4  ;;  %s432_s3 = smov 48   ;;  %v392_v12 = vld [vmem:[%s736_s0 + $0x4] ss:$16 sm:%s261_s2]   ;;  %s264_s6 = smov 12 }
  0x1c   :  { %v245_v8 = vsel %vm6_vm0, %v389_v6, %v388_v5  ;;  %v390_v9 = vld [vmem:[%s736_s0 + $0x5] ss:$16 sm:%s247_s25]   ;;  %234 = vrot.lane.b32.xlu1 %v233_v7, %s432_s3  ;;  %s269_s7 = smov 48  ;;  %s274_s12 = smov 192 }
  0x1d   :  { %v391_v10 = vld [vmem:[%s736_s0 + $0x5] ss:$16 sm:%s252_s26]   ;;  %v250_v11 = vsel %vm10_vm1, %v390_v9, %v245_v8  ;;  %v393_v14 = vld [vmem:[%s736_s0 + $0x4] ss:$16 sm:%s264_s6]   ;;  %s433_s13 = smov 40   ;;  %s283_s16 = smov 3 }
  0x1e   :  { %v255_v13 = vsel %vm14_vm2, %v391_v10, %v250_v11  ;;  %v394_v15 = vld [vmem:[%s736_s0 + $0x4] ss:$16 sm:%s269_s7]   ;;  %v267_v16 = vsel %vm6_vm0, %v393_v14, %v392_v12  ;;  %s286_s17 = smov 12  ;;  %v396_v19 = vld [vmem:[%s736_s0 + $0x3] ss:$16 sm:%s283_s16]   ;;  %s291_s22 = smov 48 }
  0x1f   :  { %256 = vrot.lane.b32.xlu0 %v255_v13, %s433_s13  ;;  %v395_v17 = vld [vmem:[%s736_s0 + $0x4] ss:$16 sm:%s274_s12]   ;;  %v272_v18 = vsel %vm10_vm1, %v394_v15, %v267_v16  ;;  %s296_s23 = smov 192  ;;  %s305_s28 = smov 3 }
  0x20   :  { %v397_v20 = vld [vmem:[%s736_s0 + $0x3] ss:$16 sm:%s286_s17]   ;;  %v277_v21 = vsel %vm14_vm2, %v395_v17, %v272_v18  ;;  %s434_s29 = smov 32   ;;  %v400_v26 = vld [vmem:[%s736_s0 + $0x2] ss:$16 sm:%s305_s28]   ;;  %s308_s3 = smov 12 }
  0x21   :  { %v289_v22 = vsel %vm6_vm0, %v397_v20, %v396_v19  ;;  %v398_v23 = vld [vmem:[%s736_s0 + $0x3] ss:$16 sm:%s291_s22]   ;;  %278 = vrot.lane.b32.xlu1 %v277_v21, %s434_s29  ;;  %s313_s4 = smov 48  ;;  %s318_s9 = smov 192 }
  0x22   :  { %v399_v24 = vld [vmem:[%s736_s0 + $0x3] ss:$16 sm:%s296_s23]   ;;  %v294_v25 = vsel %vm10_vm1, %v398_v23, %v289_v22  ;;  %v401_v28 = vld [vmem:[%s736_s0 + $0x2] ss:$16 sm:%s308_s3]   ;;  %s435_s10 = smov 24   ;;  %s327_s13 = smov 3 }
  0x23   :  { %v299_v27 = vsel %vm14_vm2, %v399_v24, %v294_v25  ;;  %v402_v29 = vld [vmem:[%s736_s0 + $0x2] ss:$16 sm:%s313_s4]   ;;  %v311_v30 = vsel %vm6_vm0, %v401_v28, %v400_v26  ;;  %s330_s14 = smov 12  ;;  %v404_v33 = vld [vmem:[%s736_s0 + $0x1] ss:$16 sm:%s327_s13]   ;;  %s335_s19 = smov 48 }
  0x24   :  { %300 = vrot.lane.b32.xlu0 %v299_v27, %s435_s10  ;;  %v403_v31 = vld [vmem:[%s736_s0 + $0x2] ss:$16 sm:%s318_s9]   ;;  %v316_v32 = vsel %vm10_vm1, %v402_v29, %v311_v30  ;;  %s340_s20 = smov 192  ;;  %s2_s25 = smov 3 }
  0x25   :  { %v405_v34 = vld [vmem:[%s736_s0 + $0x1] ss:$16 sm:%s330_s14]   ;;  %v321_v35 = vsel %vm14_vm2, %v403_v31, %v316_v32  ;;  %s436_s26 = smov 16   ;;  %s4_s27 = smov 12  ;;  %v3_v40 = vld [vmem:[%s736_s0] ss:$16 sm:%s2_s25]  }
  0x26   :  { %v333_v36 = vsel %vm6_vm0, %v405_v34, %v404_v33  ;;  %v406_v37 = vld [vmem:[%s736_s0 + $0x1] ss:$16 sm:%s335_s19]   ;;  %322 = vrot.lane.b32.xlu1 %v321_v35, %s436_s26  ;;  %s8_s28 = smov 48  ;;  %s12_s2 = smov 192 }
  0x27   :  { %v407_v38 = vld [vmem:[%s736_s0 + $0x1] ss:$16 sm:%s340_s20]   ;;  %v338_v39 = vsel %vm10_vm1, %v406_v37, %v333_v36  ;;  %v5_v42 = vld [vmem:[%s736_s0] ss:$16 sm:%s4_s27]   ;;  %s437_s7 = smov 8  }
  0x28   :  { %v343_v41 = vsel %vm14_vm2, %v407_v38, %v338_v39  ;;  %v9_v43 = vld [vmem:[%s736_s0] ss:$16 sm:%s8_s28]   ;;  %v7_v44 = vsel %vm6_vm0, %v5_v42, %v3_v40  ;;  %vm302_vm0 = vcmask 261312  }
  0x29   :  { %344 = vrot.lane.b32.xlu0 %v343_v41, %s437_s7  ;;  %v13_v45 = vld [vmem:[%s736_s0] ss:$16 sm:%s12_s2]   ;;  %v11_v46 = vsel %vm10_vm1, %v9_v43, %v7_v44  ;;  %vm324_vm1 = vcmask 195712  }
  0x2a   :  { %v15_v47 = vsel %vm14_vm2, %v13_v45, %v11_v46  ;;  %vm346_vm2 = vcmask 130112  }
  0x2b   :  { %17 = vst.msk [vmem:[%s737_s1] sm:$0xff] %vm16_vm3, %v15_v47  }
  0x78   :  { %v37_v48 = vpop.permute.xlu0 %36  }
  0x79   :  { %39 = vst.msk [vmem:[%s737_s1] sm:$0xff] %vm38_vm4, %v37_v48  }
  0x7a   :  { %v81_v49 = vpop.permute.xlu1 %80  }
  0x7d   :  { %v59_v50 = vpop.permute.xlu0 %58  }
  0x7e   :  { %61 = vst.msk [vmem:[%s737_s1] sm:$0xff] %vm60_vm5, %v59_v50  }
  0x7f   :  { %83 = vst.msk [vmem:[%s737_s1] sm:$0xff] %vm82_vm6, %v81_v49   ;;  %v103_v51 = vpop.permute.xlu1 %102  }
  0x80   :  { %105 = vst.msk [vmem:[%s737_s1] sm:$0xff] %vm104_vm7, %v103_v51  }
  0x82   :  { %v125_v52 = vpop.permute.xlu0 %124  }
  0x83   :  { %127 = vst.msk [vmem:[%s737_s1] sm:$0xff] %vm126_vm8, %v125_v52  }
  0x84   :  { %v147_v53 = vpop.permute.xlu1 %146  }
  0x85   :  { %149 = vst.msk [vmem:[%s737_s1] sm:$0xff] %vm148_vm9, %v147_v53  }
  0x87   :  { %v169_v54 = vpop.permute.xlu0 %168  }
  0x88   :  { %171 = vst.msk [vmem:[%s737_s1] sm:$0xff] %vm170_vm10, %v169_v54  }
  0x89   :  { %v191_v55 = vpop.permute.xlu1 %190  }
  0x8a   :  { %193 = vst.msk [vmem:[%s737_s1] sm:$0xff] %vm192_vm11, %v191_v55  }
  0x8c   :  { %v213_v56 = vpop.permute.xlu0 %212  }
  0x8d   :  { %215 = vst.msk [vmem:[%s737_s1] sm:$0xff] %vm214_vm12, %v213_v56  }
  0x8e   :  { %v235_v57 = vpop.permute.xlu1 %234  }
  0x8f   :  { %237 = vst.msk [vmem:[%s737_s1] sm:$0xff] %vm236_vm13, %v235_v57  }
  0x91   :  { %v257_v58 = vpop.permute.xlu0 %256  }
  0x92   :  { %259 = vst.msk [vmem:[%s737_s1] sm:$0xff] %vm258_vm14, %v257_v58  }
  0x93   :  { %v279_v59 = vpop.permute.xlu1 %278  }
  0x94   :  { %281 = vst.msk [vmem:[%s737_s1] sm:$0xff] %vm280_vm15, %v279_v59  }
  0x96   :  { %v301_v60 = vpop.permute.xlu0 %300  }
  0x97   :  { %303 = vst.msk [vmem:[%s737_s1] sm:$0xff] %vm302_vm0, %v301_v60  }
  0x98   :  { %v323_v61 = vpop.permute.xlu1 %322  }
  0x99   :  { %325 = vst.msk [vmem:[%s737_s1] sm:$0xff] %vm324_vm1, %v323_v61  }
  0x9b   :  { %v345_v62 = vpop.permute.xlu0 %344  }
  0x9c   :  { %347 = vst.msk [vmem:[%s737_s1] sm:$0xff] %vm346_vm2, %v345_v62  }

// kernel: encoder_forward.7
= control target key start
LH: loop header
LB: loop body
LE: loop exit
PB: predicated region body
PF: predicated region fallthrough
CT: control target
= control target key end

     0   :  { %s1678_s15 = smov 0   ;;  %s1942_s0 = inlined_call_operand.vmem [shape: bf16[2,22,48], index: 0, kind: input, shape index: {}]   ;;  %s1943_s1 = inlined_call_operand.vmem [shape: bf16[7,48,128], index: 1, kind: input, shape index: {}]   ;;  %s1944_s2 = inlined_call_operand.vmem [shape: f32[128,8], index: 2, kind: input, shape index: {}]   ;;  %s1945_s3 = inlined_call_operand.vmem [shape: f32[8,128], index: 3, kind: input, shape index: {}]   ;;  %s1946_s4 = inlined_call_operand.vmem [shape: bf16[2,16,128], index: 4, kind: output, shape index: {}]  }
   0x1 LB: > { %s1205_s16 = sadd.s32 4294967295, %s1649_s15   ;;  %p1209_p0 = scmp.ge.s32.totalorder %s1649_s15, 1  ;;  %s1649_s15 = sphi %s1678_s15, %s14_s15  }
   0x2   : > { %p162_p1 = scmp.lt.s32.totalorder %s1649_s15, 3 }
   0x4   : > { %p163_p2 = pnand %p1209_p0, %p162_p1 }
   0x5   : > { %v1613_v0 = vld [vmem:[%s1943_s1] sm:$0xff] (!%p163_p2)   ;;  %v1651_v1 = vmov (!%p163_p2), 0.0   ;;  %v1614_v2 = vld [vmem:[%s1943_s1 + $0x8] sm:$0xff] (!%p163_p2)   ;;  %vm1652_vm0 = vmmov (!%p163_p2), 0   ;;  %p188_p3 = scmp.lt.s32.totalorder (!%p163_p2), %s1205_s16, 1  ;;  %v1615_v3 = vld [vmem:[%s1943_s1 + $0x10] sm:$0xff] (!%p163_p2)  }
   0x6   : > { %166 = sbr.rel (%p163_p2) target bundleno = 798 (0x31e), region = 36  ;;  %1376 = vmatprep.subr.bf16.mxu0 (!%p163_p2), %v1651_v1  ;;  %1366 = vmatprep.subr.bf16.mxu1 (!%p163_p2), %v1651_v1  ;;  %vm254_vm1 = vcmask (!%p163_p2), 392192   ;;  %v1617_v7 = vld [vmem:[%s1943_s1 + $0x30] sm:$0xff] (!%p163_p2)   ;;  %v1618_v11 = vld [vmem:[%s1943_s1 + $0x38] sm:$0xff] (!%p163_p2)   ;;  %v1619_v13 = vld [vmem:[%s1943_s1 + $0x40] sm:$0xff] (!%p163_p2)   ;;  %vm371_vm2 = vcmask (!%p163_p2), 1046528  }
   0x7   : > { %1377 = vmatpush3.bf16.msra.mxu0 (!%p163_p2), %v1613_v0  ;;  %1382 = vmatprep.mubr.msk.bf16.mxu0 (!%p163_p2), %vm1652_vm0, %v1651_v1  ;;  %v1633_v18 = vld [vmem:[%s1943_s1 + $0x18] sm:$0xff] (!%p163_p2)   ;;  %v1622_v22 = vld [vmem:[%s1943_s1 + $0x48] sm:$0xff] (!%p163_p2)   ;;  %v1636_v23 = vld [vmem:[%s1943_s1 + $0x20] sm:$0xff] (!%p163_p2)   ;;  %vm223_vm3 = vsmask.f32 (!%p163_p2), 7424  ;;  %vm543_vm5 = vcmask (!%p163_p2), 1045504  }
   0x8   : > { %1378 = vmatprep.subr.bf16.mxu0 (!%p163_p2), %v1651_v1  ;;  %1372 = vmatprep.mubr.msk.bf16.mxu1 (!%p163_p2), %vm1652_vm0, %v1651_v1  ;;  %v1623_v24 = vld [vmem:[%s1943_s1 + $0x50] sm:$0xff] (!%p163_p2)   ;;  %v1638_v31 = vld [vmem:[%s1943_s1 + $0x28] sm:$0xff] (!%p163_p2)   ;;  %v783_v34 = vld [vmem:[%s1944_s2] sm:$0xff] (!%p163_p2)  ;;  %vm450_vm4 = vsmask.f32 (!%p163_p2), 6400  ;;  %vm715_vm7 = vcmask (!%p163_p2), 1044480  }
   0x9   : > { %1367 = vmatpush3.bf16.msra.mxu1 (!%p163_p2), %v1633_v18  ;;  %v784_v35 = vld [vmem:[%s1944_s2 + $0x8] sm:$0xff] (!%p163_p2)  ;;  %v785_v38 = vld [vmem:[%s1944_s2 + $0x10] sm:$0xff] (!%p163_p2)  ;;  %v786_v39 = vld [vmem:[%s1944_s2 + $0x18] sm:$0xff] (!%p163_p2)  ;;  %vm622_vm6 = vsmask.f32 (!%p163_p2), 5376  ;;  %vm875_vm8 = vcmask (!%p163_p2), 64512  }
   0xa   : > { %1368 = vmatprep.subr.bf16.mxu1 (!%p163_p2), %v1651_v1  ;;  %v1767_v37 = vpack.c.bf16 (!%p163_p2), %v784_v35, %v783_v34  ;;  %v1624_v40 = vld [vmem:[%s1943_s1 + $0x58] sm:$0xff] (!%p163_p2)   ;;  %v1780_v45 = vpack.c.bf16 (!%p163_p2), %v786_v39, %v785_v38  ;;  %v787_v46 = vld [vmem:[%s1944_s2 + $0x20] sm:$0xff] (!%p163_p2)  ;;  %v788_v47 = vld [vmem:[%s1944_s2 + $0x28] sm:$0xff] (!%p163_p2) }
   0xb   : > { %1379 = vmatpush3.bf16.msra.mxu0 (!%p163_p2), %v1614_v2  ;;  %v1626_v49 = vld [vmem:[%s1943_s1 + $0x60] sm:$0xff] (!%p163_p2)   ;;  %v1796_v51 = vpack.c.bf16 (!%p163_p2), %v788_v47, %v787_v46  ;;  %v789_v53 = vld [vmem:[%s1944_s2 + $0x30] sm:$0xff] (!%p163_p2)  ;;  %v790_v54 = vld [vmem:[%s1944_s2 + $0x38] sm:$0xff] (!%p163_p2) }
   0xc   : > { %1380 = vmatprep.subr.bf16.mxu0 (!%p163_p2), %v1651_v1  ;;  %v1627_v55 = vld [vmem:[%s1943_s1 + $0x68] sm:$0xff] (!%p163_p2)   ;;  %v1814_v56 = vpack.c.bf16 (!%p163_p2), %v790_v54, %v789_v53  ;;  %v791_v59 = vld [vmem:[%s1944_s2 + $0x40] sm:$0xff] (!%p163_p2)  ;;  %v1628_v61 = vld [vmem:[%s1943_s1 + $0x70] sm:$0xff] (!%p163_p2)  }
   0xd   : > { %s1948_s16 = smov (!%p188_p3, %s1205_s16), 1  ;;  %1369 = vmatpush3.bf16.msra.mxu1 %v1636_v23  ;;  %v792_v60 = vld [vmem:[%s1944_s2 + $0x48] sm:$0xff]  ;;  %v793_v2 = vld [vmem:[%s1944_s2 + $0x50] sm:$0xff] }
   0xe   : > { %s1602_s23 = smul.u32 12, %s1948_s16  ;;  %1370 = vmatprep.subr.bf16.mxu1 %v1651_v1  ;;  %v1830_v63 = vpack.c.bf16 %v792_v60, %v791_v59  ;;  %v1635_v23 = vld [vmem:[%s1943_s1 + $0x90] sm:$0xff]   ;;  %s1290_s27 = sshll.u32 %s1948_s16, 3 }
   0xf   : > { %1381 = vmatpush3.bf16.msra.mxu0 %v1615_v3  ;;  %v794_v3 = vld [vmem:[%s1944_s2 + $0x58] sm:$0xff]  ;;  %s197_s30 = scalar_lea.vmem %s1946_s4, %s1290_s27 }
  0x10   : > { %s1709_s26 = scalar_lea.vmem %s1942_s0, %s1602_s23  ;;  %1386 = vmatprep.subr.bf16.mxu0 %v1651_v1 }
  0x11   : > { %v199_v4 = vld [vmem:[%s1709_s26] sm:$0xf]  ;;  %v1713_v5 = vld [vmem:[%s1709_s26 + $0x4] sm:$0xf]  ;;  %1371 = vmatpush3.bf16.msra.mxu1 %v1638_v31  ;;  %v798_v31 = vld [vmem:[%s1944_s2 + $0x78] sm:$0xff] }
  0x12   : > { %v1219_v6 = vcombine.low %v199_v4, %v1713_v5  ;;  %v360_v8 = vld [vmem:[%s1709_s26] sm:$0xe]  ;;  %v1620_v9 = vld [vmem:[%s1709_s26 + $0x8] ss:$0 sps:$4 sm:$0x11]   ;;  %1517 = vmatprep.subr.bf16.mxu1 %v1767_v37  ;;  %v1630_v4 = vld [vmem:[%s1943_s1 + $0x78] sm:$0xff]  }
  0x13   : > { %v1235_v10 = vcombine.low %v360_v8, %v1713_v5  ;;  %v1731_v12 = vld [vmem:[%s1709_s26 + $0x8] ss:$0 sps:$4 sm:$0x33]   ;;  %v373_v15 = vrot.slane %v1620_v9, 1  ;;  %v232_v32 = vshll.u32 %v1620_v9, 16 }
  0x14   : > { %1383 = vmatmul.mubr.msk.bf16.vlgmr.msra.gmra.mrb[0].mxu0 %vm254_vm1, %v1219_v6  ;;  %v460_v19 = vshrl.u32 %v1731_v12, 16  ;;  %v463_v20 = vshll.u32 %v1731_v12, 16  ;;  %v225_v29 = vshrl.u32 %v1219_v6, 16  ;;  %v227_v30 = vshll.u32 %v1219_v6, 16  ;;  %v532_v50 = vld [vmem:[%s1709_s26] sm:$0xc] }
  0x15   : > { %1387 = vmatpush3.bf16.msra.mxu0 %v1617_v7  ;;  %1392 = vmatprep.mubr.msk.bf16.mxu0 %vm1652_vm0, %v1651_v1  ;;  %v372_v14 = vrot.slane %v1235_v10, 1  ;;  %v452_v16 = vshrl.u32 %v1235_v10, 16  ;;  %v455_v17 = vshll.u32 %v1235_v10, 16  ;;  %v234_v36 = vrot.slane %v232_v32, 1 }
  0x16   : > { %1388 = vmatprep.subr.bf16.mxu0 %v1651_v1  ;;  %v462_v27 = vrot.slane %v460_v19, 1  ;;  %v465_v28 = vrot.slane %v463_v20, 2  ;;  %v229_v33 = vrot.slane %v227_v30, 1  ;;  %v1257_v52 = vcombine.low %v532_v50, %v1713_v5  ;;  %v1634_v62 = vld [vmem:[%s1709_s26 + $0x8] ss:$0 sps:$4 sm:$0x77]  }
  0x17   : > { %v374_v21 = vsel %vm371_vm2, %v372_v14, %v373_v15  ;;  %v454_v25 = vrot.slane %v452_v16, 1  ;;  %v457_v26 = vrot.slane %v455_v17, 2  ;;  %v545_v58 = vrot.slane %v1731_v12, 2  ;;  %v796_v12 = vld [vmem:[%s1944_s2 + $0x68] sm:$0xff] }
  0x18   : > { %v466_v42 = vor.u32 %v465_v28, %v462_v27  ;;  %v230_v43 = vor.u32 %v229_v33, %v225_v29  ;;  %v544_v57 = vrot.slane %v1257_v52, 2  ;;  %v624_v6 = vshrl.u32 %v1257_v52, 16  ;;  %v1632_v19 = vld [vmem:[%s1943_s1 + $0x88] sm:$0xff]   ;;  %v1639_v27 = vld [vmem:[%s1943_s1 + $0xa0] sm:$0xff]  }
  0x19   : > { %1389 = vmatpush3.bf16.msra.mxu0 %v1618_v11  ;;  %v458_v41 = vor.u32 %v457_v26, %v454_v25  ;;  %v627_v7 = vshll.u32 %v1257_v52, 16  ;;  %v632_v8 = vshrl.u32 %v1634_v62, 16  ;;  %v635_v9 = vshll.u32 %v1634_v62, 16  ;;  %v795_v11 = vld [vmem:[%s1944_s2 + $0x60] sm:$0xff]  ;;  %v1637_v25 = vld [vmem:[%s1943_s1 + $0x98] sm:$0xff]  }
  0x1a   : > { %1390 = vmatprep.subr.bf16.mxu0 %v1651_v1  ;;  %v235_v44 = vsel %vm223_vm3, %v230_v43, %v234_v36  ;;  %v546_v0 = vsel %vm543_vm5, %v544_v57, %v545_v58  ;;  %v1844_v10 = vpack.c.bf16 %v794_v3, %v793_v2  ;;  %v626_v14 = vrot.slane %v624_v6, 2 }
  0x1b   : > { %v467_v48 = vsel %vm450_vm4, %v458_v41, %v466_v42  ;;  %1373 = vmatmul.mubr.msk.bf16.vlgmr.msra.gmra.mrb[0].mxu1 %vm254_vm1, %v235_v44  ;;  %v629_v15 = vrot.slane %v627_v7, 3  ;;  %v634_v16 = vrot.slane %v632_v8, 2  ;;  %v637_v17 = vrot.slane %v635_v9, 3 }
  0x1c   : > { %1519 = vmatpush3.bf16.msra.mxu1 %v1767_v37  ;;  %v1861_v18 = vpack.c.bf16 %v796_v12, %v795_v11  ;;  %v717_v29 = vrot.slane %v1634_v62, 3 }
  0x1d   : > { %1391 = vmatpush3.bf16.msra.mxu0 %v1619_v13  ;;  %1521 = vmatprep.subr.bf16.mxu1 %v1780_v45  ;;  %v1631_v13 = vld [vmem:[%s1943_s1 + $0x80] sm:$0xff]   ;;  %v630_v20 = vor.u32 %v629_v15, %v626_v14  ;;  %v1126_v14 = vlaneseq }
  0x1e   : > { %1396 = vmatprep.subr.bf16.mxu0 %v1651_v1 }
  0x1f   : > { %v1127_v15 = vshrl.u32 %v1126_v14, 7 }
  0x20   : > { %1393 = vmatmul.mubr.msk.bf16.vlgmr.msra.gmra.mrb[0].mxu0 %vm254_vm1, %v374_v21  ;;  %1523 = vmatpush3.bf16.msra.mxu1 %v1780_v45  ;;  %v638_v21 = vor.u32 %v637_v17, %v634_v16 }
  0x21   : > { %1397 = vmatpush3.bf16.msra.mxu0 %v1622_v22  ;;  %1402 = vmatprep.mubr.msk.bf16.mxu0 %vm1652_vm0, %v1651_v1  ;;  %v1128_v16 = vsub.s32 0, %v1127_v15 }
  0x22   : > { %1398 = vmatprep.subr.bf16.mxu0 %v1651_v1  ;;  %1525 = vmatprep.subr.bf16.mxu1 %v1796_v51  ;;  %v639_v22 = vsel %vm622_vm6, %v630_v20, %v638_v21 }
  0x24   : > { %1527 = vmatpush3.bf16.msra.mxu1 %v1796_v51 }
  0x25   : > { %1399 = vmatpush3.bf16.msra.mxu0 %v1623_v24  ;;  %1529 = vmatprep.subr.bf16.mxu1 %v1814_v56  ;;  %v704_v24 = vld [vmem:[%s1709_s26] sm:$0x8] }
  0x26   : > { %1400 = vmatprep.subr.bf16.mxu0 %v1651_v1  ;;  %v1279_v26 = vcombine.low %v704_v24, %v1713_v5  ;;  %v797_v5 = vld [vmem:[%s1944_s2 + $0x70] sm:$0xff] }
  0x27   : > { %v1544_v32 = vpack.c.bf16 %v798_v31, %v797_v5 }
  0x28   : > { %1531 = vmatpush3.bf16.msra.mxu1 %v1814_v56  ;;  %v716_v28 = vrot.slane %v1279_v26, 3 }
  0x29   : > { %1401 = vmatpush3.bf16.msra.mxu0 %v1624_v40  ;;  %1533 = vmatprep.subr.bf16.mxu1 %v1830_v63 }
  0x2a   : > { %1406 = vmatprep.subr.bf16.mxu0 %v1651_v1  ;;  %v718_v30 = vsel %vm715_vm7, %v716_v28, %v717_v29 }
  0x2c   : > { %1403 = vmatmul.mubr.msk.bf16.vlgmr.msra.gmra.mrb[0].mxu0 %vm254_vm1, %v467_v48  ;;  %1535 = vmatpush3.bf16.msra.mxu1 %v1830_v63 }
  0x2d   : > { %1407 = vmatpush3.bf16.msra.mxu0 %v1626_v49  ;;  %1412 = vmatprep.mubr.msk.bf16.mxu0 %vm1652_vm0, %v1651_v1 }
  0x2e   : > { %1408 = vmatprep.subr.bf16.mxu0 %v1651_v1  ;;  %1537 = vmatprep.subr.bf16.mxu1 %v1844_v10 }
  0x30   : > { %1539 = vmatpush3.bf16.msra.mxu1 %v1844_v10 }
  0x31   : > { %1409 = vmatpush3.bf16.msra.mxu0 %v1627_v55  ;;  %1541 = vmatprep.subr.bf16.mxu1 %v1861_v18 }
  0x32   : > { %1410 = vmatprep.subr.bf16.mxu0 %v1651_v1 }
  0x34   : > { %1543 = vmatpush3.bf16.msra.mxu1 %v1861_v18 }
  0x35   : > { %1411 = vmatpush3.bf16.msra.mxu0 %v1628_v61  ;;  %1545 = vmatprep.subr.bf16.mxu1 %v1544_v32 }
  0x36   : > { %1416 = vmatprep.subr.bf16.mxu0 %v1651_v1 }
  0x38   : > { %1413 = vmatmul.mubr.msk.bf16.vlgmr.msra.gmra.mrb[0].mxu0 %vm254_vm1, %v546_v0  ;;  %1547 = vmatpush3.bf16.msra.mxu1 %v1544_v32 }
  0x39   : > { %1417 = vmatpush3.bf16.msra.mxu0 %v1630_v4  ;;  %1422 = vmatprep.mubr.msk.bf16.mxu0 %vm1652_vm0, %v1651_v1 }
  0x3a   : > { %1418 = vmatprep.subr.bf16.mxu0 %v1651_v1  ;;  %1549 = vmatprep.subr.bf16.mxu1 %v1767_v37 }
  0x3d   : > { %1419 = vmatpush3.bf16.msra.mxu0 %v1631_v13 }
  0x3e   : > { %1420 = vmatprep.subr.bf16.mxu0 %v1651_v1 }
  0x41   : > { %1421 = vmatpush3.bf16.msra.mxu0 %v1632_v19 }
  0x42   : > { %1426 = vmatprep.subr.bf16.mxu0 %v1651_v1 }
  0x44   : > { %1423 = vmatmul.mubr.msk.bf16.vlgmr.msra.gmra.mrb[0].mxu0 %vm254_vm1, %v639_v22 }
  0x45   : > { %1427 = vmatpush3.bf16.msra.mxu0 %v1635_v23  ;;  %1432 = vmatprep.mubr.msk.bf16.mxu0 %vm1652_vm0, %v1651_v1 }
  0x46   : > { %1428 = vmatprep.subr.bf16.mxu0 %v1651_v1 }
  0x49   : > { %1429 = vmatpush3.bf16.msra.mxu0 %v1637_v25 }
  0x4a   : > { %1430 = vmatprep.subr.bf16.mxu0 %v1651_v1 }
  0x4d   : > { %1431 = vmatpush3.bf16.msra.mxu0 %v1639_v27 }
  0x4e   : > { %1506 = vmatprep.subr.mxu0 %v1651_v1 }
  0x50   : > { %1433 = vmatmul.mubr.msk.bf16.vlgmr.msra.gmra.mrb[0].mxu0 %vm254_vm1, %v718_v30 }
  0x51   : > { %1508 = vmatprep.mubr.msk.f32.mxu0 %vm1652_vm0, %v1651_v1 }
  0xee   : > { %v292_v33 = vpop.f32.mrb[0].mxu1 }
  0xef   : > { %v1374_v34 = vpop.f32.mrb[1].mxu1 }
  0xf0   : > { %v295_v35 = vpop.f32.mrb[2].mxu1 }
  0xf1   : > { %v1375_v36 = vpop.f32.mrb[3].mxu1 }
 0x123   : > { %v774_v38 = vpop.f32.mrb[0].mxu0 }
 0x124   : > { %v1898_v39 = vadd.f32 %v774_v38, %v292_v33  ;;  %v1434_v40 = vpop.f32.mrb[1].mxu0 }
 0x125   : > { %v777_v41 = vpop.f32.mrb[2].mxu0 }
 0x126   : > { %v1900_v42 = vadd.f32 %v777_v41, %v295_v35  ;;  %v1435_v43 = vpop.f32.mrb[3].mxu0  ;;  %1468 = vmatprep.mubr.f32.mxu1 %v1898_v39  ;;  %v885_v44 = vmul.f32 %v1898_v39, %v1898_v39 }
 0x128   : > { %1469 = vmatmul.mubr.f32.vlgmr.msra.gmra.mrb[4].mxu1 %v1900_v42 }
 0x129   : > { %1551 = vmatpush3.bf16.msra.mxu1 %v1767_v37  ;;  %1503 = vmatprep.mubr.f32.mxu1 %v885_v44  ;;  %v886_v37 = vmul.f32 %v1900_v42, %v1900_v42 }
 0x12a   : > { %1553 = vmatprep.subr.bf16.mxu1 %v1780_v45 }
 0x12d   : > { %1555 = vmatpush3.bf16.msra.mxu1 %v1780_v45  ;;  %v799_v45 = vld [vmem:[%s1945_s3] sm:$0xff] }
 0x12e   : > { %1557 = vmatprep.subr.bf16.mxu1 %v1796_v51  ;;  %1507 = vmatpush3.msra.mxu0 %v799_v45 }
 0x131   : > { %1559 = vmatpush3.bf16.msra.mxu1 %v1796_v51 }
 0x132   : > { %1561 = vmatprep.subr.bf16.mxu1 %v1814_v56 }
 0x135   : > { %1563 = vmatpush3.bf16.msra.mxu1 %v1814_v56 }
 0x136   : > { %1565 = vmatprep.subr.bf16.mxu1 %v1830_v63 }
 0x139   : > { %1567 = vmatpush3.bf16.msra.mxu1 %v1830_v63 }
 0x13a   : > { %1569 = vmatprep.subr.bf16.mxu1 %v1844_v10 }
 0x13d   : > { %1571 = vmatpush3.bf16.msra.mxu1 %v1844_v10 }
 0x13e   : > { %1573 = vmatprep.subr.bf16.mxu1 %v1861_v18 }
 0x141   : > { %1575 = vmatpush3.bf16.msra.mxu1 %v1861_v18 }
 0x142   : > { %1577 = vmatprep.subr.bf16.mxu1 %v1544_v32 }
 0x145   : > { %1579 = vmatpush3.bf16.msra.mxu1 %v1544_v32 }
 0x146   : > { %1511 = vmatprep.subr.mxu1 %v1651_v1 }
 0x148   : > { %1504 = vmatmul.mubr.f32.vlgmr.msra.gmra.mrb[6].mxu1 %v886_v37 }
 0x149   : > { %1513 = vmatprep.mubr.msk.f32.mxu1 %vm1652_vm0, %v1651_v1  ;;  %1512 = vmatpush3.msra.mxu1 %v799_v45 }
 0x1fb   : > { %v1470_v46 = vpop.f32.mrb[4].mxu1 }
 0x1fc   : > { %v877_v47 = vsel %vm875_vm8, %v1470_v46, 0.0  ;;  %v866_v48 = vpop.f32.mrb[5].mxu1 }
 0x1fd   : > { %v876_v49 = vsel %vm875_vm8, %v866_v48, 0.0 }
 0x1fe   : > { %v878_v50 = vadd.f32 %v877_v47, %v876_v49 }
 0x200   : > { %v879_v51 = vrot.slane %v878_v50, 4 }
 0x202   : > { %v880_v52 = vadd.f32 %v879_v51, %v878_v50 }
 0x204   : > { %v881_v53 = vrot.slane %v880_v52, 2 }
 0x206   : > { %v882_v55 = vadd.f32 %v881_v53, %v880_v52 }
 0x208   : > { %v883_v59 = vrot.slane %v882_v55, 1 }
 0x20a   : > { %v884_v62 = vadd.f32 %v883_v59, %v882_v55 }
 0x20c   : > { %v971_v2 = vmul.f32 0.00390625, %v884_v62 }
 0x20e   : > { %v973_v6 = vmul.f32 %v971_v2, %v971_v2  ;;  %v978_v11 = vsub.f32 0.0, %v971_v2 }
 0x21b   : > { %v1505_v54 = vpop.f32.mrb[6].mxu1 }
 0x21c   : > { %v963_v1 = vsel %vm875_vm8, %v1505_v54, 0.0  ;;  %v953_v56 = vpop.f32.mrb[7].mxu1 }
 0x21d   : > { %v962_v57 = vsel %vm875_vm8, %v953_v56, 0.0 }
 0x21e   : > { %v964_v58 = vadd.f32 %v963_v1, %v962_v57 }
 0x220   : > { %v965_v60 = vrot.slane %v964_v58, 4 }
 0x222   : > { %v966_v61 = vadd.f32 %v965_v60, %v964_v58 }
 0x224   : > { %v967_v63 = vrot.slane %v966_v61, 2 }
 0x226   : > { %v968_v0 = vadd.f32 %v967_v63, %v966_v61 }
 0x228   : > { %v969_v3 = vrot.slane %v968_v0, 1 }
 0x22a   : > { %v970_v4 = vadd.f32 %v969_v3, %v968_v0 }
 0x22c   : > { %v972_v7 = vmul.f32 0.00390625, %v970_v4 }
 0x22e   : > { %v974_v8 = vsub.f32 %v972_v7, %v973_v6 }
 0x230   : > { %v975_v9 = vmax.f32 %v974_v8, 0.0 }
 0x232   : > { %v976_v10 = vadd.f32 1e-05, %v975_v9 }
 0x234   : > { %1641 = vrsqrt.f32 %v976_v10 }
 0x23e   : > { %v1642_v12 = vpop.eup %1641 }
 0x23f   : > { %1509 = vmatmul.mubr.msk.f32.vlgmr.msra.gmra.mrb[4].mxu0 %vm875_vm8, %v1642_v12  ;;  %v979_v13 = vmul.f32 %v1642_v12, %v978_v11 }
 0x241   : > { %1514 = vmatmul.mubr.msk.f32.vlgmr.msra.gmra.mrb[8].mxu1 %vm875_vm8, %v979_v13 }
 0x312   : > { %v1049_v17 = vpop.f32.mrb[4].mxu0 }
 0x313   : > { %v1129_v18 = vrot.slane %v1049_v17, %v1128_v16  ;;  %v1510_v19 = vpop.f32.mrb[5].mxu0 }
 0x314   : > { %v1122_v20 = vpop.f32.mrb[8].mxu1 }
 0x315   : > { %v1130_v21 = vmul.f32 %v1898_v39, %v1129_v18  ;;  %v1131_v22 = vmul.f32 %v1900_v42, %v1129_v18  ;;  %v1135_v23 = vrot.slane %v1122_v20, %v1128_v16  ;;  %v1515_v24 = vpop.f32.mrb[9].mxu1 }
 0x317   : > { %v1136_v25 = vadd.f32 %v1135_v23, %v1130_v21  ;;  %v1137_v26 = vadd.f32 %v1135_v23, %v1131_v22 }
 0x319   : > { %v1138_v27 = vmax.f32 %v1136_v25, 0.0  ;;  %v1139_v28 = vmax.f32 %v1137_v26, 0.0 }
 0x31b   : > { %v1296_v29 = vpack.c.bf16 %v1139_v28, %v1138_v27 }
 0x31d   : > { %1297 = vst [vmem:[%s197_s30] sm:$0xff] %v1296_v29  }
 0x31e PF: > { %s14_s15 = sadd.s32 1, %s1649_s15  }
 0x31f   : > { %p11_p4 = scmp.ge.s32.totalorder %s14_s15, 4  }
 0x321   :  { %13 = sbr.rel (!%p11_p4) target bundleno = 1 (0x1), region = 72 }

// kernel: tile.49
= control target key start
LH: loop header
LB: loop body
LE: loop exit
PB: predicated region body
PF: predicated region fallthrough
CT: control target
= control target key end

     0   :  { %vm4_vm0 = vcmask 1047556   ;;  %s209_s14 = smov 96   ;;  %s210_s19 = smov 112   ;;  %vm6_vm1 = vcmask 130048   ;;  %vm25_vm2 = vcmask 1048448   ;;  %vm46_vm3 = vcmask 917248   ;;  %s388_s0 = inlined_call_operand.vmem [shape: f32[8,16,16], index: 0, kind: input, shape index: {}]   ;;  %s389_s1 = inlined_call_operand.vmem [shape: f32[128,16], index: 1, kind: output, shape index: {}]  }
   0x1   :  { %v172_v0 = vld [vmem:[%s388_s0 + $0x6] ss:$8 sm:$0xf]   ;;  %v167_v3 = vld [vmem:[%s388_s0 + $0x7] ss:$8 sm:$0xf]  }
   0x2   :  { %v173_v1 = vld [vmem:[%s388_s0 + $0x6] ss:$8 sm:$0xf0]   ;;  %v168_v4 = vld [vmem:[%s388_s0 + $0x7] ss:$8 sm:$0xf0]  }
   0x3   :  { %v43_v2 = vsel %vm4_vm0, %v173_v1, %v172_v0  ;;  %v22_v5 = vsel %vm4_vm0, %v168_v4, %v167_v3  ;;  %v174_v6 = vld [vmem:[%s388_s0 + $0x46] ss:$8 sm:$0xf]   ;;  %v169_v9 = vld [vmem:[%s388_s0 + $0x47] ss:$8 sm:$0xf]  }
   0x4   :  { %44 = vrot.lane.b32.xlu1 %v43_v2, %s209_s14  ;;  %v175_v7 = vld [vmem:[%s388_s0 + $0x46] ss:$8 sm:$0xf0]   ;;  %23 = vrot.lane.b32.xlu0 %v22_v5, %s210_s19  ;;  %v170_v10 = vld [vmem:[%s388_s0 + $0x47] ss:$8 sm:$0xf0]  }
   0x5   :  { %v53_v8 = vsel %vm4_vm0, %v175_v7, %v174_v6  ;;  %v32_v11 = vsel %vm4_vm0, %v170_v10, %v169_v9  ;;  %v179_v12 = vld [vmem:[%s388_s0 + $0x45] ss:$8 sm:$0xf]   ;;  %v184_v18 = vld [vmem:[%s388_s0 + $0x44] ss:$8 sm:$0xf]  }
   0x6   :  { %v180_v13 = vld [vmem:[%s388_s0 + $0x45] ss:$8 sm:$0xf0]   ;;  %v185_v19 = vld [vmem:[%s388_s0 + $0x44] ss:$8 sm:$0xf0]  }
   0x7   :  { %v177_v14 = vld [vmem:[%s388_s0 + $0x5] ss:$8 sm:$0xf]   ;;  %v74_v16 = vsel %vm4_vm0, %v180_v13, %v179_v12  ;;  %v182_v20 = vld [vmem:[%s388_s0 + $0x4] ss:$8 sm:$0xf]   ;;  %v95_v22 = vsel %vm4_vm0, %v185_v19, %v184_v18 }
   0x8   :  { %54 = vrot.lane.b32.xlu1 %v53_v8, %s209_s14  ;;  %v178_v15 = vld [vmem:[%s388_s0 + $0x5] ss:$8 sm:$0xf0]   ;;  %33 = vrot.lane.b32.xlu0 %v32_v11, %s210_s19  ;;  %v183_v21 = vld [vmem:[%s388_s0 + $0x4] ss:$8 sm:$0xf0]  }
   0x9   :  { %v64_v17 = vsel %vm4_vm0, %v178_v15, %v177_v14  ;;  %s211_s11 = smov 80   ;;  %v85_v23 = vsel %vm4_vm0, %v183_v21, %v182_v20  ;;  %v189_v24 = vld [vmem:[%s388_s0 + $0x43] ss:$8 sm:$0xf]   ;;  %s212_s20 = smov 64   ;;  %vm67_vm4 = vcmask 786048  }
   0xa   :  { %v190_v25 = vld [vmem:[%s388_s0 + $0x43] ss:$8 sm:$0xf0]   ;;  %v194_v28 = vld [vmem:[%s388_s0 + $0x42] ss:$8 sm:$0xf]  }
   0xb   :  { %v187_v26 = vld [vmem:[%s388_s0 + $0x3] ss:$8 sm:$0xf]   ;;  %v195_v29 = vld [vmem:[%s388_s0 + $0x42] ss:$8 sm:$0xf0]   ;;  %v116_v30 = vsel %vm4_vm0, %v190_v25, %v189_v24 }
   0xc   :  { %75 = vrot.lane.b32.xlu1 %v74_v16, %s211_s11  ;;  %65 = vrot.lane.b32.xlu0 %v64_v17, %s211_s11  ;;  %v188_v27 = vld [vmem:[%s388_s0 + $0x3] ss:$8 sm:$0xf0]   ;;  %v192_v31 = vld [vmem:[%s388_s0 + $0x2] ss:$8 sm:$0xf]   ;;  %v137_v40 = vsel %vm4_vm0, %v195_v29, %v194_v28 }
   0xd   :  { %v2_v32 = vld [vmem:[%s388_s0] ss:$8 sm:$0xf]   ;;  %v106_v33 = vsel %vm4_vm0, %v188_v27, %v187_v26  ;;  %v193_v36 = vld [vmem:[%s388_s0 + $0x2] ss:$8 sm:$0xf0]  }
   0xe   :  { %v3_v34 = vld [vmem:[%s388_s0] ss:$8 sm:$0xf0]   ;;  %s213_s8 = smov 48   ;;  %v127_v41 = vsel %vm4_vm0, %v193_v36, %v192_v31  ;;  %s215_s21 = smov 16   ;;  %vm88_vm5 = vcmask 654848  }
   0xf   :  { %v164_v35 = vld [vmem:[%s388_s0 + $0x40] ss:$8 sm:$0xf]   ;;  %v5_v37 = vsel %vm4_vm0, %v3_v34, %v2_v32  ;;  %v199_v42 = vld [vmem:[%s388_s0 + $0x41] ss:$8 sm:$0xf]  }
  0x10   :  { %96 = vrot.lane.b32.xlu1 %v95_v22, %s212_s20  ;;  %86 = vrot.lane.b32.xlu0 %v85_v23, %s212_s20  ;;  %v165_v38 = vld [vmem:[%s388_s0 + $0x40] ss:$8 sm:$0xf0]   ;;  %7 = vst.msk [vmem:[%s389_s1] sm:$0xff] %vm6_vm1, %v5_v37   ;;  %vm109_vm6 = vcmask 523648   ;;  %vm130_vm7 = vcmask 392448  }
  0x11   :  { %v13_v39 = vsel %vm4_vm0, %v165_v38, %v164_v35  ;;  %v200_v43 = vld [vmem:[%s388_s0 + $0x41] ss:$8 sm:$0xf0]   ;;  %vm151_vm8 = vcmask 261248  }
  0x12   :  { %166 = vst.msk [vmem:[%s389_s1 + $0x8] sm:$0xff] %vm6_vm1, %v13_v39   ;;  %v197_v44 = vld [vmem:[%s388_s0 + $0x1] ss:$8 sm:$0xf]   ;;  %v158_v46 = vsel %vm4_vm0, %v200_v43, %v199_v42 }
  0x13   :  { %v198_v45 = vld [vmem:[%s388_s0 + $0x1] ss:$8 sm:$0xf0]   ;;  %s214_s0 = smov 32  }
  0x14   :  { %117 = vrot.lane.b32.xlu1 %v116_v30, %s213_s8  ;;  %107 = vrot.lane.b32.xlu0 %v106_v33, %s213_s8  ;;  %v148_v47 = vsel %vm4_vm0, %v198_v45, %v197_v44 }
  0x18   :  { %138 = vrot.lane.b32.xlu1 %v137_v40, %s214_s0  ;;  %128 = vrot.lane.b32.xlu0 %v127_v41, %s214_s0 }
  0x1c   :  { %159 = vrot.lane.b32.xlu1 %v158_v46, %s215_s21  ;;  %149 = vrot.lane.b32.xlu0 %v148_v47, %s215_s21 }
  0x76   :  { %v45_v48 = vpop.permute.xlu1 %44   ;;  %v24_v49 = vpop.permute.xlu0 %23  }
  0x77   :  { %26 = vst.msk [vmem:[%s389_s1] sm:$0xff] %vm25_vm2, %v24_v49  }
  0x78   :  { %47 = vst.msk [vmem:[%s389_s1] sm:$0xff] %vm46_vm3, %v45_v48  }
  0x7a   :  { %v55_v50 = vpop.permute.xlu1 %54   ;;  %v34_v51 = vpop.permute.xlu0 %33  }
  0x7b   :  { %171 = vst.msk [vmem:[%s389_s1 + $0x8] sm:$0xff] %vm25_vm2, %v34_v51  }
  0x7c   :  { %176 = vst.msk [vmem:[%s389_s1 + $0x8] sm:$0xff] %vm46_vm3, %v55_v50  }
  0x7e   :  { %v76_v52 = vpop.permute.xlu1 %75   ;;  %v66_v53 = vpop.permute.xlu0 %65  }
  0x7f   :  { %181 = vst.msk [vmem:[%s389_s1 + $0x8] sm:$0xff] %vm67_vm4, %v76_v52   ;;  %68 = vst.msk [vmem:[%s389_s1] sm:$0xff] %vm67_vm4, %v66_v53  }
  0x82   :  { %v97_v54 = vpop.permute.xlu1 %96   ;;  %v87_v55 = vpop.permute.xlu0 %86  }
  0x83   :  { %186 = vst.msk [vmem:[%s389_s1 + $0x8] sm:$0xff] %vm88_vm5, %v97_v54   ;;  %89 = vst.msk [vmem:[%s389_s1] sm:$0xff] %vm88_vm5, %v87_v55  }
  0x86   :  { %v118_v56 = vpop.permute.xlu1 %117   ;;  %v108_v57 = vpop.permute.xlu0 %107  }
  0x87   :  { %191 = vst.msk [vmem:[%s389_s1 + $0x8] sm:$0xff] %vm109_vm6, %v118_v56   ;;  %110 = vst.msk [vmem:[%s389_s1] sm:$0xff] %vm109_vm6, %v108_v57  }
  0x8a   :  { %v139_v58 = vpop.permute.xlu1 %138   ;;  %v129_v59 = vpop.permute.xlu0 %128  }
  0x8b   :  { %196 = vst.msk [vmem:[%s389_s1 + $0x8] sm:$0xff] %vm130_vm7, %v139_v58   ;;  %131 = vst.msk [vmem:[%s389_s1] sm:$0xff] %vm130_vm7, %v129_v59  }
  0x8e   :  { %v160_v60 = vpop.permute.xlu1 %159   ;;  %v150_v61 = vpop.permute.xlu0 %149  }
  0x8f   :  { %201 = vst.msk [vmem:[%s389_s1 + $0x8] sm:$0xff] %vm151_vm8, %v160_v60   ;;  %152 = vst.msk [vmem:[%s389_s1] sm:$0xff] %vm151_vm8, %v150_v61  }

// kernel: tile.54
= control target key start
LH: loop header
LB: loop body
LE: loop exit
PB: predicated region body
PF: predicated region fallthrough
CT: control target
= control target key end

     0   :  { %vm162_vm0 = vcmask 1047556   ;;  %s398_s10 = smov 96   ;;  %vm164_vm1 = vcmask 261120   ;;  %s400_s21 = smov 32   ;;  %vm201_vm2 = vcmask 1048320   ;;  %vm244_vm3 = vcmask 785920   ;;  %s579_s0 = inlined_call_operand.vmem [shape: f32[4,32,32], index: 0, kind: input, shape index: {}]   ;;  %s580_s1 = inlined_call_operand.vmem [shape: f32[128,32], index: 1, kind: output, shape index: {}]  }
   0x1   :  { %v376_v0 = vld [vmem:[%s579_s0 + $0x1c] sm:$0xf]  ;;  %v377_v1 = vld [vmem:[%s579_s0 + $0x18] sm:$0xf]  ;;  %v378_v2 = vld [vmem:[%s579_s0 + $0x14] sm:$0xf] }
   0x2   :  { %128 = vst [vmem:[#allocation0 + $0x38] sm:$0xf] %v376_v0  ;;  %133 = vst [vmem:[#allocation0 + $0x30] sm:$0xf] %v377_v1  ;;  %v379_v3 = vld [vmem:[%s579_s0 + $0x10] sm:$0xf] }
   0x3   :  { %138 = vst [vmem:[#allocation0 + $0x28] sm:$0xf] %v378_v2  ;;  %v380_v4 = vld [vmem:[%s579_s0 + $0xc] sm:$0xf]  ;;  %v381_v5 = vld [vmem:[%s579_s0 + $0x8] sm:$0xf] }
   0x4   :  { %143 = vst [vmem:[#allocation0 + $0x20] sm:$0xf] %v379_v3  ;;  %148 = vst [vmem:[#allocation0 + $0x18] sm:$0xf] %v380_v4  ;;  %v382_v6 = vld [vmem:[%s579_s0 + $0x4] sm:$0xf] }
   0x5   :  { %153 = vst [vmem:[#allocation0 + $0x10] sm:$0xf] %v381_v5  ;;  %v158_v7 = vld [vmem:[%s579_s0] sm:$0xf]  ;;  %157 = vst [vmem:[#allocation0 + $0x8] sm:$0xf] %v382_v6 }
   0x6   :  { %159 = vst [vmem:[#allocation0] sm:$0xf] %v158_v7  ;;  %v360_v8 = vld [vmem:[%s579_s0 + $0x5c] sm:$0xf]  ;;  %v361_v9 = vld [vmem:[%s579_s0 + $0x58] sm:$0xf] }
   0x7   :  { %v362_v10 = vld [vmem:[%s579_s0 + $0x54] sm:$0xf]  ;;  %48 = vst [vmem:[#allocation0 + $0xb8] sm:$0xf] %v360_v8  ;;  %53 = vst [vmem:[#allocation0 + $0xb0] sm:$0xf] %v361_v9 }
   0x8   :  { %58 = vst [vmem:[#allocation0 + $0xa8] sm:$0xf] %v362_v10  ;;  %v363_v11 = vld [vmem:[%s579_s0 + $0x50] sm:$0xf]  ;;  %v364_v12 = vld [vmem:[%s579_s0 + $0x4c] sm:$0xf] }
   0x9   :  { %v365_v13 = vld [vmem:[%s579_s0 + $0x48] sm:$0xf]  ;;  %63 = vst [vmem:[#allocation0 + $0xa0] sm:$0xf] %v363_v11  ;;  %68 = vst [vmem:[#allocation0 + $0x98] sm:$0xf] %v364_v12 }
   0xa   :  { %73 = vst [vmem:[#allocation0 + $0x90] sm:$0xf] %v365_v13  ;;  %v366_v14 = vld [vmem:[%s579_s0 + $0x44] sm:$0xf]  ;;  %v367_v15 = vld [vmem:[%s579_s0 + $0x40] sm:$0xf] }
   0xb   :  { %v368_v16 = vld [vmem:[%s579_s0 + $0x3c] sm:$0xf]  ;;  %78 = vst [vmem:[#allocation0 + $0x88] sm:$0xf] %v366_v14  ;;  %83 = vst [vmem:[#allocation0 + $0x80] sm:$0xf] %v367_v15 }
   0xc   :  { %88 = vst [vmem:[#allocation0 + $0x78] sm:$0xf] %v368_v16  ;;  %v369_v17 = vld [vmem:[%s579_s0 + $0x38] sm:$0xf]  ;;  %v370_v18 = vld [vmem:[%s579_s0 + $0x34] sm:$0xf] }
   0xd   :  { %v371_v19 = vld [vmem:[%s579_s0 + $0x30] sm:$0xf]  ;;  %93 = vst [vmem:[#allocation0 + $0x70] sm:$0xf] %v369_v17  ;;  %98 = vst [vmem:[#allocation0 + $0x68] sm:$0xf] %v370_v18 }
   0xe   :  { %103 = vst [vmem:[#allocation0 + $0x60] sm:$0xf] %v371_v19  ;;  %v372_v20 = vld [vmem:[%s579_s0 + $0x2c] sm:$0xf]  ;;  %v373_v21 = vld [vmem:[%s579_s0 + $0x28] sm:$0xf] }
   0xf   :  { %v374_v22 = vld [vmem:[%s579_s0 + $0x24] sm:$0xf]  ;;  %108 = vst [vmem:[#allocation0 + $0x58] sm:$0xf] %v372_v20  ;;  %113 = vst [vmem:[#allocation0 + $0x50] sm:$0xf] %v373_v21 }
  0x10   :  { %118 = vst [vmem:[#allocation0 + $0x48] sm:$0xf] %v374_v22  ;;  %v375_v23 = vld [vmem:[%s579_s0 + $0x20] sm:$0xf]  ;;  %v352_v24 = vld [vmem:[%s579_s0 + $0x7c] sm:$0xf] }
  0x11   :  { %v353_v25 = vld [vmem:[%s579_s0 + $0x78] sm:$0xf]  ;;  %123 = vst [vmem:[#allocation0 + $0x40] sm:$0xf] %v375_v23  ;;  %8 = vst [vmem:[#allocation0 + $0xf8] sm:$0xf] %v352_v24 }
  0x12   :  { %v196_v26 = vld [vmem:[#allocation0 + $0x3] ss:$8 sm:$0xf0]   ;;  %13 = vst [vmem:[#allocation0 + $0xf0] sm:$0xf] %v353_v25  ;;  %vm287_vm4 = vcmask 523520  }
  0x13   :  { %v354_v27 = vld [vmem:[%s579_s0 + $0x74] sm:$0xf]  ;;  %v194_v28 = vld [vmem:[#allocation0 + $0x3] ss:$8 sm:$0xf]  }
  0x14   :  { %18 = vst [vmem:[#allocation0 + $0xe8] sm:$0xf] %v354_v27  ;;  %v355_v29 = vld [vmem:[%s579_s0 + $0x70] sm:$0xf]  ;;  %v198_v30 = vsel %vm162_vm0, %v196_v26, %v194_v28  ;;  %v356_v31 = vld [vmem:[%s579_s0 + $0x6c] sm:$0xf] }
  0x15   :  { %23 = vst [vmem:[#allocation0 + $0xe0] sm:$0xf] %v355_v29  ;;  %v357_v32 = vld [vmem:[%s579_s0 + $0x68] sm:$0xf]  ;;  %v358_v33 = vld [vmem:[%s579_s0 + $0x64] sm:$0xf]  ;;  %199 = vrot.lane.b32.xlu0 %v198_v30, %s398_s10 }
  0x16   :  { %v217_v34 = vld [vmem:[#allocation0 + $0x83] ss:$8 sm:$0xf0]   ;;  %28 = vst [vmem:[#allocation0 + $0xd8] sm:$0xf] %v356_v31 }
  0x17   :  { %33 = vst [vmem:[#allocation0 + $0xd0] sm:$0xf] %v357_v32  ;;  %38 = vst [vmem:[#allocation0 + $0xc8] sm:$0xf] %v358_v33  ;;  %v359_v35 = vld [vmem:[%s579_s0 + $0x60] sm:$0xf] }
  0x18   :  { %v215_v36 = vld [vmem:[#allocation0 + $0x83] ss:$8 sm:$0xf]   ;;  %43 = vst [vmem:[#allocation0 + $0xc0] sm:$0xf] %v359_v35  ;;  %s399_s0 = smov 64  }
  0x19   :  { %v219_v37 = vsel %vm162_vm0, %v217_v34, %v215_v36  ;;  %v206_v38 = vld [vmem:[#allocation0 + $0x43] ss:$8 sm:$0xf0]   ;;  %v237_v39 = vld [vmem:[#allocation0 + $0x2] ss:$8 sm:$0xf]  }
  0x1a   :  { %220 = vrot.lane.b32.xlu1 %v219_v37, %s398_s10  ;;  %v204_v40 = vld [vmem:[#allocation0 + $0x43] ss:$8 sm:$0xf]   ;;  %v239_v41 = vld [vmem:[#allocation0 + $0x2] ss:$8 sm:$0xf0]  }
  0x1b   :  { %v208_v42 = vsel %vm162_vm0, %v206_v38, %v204_v40  ;;  %v249_v44 = vld [vmem:[#allocation0 + $0x42] ss:$8 sm:$0xf0]   ;;  %v241_v45 = vsel %vm162_vm0, %v239_v41, %v237_v39  ;;  %v280_v52 = vld [vmem:[#allocation0 + $0x1] ss:$8 sm:$0xf]  }
  0x1c   :  { %209 = vrot.lane.b32.xlu0 %v208_v42, %s398_s10  ;;  %v228_v43 = vld [vmem:[#allocation0 + $0xc3] ss:$8 sm:$0xf0]   ;;  %v247_v46 = vld [vmem:[#allocation0 + $0x42] ss:$8 sm:$0xf]  }
  0x1d   :  { %v258_v47 = vld [vmem:[#allocation0 + $0x82] ss:$8 sm:$0xf]   ;;  %v251_v53 = vsel %vm162_vm0, %v249_v44, %v247_v46  ;;  %v282_v55 = vld [vmem:[#allocation0 + $0x1] ss:$8 sm:$0xf0]  }
  0x1e   :  { %v260_v49 = vld [vmem:[#allocation0 + $0x82] ss:$8 sm:$0xf0]   ;;  %v160_v56 = vld [vmem:[#allocation0] ss:$8 sm:$0xf]   ;;  %v284_v4 = vsel %vm162_vm0, %v282_v55, %v280_v52 }
  0x1f   :  { %v226_v48 = vld [vmem:[#allocation0 + $0xc3] ss:$8 sm:$0xf]   ;;  %v271_v51 = vld [vmem:[#allocation0 + $0xc2] ss:$8 sm:$0xf0]   ;;  %v262_v54 = vsel %vm162_vm0, %v260_v49, %v258_v47 }
  0x20   :  { %v230_v50 = vsel %vm162_vm0, %v228_v43, %v226_v48  ;;  %242 = vrot.lane.b32.xlu0 %v241_v45, %s399_s0  ;;  %v269_v57 = vld [vmem:[#allocation0 + $0xc2] ss:$8 sm:$0xf]   ;;  %v161_v58 = vld [vmem:[#allocation0] ss:$8 sm:$0xf0]  }
  0x21   :  { %231 = vrot.lane.b32.xlu1 %v230_v50, %s398_s10  ;;  %v163_v59 = vsel %vm162_vm0, %v161_v58, %v160_v56  ;;  %v176_v60 = vld [vmem:[#allocation0 + $0x80] ss:$8 sm:$0xf]   ;;  %v290_v62 = vld [vmem:[#allocation0 + $0x41] ss:$8 sm:$0xf]   ;;  %v273_v3 = vsel %vm162_vm0, %v271_v51, %v269_v57 }
  0x22   :  { %v178_v61 = vld [vmem:[#allocation0 + $0x80] ss:$8 sm:$0xf0]   ;;  %v292_v63 = vld [vmem:[#allocation0 + $0x41] ss:$8 sm:$0xf0]  }
  0x23   :  { %165 = vst.msk [vmem:[%s580_s1] sm:$0xff] %vm164_vm1, %v163_v59   ;;  %v180_v0 = vsel %vm162_vm0, %v178_v61, %v176_v60  ;;  %v167_v1 = vld [vmem:[#allocation0 + $0x40] ss:$8 sm:$0xf]   ;;  %v294_v11 = vsel %vm162_vm0, %v292_v63, %v290_v62 }
  0x24   :  { %263 = vrot.lane.b32.xlu0 %v262_v54, %s399_s0  ;;  %v169_v2 = vld [vmem:[#allocation0 + $0x40] ss:$8 sm:$0xf0]   ;;  %384 = vst.msk [vmem:[%s580_s1 + $0x10] sm:$0xff] %vm164_vm1, %v180_v0  }
  0x25   :  { %252 = vrot.lane.b32.xlu1 %v251_v53, %s399_s0  ;;  %v171_v5 = vsel %vm162_vm0, %v169_v2, %v167_v1  ;;  %v185_v6 = vld [vmem:[#allocation0 + $0xc0] ss:$8 sm:$0xf]   ;;  %v301_v8 = vld [vmem:[#allocation0 + $0x81] ss:$8 sm:$0xf]  }
  0x26   :  { %v187_v7 = vld [vmem:[#allocation0 + $0xc0] ss:$8 sm:$0xf0]   ;;  %v303_v9 = vld [vmem:[#allocation0 + $0x81] ss:$8 sm:$0xf0]  }
  0x27   :  { %383 = vst.msk [vmem:[%s580_s1 + $0x8] sm:$0xff] %vm164_vm1, %v171_v5   ;;  %v189_v10 = vsel %vm162_vm0, %v187_v7, %v185_v6  ;;  %v305_v12 = vsel %vm162_vm0, %v303_v9, %v301_v8  ;;  %v312_v13 = vld [vmem:[#allocation0 + $0xc1] ss:$8 sm:$0xf]  }
  0x28   :  { %385 = vst.msk [vmem:[%s580_s1 + $0x18] sm:$0xff] %vm164_vm1, %v189_v10   ;;  %285 = vrot.lane.b32.xlu0 %v284_v4, %s400_s21  ;;  %v314_v14 = vld [vmem:[#allocation0 + $0xc1] ss:$8 sm:$0xf0]  }
  0x29   :  { %274 = vrot.lane.b32.xlu1 %v273_v3, %s399_s0  ;;  %v316_v15 = vsel %vm162_vm0, %v314_v14, %v312_v13 }
  0x2c   :  { %306 = vrot.lane.b32.xlu0 %v305_v12, %s400_s21 }
  0x2d   :  { %295 = vrot.lane.b32.xlu1 %v294_v11, %s400_s21 }
  0x31   :  { %317 = vrot.lane.b32.xlu1 %v316_v15, %s400_s21 }
  0x87   :  { %v200_v16 = vpop.permute.xlu0 %199  }
  0x88   :  { %202 = vst.msk [vmem:[%s580_s1] sm:$0xff] %vm201_vm2, %v200_v16  }
  0x8c   :  { %v221_v17 = vpop.permute.xlu1 %220  }
  0x8d   :  { %387 = vst.msk [vmem:[%s580_s1 + $0x10] sm:$0xff] %vm201_vm2, %v221_v17  }
  0x8e   :  { %v210_v18 = vpop.permute.xlu0 %209  }
  0x8f   :  { %386 = vst.msk [vmem:[%s580_s1 + $0x8] sm:$0xff] %vm201_vm2, %v210_v18  }
  0x92   :  { %v243_v20 = vpop.permute.xlu0 %242  }
  0x93   :  { %v232_v19 = vpop.permute.xlu1 %231   ;;  %245 = vst.msk [vmem:[%s580_s1] sm:$0xff] %vm244_vm3, %v243_v20  }
  0x94   :  { %388 = vst.msk [vmem:[%s580_s1 + $0x18] sm:$0xff] %vm201_vm2, %v232_v19  }
  0x96   :  { %v264_v22 = vpop.permute.xlu0 %263  }
  0x97   :  { %v253_v21 = vpop.permute.xlu1 %252   ;;  %390 = vst.msk [vmem:[%s580_s1 + $0x10] sm:$0xff] %vm244_vm3, %v264_v22  }
  0x98   :  { %389 = vst.msk [vmem:[%s580_s1 + $0x8] sm:$0xff] %vm244_vm3, %v253_v21  }
  0x9a   :  { %v286_v24 = vpop.permute.xlu0 %285  }
  0x9b   :  { %v275_v23 = vpop.permute.xlu1 %274   ;;  %288 = vst.msk [vmem:[%s580_s1] sm:$0xff] %vm287_vm4, %v286_v24  }
  0x9c   :  { %391 = vst.msk [vmem:[%s580_s1 + $0x18] sm:$0xff] %vm244_vm3, %v275_v23  }
  0x9e   :  { %v307_v26 = vpop.permute.xlu0 %306  }
  0x9f   :  { %v296_v25 = vpop.permute.xlu1 %295   ;;  %393 = vst.msk [vmem:[%s580_s1 + $0x10] sm:$0xff] %vm287_vm4, %v307_v26  }
  0xa0   :  { %392 = vst.msk [vmem:[%s580_s1 + $0x8] sm:$0xff] %vm287_vm4, %v296_v25  }
  0xa3   :  { %v318_v27 = vpop.permute.xlu1 %317  }
  0xa4   :  { %394 = vst.msk [vmem:[%s580_s1 + $0x18] sm:$0xff] %vm287_vm4, %v318_v27  }

// kernel: encoder_forward.8
= control target key start
LH: loop header
LB: loop body
LE: loop exit
PB: predicated region body
PF: predicated region fallthrough
CT: control target
= control target key end

     0   :  { %s1347_s15 = smov 0   ;;  %s1548_s0 = inlined_call_operand.vmem [shape: bf16[2,9,256], index: 0, kind: input, shape index: {}]   ;;  %s1549_s1 = inlined_call_operand.vmem [shape: bf16[2,256,128], index: 1, kind: input, shape index: {}]   ;;  %s1550_s2 = inlined_call_operand.vmem [shape: f32[128,16], index: 2, kind: input, shape index: {}]   ;;  %s1551_s3 = inlined_call_operand.vmem [shape: f32[16,128], index: 3, kind: input, shape index: {}]   ;;  %s1552_s4 = inlined_call_operand.vmem [shape: bf16[2,8,128], index: 4, kind: output, shape index: {}]  }
   0x1 LB: > { %s959_s16 = sadd.s32 4294967295, %s1317_s15   ;;  %p963_p0 = scmp.ge.s32.totalorder %s1317_s15, 1  ;;  %s1317_s15 = sphi %s1347_s15, %s14_s15  }
   0x2   : > { %p162_p1 = scmp.lt.s32.totalorder %s1317_s15, 3 }
   0x4   : > { %p163_p2 = pnand %p963_p0, %p162_p1 }
   0x5   : > { %v1273_v0 = vld [vmem:[%s1549_s1 + $0xc0] sm:$0xff] (!%p163_p2)   ;;  %v1277_v4 = vld [vmem:[%s1549_s1 + $0xc8] sm:$0xff] (!%p163_p2)   ;;  %v1281_v8 = vld [vmem:[%s1549_s1 + $0xd0] sm:$0xff] (!%p163_p2)   ;;  %p187_p3 = scmp.lt.s32.totalorder (!%p163_p2), %s959_s16, 1  ;;  %v1319_v40 = vmov (!%p163_p2), 0.0|0.0   ;;  %vm1320_vm0 = vmmov (!%p163_p2), 0  }
   0x6   : > { %166 = sbr.rel (%p163_p2) target bundleno = 726 (0x2d6), region = 36  ;;  %v1274_v1 = vld [vmem:[%s1549_s1 + $0x40] sm:$0xff] (!%p163_p2)   ;;  %1040 = vmatprep.subr.bf16.mxu0 (!%p163_p2), %v1273_v0  ;;  %v1278_v5 = vld [vmem:[%s1549_s1 + $0x48] sm:$0xff] (!%p163_p2)   ;;  %v1282_v9 = vld [vmem:[%s1549_s1 + $0x50] sm:$0xff] (!%p163_p2)   ;;  %vm652_vm1 = vcmask (!%p163_p2), 130048  }
   0x7   : > { %v1275_v2 = vld [vmem:[%s1549_s1 + $0x80] sm:$0xff] (!%p163_p2)   ;;  %1062 = vmatprep.subr.bf16.mxu1 (!%p163_p2), %v1274_v1  ;;  %v1279_v6 = vld [vmem:[%s1549_s1 + $0x88] sm:$0xff] (!%p163_p2)   ;;  %v1283_v10 = vld [vmem:[%s1549_s1 + $0x90] sm:$0xff] (!%p163_p2)  }
   0x8   : > { %v1276_v3 = vld [vmem:[%s1549_s1] sm:$0xff] (!%p163_p2)   ;;  %1041 = vmatpush3.bf16.msra.mxu0 (!%p163_p2), %v1275_v2  ;;  %v1280_v7 = vld [vmem:[%s1549_s1 + $0x8] sm:$0xff] (!%p163_p2)   ;;  %v1284_v11 = vld [vmem:[%s1549_s1 + $0x10] sm:$0xff] (!%p163_p2)  }
   0x9   : > { %1063 = vmatpush3.bf16.msra.mxu1 (!%p163_p2), %v1276_v3  ;;  %1042 = vmatprep.subr.bf16.mxu0 (!%p163_p2), %v1277_v4  ;;  %v1285_v12 = vld [vmem:[%s1549_s1 + $0xd8] sm:$0xff] (!%p163_p2)   ;;  %v1289_v16 = vld [vmem:[%s1549_s1 + $0xe0] sm:$0xff] (!%p163_p2)   ;;  %v1293_v20 = vld [vmem:[%s1549_s1 + $0xe8] sm:$0xff] (!%p163_p2)  }
   0xa   : > { %1064 = vmatprep.subr.bf16.mxu1 (!%p163_p2), %v1278_v5  ;;  %v1286_v13 = vld [vmem:[%s1549_s1 + $0x58] sm:$0xff] (!%p163_p2)   ;;  %v1290_v17 = vld [vmem:[%s1549_s1 + $0x60] sm:$0xff] (!%p163_p2)   ;;  %v1294_v21 = vld [vmem:[%s1549_s1 + $0x68] sm:$0xff] (!%p163_p2)  }
   0xb   : > { %v1287_v14 = vld [vmem:[%s1549_s1 + $0x98] sm:$0xff] (!%p163_p2)   ;;  %v1291_v18 = vld [vmem:[%s1549_s1 + $0xa0] sm:$0xff] (!%p163_p2)   ;;  %v1295_v22 = vld [vmem:[%s1549_s1 + $0xa8] sm:$0xff] (!%p163_p2)  }
   0xc   : > { %1043 = vmatpush3.bf16.msra.mxu0 (!%p163_p2), %v1279_v6  ;;  %v1288_v15 = vld [vmem:[%s1549_s1 + $0x18] sm:$0xff] (!%p163_p2)   ;;  %v1292_v19 = vld [vmem:[%s1549_s1 + $0x20] sm:$0xff] (!%p163_p2)   ;;  %v1296_v23 = vld [vmem:[%s1549_s1 + $0x28] sm:$0xff] (!%p163_p2)  }
   0xd   : > { %1065 = vmatpush3.bf16.msra.mxu1 %v1280_v7  ;;  %1044 = vmatprep.subr.bf16.mxu0 %v1281_v8  ;;  %s1554_s16 = smov (!%p187_p3, %s959_s16), 1  ;;  %v1297_v24 = vld [vmem:[%s1549_s1 + $0xf0] sm:$0xff]   ;;  %v1301_v28 = vld [vmem:[%s1549_s1 + $0xf8] sm:$0xff]   ;;  %v564_v34 = vld [vmem:[%s1550_s2] sm:$0xff]  ;;  %v1321_v7 = vmov 0.0  }
   0xe   : > { %1066 = vmatprep.subr.bf16.mxu1 %v1282_v9  ;;  %v1298_v25 = vld [vmem:[%s1549_s1 + $0x70] sm:$0xff]   ;;  %s1039_s23 = sshll.u32 %s1554_s16, 4  ;;  %v1302_v29 = vld [vmem:[%s1549_s1 + $0x78] sm:$0xff]   ;;  %v565_v39 = vld [vmem:[%s1550_s2 + $0x8] sm:$0xff]  ;;  %s966_s25 = sshll.u32 %s1554_s16, 2 }
   0xf   : > { %v1299_v26 = vld [vmem:[%s1549_s1 + $0xb0] sm:$0xff]   ;;  %s191_s6 = scalar_lea.vmem %s1548_s0, %s1039_s23  ;;  %v1303_v30 = vld [vmem:[%s1549_s1 + $0xb8] sm:$0xff]   ;;  %v1209_v41 = vpack.c.bf16 %v565_v39, %v564_v34  ;;  %v568_v53 = vld [vmem:[%s1550_s2 + $0x20] sm:$0xff]  ;;  %s195_s28 = scalar_lea.vmem %s1552_s4, %s966_s25 }
  0x10   : > { %1045 = vmatpush3.bf16.msra.mxu0 %v1283_v10  ;;  %v1300_v27 = vld [vmem:[%s1549_s1 + $0x30] sm:$0xff]   ;;  %v1304_v31 = vld [vmem:[%s1549_s1 + $0x38] sm:$0xff]   ;;  %v197_v32 = vld [vmem:[%s191_s6] sm:$0xff] }
  0x11   : > { %1067 = vmatpush3.bf16.msra.mxu1 %v1284_v11  ;;  %1046 = vmatprep.subr.bf16.mxu0 %v1285_v12  ;;  %v230_v33 = vld [vmem:[%s191_s6 + $0x8] sm:$0x11]  ;;  %v1018_v37 = vcombine.high %v197_v32, %v197_v32  ;;  %v1017_v38 = vcombine.low %v197_v32, %v197_v32  ;;  %v566_v46 = vld [vmem:[%s1550_s2 + $0x10] sm:$0xff]  ;;  %v567_v47 = vld [vmem:[%s1550_s2 + $0x18] sm:$0xff] }
  0x12   : > { %1068 = vmatprep.subr.bf16.mxu1 %v1286_v13  ;;  %v999_v35 = vcombine.low %v197_v32, %v230_v33  ;;  %v1000_v36 = vcombine.high %v197_v32, %v230_v33  ;;  %v1212_v52 = vpack.c.bf16 %v567_v47, %v566_v46  ;;  %v569_v54 = vld [vmem:[%s1550_s2 + $0x28] sm:$0xff]  ;;  %v570_v56 = vld [vmem:[%s1550_s2 + $0x30] sm:$0xff]  ;;  %v571_v57 = vld [vmem:[%s1550_s2 + $0x38] sm:$0xff] }
  0x13   : > { %556 = vmatprep.mubr.bf16.mxu1 %v1018_v37  ;;  %v1215_v55 = vpack.c.bf16 %v569_v54, %v568_v53  ;;  %v1218_v58 = vpack.c.bf16 %v571_v57, %v570_v56  ;;  %v572_v59 = vld [vmem:[%s1550_s2 + $0x40] sm:$0xff]  ;;  %v573_v60 = vld [vmem:[%s1550_s2 + $0x48] sm:$0xff]  ;;  %v574_v62 = vld [vmem:[%s1550_s2 + $0x50] sm:$0xff] }
  0x14   : > { %1047 = vmatpush3.bf16.msra.mxu0 %v1287_v14  ;;  %v280_v42 = vshrl.u32 %v1000_v36, 16  ;;  %v282_v43 = vshll.u32 %v1000_v36, 16  ;;  %v273_v44 = vshrl.u32 %v999_v35, 16  ;;  %v275_v45 = vshll.u32 %v999_v35, 16  ;;  %v575_v63 = vld [vmem:[%s1550_s2 + $0x58] sm:$0xff]  ;;  %v576_v1 = vld [vmem:[%s1550_s2 + $0x60] sm:$0xff] }
  0x15   : > { %1069 = vmatpush3.bf16.msra.mxu1 %v1288_v15  ;;  %1048 = vmatprep.subr.bf16.mxu0 %v1289_v16  ;;  %v1221_v61 = vpack.c.bf16 %v573_v60, %v572_v59  ;;  %v1224_v0 = vpack.c.bf16 %v575_v63, %v574_v62  ;;  %v577_v2 = vld [vmem:[%s1550_s2 + $0x68] sm:$0xff]  ;;  %v578_v4 = vld [vmem:[%s1550_s2 + $0x70] sm:$0xff]  ;;  %v579_v5 = vld [vmem:[%s1550_s2 + $0x78] sm:$0xff] }
  0x16   : > { %1070 = vmatprep.subr.bf16.mxu1 %v1290_v17  ;;  %v284_v48 = vrot.slane %v282_v43, 1  ;;  %v277_v49 = vrot.slane %v275_v45, 1  ;;  %v1227_v3 = vpack.c.bf16 %v577_v2, %v576_v1  ;;  %v1230_v6 = vpack.c.bf16 %v579_v5, %v578_v4 }
  0x18   : > { %1049 = vmatpush3.bf16.msra.mxu0 %v1291_v18  ;;  %v285_v50 = vor.u32 %v284_v48, %v280_v42  ;;  %v278_v51 = vor.u32 %v277_v49, %v273_v44 }
  0x19   : > { %1071 = vmatpush3.bf16.msra.mxu1 %v1292_v19  ;;  %1050 = vmatprep.subr.bf16.mxu0 %v1293_v20  ;;  %v580_v20 = vld [vmem:[%s1551_s3] sm:$0xff] }
  0x1a   : > { %1072 = vmatprep.subr.bf16.mxu1 %v1294_v21  ;;  %416 = vmatprep.mubr.bf16.mxu0 %v285_v50  ;;  %v581_v21 = vld [vmem:[%s1551_s3 + $0x8] sm:$0xff]  ;;  %v893_v50 = vlaneseq }
  0x1c   : > { %1051 = vmatpush3.bf16.msra.mxu0 %v1295_v22  ;;  %v1257_v22 = vpack.c.bf16 %v581_v21, %v580_v20 }
  0x1d   : > { %1073 = vmatpush3.bf16.msra.mxu1 %v1296_v23  ;;  %1052 = vmatprep.subr.bf16.mxu0 %v1297_v24 }
  0x1e   : > { %1074 = vmatprep.subr.bf16.mxu1 %v1298_v25 }
  0x20   : > { %1053 = vmatpush3.bf16.msra.mxu0 %v1299_v26 }
  0x21   : > { %1075 = vmatpush3.bf16.msra.mxu1 %v1300_v27  ;;  %1054 = vmatprep.subr.bf16.mxu0 %v1301_v28 }
  0x22   : > { %1076 = vmatprep.subr.bf16.mxu1 %v1302_v29 }
  0x24   : > { %1055 = vmatpush3.bf16.msra.mxu0 %v1303_v30 }
  0x25   : > { %1077 = vmatpush3.bf16.msra.mxu1 %v1304_v31  ;;  %1208 = vmatprep.subr.bf16.mxu0 %v1319_v40 }
  0x26   : > { %1232 = vmatprep.subr.bf16.mxu1 %v1319_v40 }
  0x27   : > { %417 = vmatmul.mubr.bf16.vlgmr.msra.gmra.mrb[0].mxu0 %v278_v51  ;;  %v894_v51 = vshrl.u32 %v893_v50, 7 }
  0x28   : > { %557 = vmatmul.mubr.bf16.vlgmr.msra.gmra.mrb[0].mxu1 %v1017_v38  ;;  %1210 = vmatpush3.bf16.msra.mxu0 %v1209_v41 }
  0x29   : > { %1234 = vmatpush3.bf16.msra.mxu1 %v1209_v41  ;;  %1211 = vmatprep.subr.bf16.mxu0 %v1319_v40 }
  0x2a   : > { %1235 = vmatprep.subr.bf16.mxu1 %v1319_v40  ;;  %1156 = vmatprep.mubr.msk.f32.mxu0 %vm1320_vm0, %v1321_v7 }
  0x2b   : > { %1191 = vmatprep.mubr.msk.f32.mxu1 %vm1320_vm0, %v1321_v7 }
  0x2c   : > { %1213 = vmatpush3.bf16.msra.mxu0 %v1212_v52 }
  0x2d   : > { %1237 = vmatpush3.bf16.msra.mxu1 %v1212_v52  ;;  %1214 = vmatprep.subr.bf16.mxu0 %v1319_v40  ;;  %v895_v52 = vsub.s32 0, %v894_v51 }
  0x2e   : > { %1238 = vmatprep.subr.bf16.mxu1 %v1319_v40 }
  0x30   : > { %1216 = vmatpush3.bf16.msra.mxu0 %v1215_v55 }
  0x31   : > { %1240 = vmatpush3.bf16.msra.mxu1 %v1215_v55  ;;  %1217 = vmatprep.subr.bf16.mxu0 %v1319_v40 }
  0x32   : > { %1241 = vmatprep.subr.bf16.mxu1 %v1319_v40 }
  0x34   : > { %1219 = vmatpush3.bf16.msra.mxu0 %v1218_v58 }
  0x35   : > { %1243 = vmatpush3.bf16.msra.mxu1 %v1218_v58  ;;  %1220 = vmatprep.subr.bf16.mxu0 %v1319_v40 }
  0x36   : > { %1244 = vmatprep.subr.bf16.mxu1 %v1319_v40 }
  0x38   : > { %1222 = vmatpush3.bf16.msra.mxu0 %v1221_v61 }
  0x39   : > { %1246 = vmatpush3.bf16.msra.mxu1 %v1221_v61  ;;  %1223 = vmatprep.subr.bf16.mxu0 %v1319_v40 }
  0x3a   : > { %1247 = vmatprep.subr.bf16.mxu1 %v1319_v40 }
  0x3c   : > { %1225 = vmatpush3.bf16.msra.mxu0 %v1224_v0 }
  0x3d   : > { %1249 = vmatpush3.bf16.msra.mxu1 %v1224_v0  ;;  %1226 = vmatprep.subr.bf16.mxu0 %v1319_v40 }
  0x3e   : > { %1250 = vmatprep.subr.bf16.mxu1 %v1319_v40 }
  0x40   : > { %1228 = vmatpush3.bf16.msra.mxu0 %v1227_v3 }
  0x41   : > { %1252 = vmatpush3.bf16.msra.mxu1 %v1227_v3  ;;  %1229 = vmatprep.subr.bf16.mxu0 %v1319_v40 }
  0x42   : > { %1253 = vmatprep.subr.bf16.mxu1 %v1319_v40 }
  0x44   : > { %1231 = vmatpush3.bf16.msra.mxu0 %v1230_v6 }
  0x45   : > { %1255 = vmatpush3.bf16.msra.mxu1 %v1230_v6  ;;  %1256 = vmatprep.subr.bf16.mxu0 %v1319_v40 }
  0x46   : > { %1259 = vmatprep.subr.bf16.mxu1 %v1319_v40 }
  0xfa   : > { %v1056_v13 = vpop.f32.mrb[0].mxu0 }
  0xfb   : > { %v1078_v8 = vpop.f32.mrb[0].mxu1  ;;  %v1057_v14 = vpop.f32.mrb[1].mxu0 }
  0xfc   : > { %v1079_v9 = vpop.f32.mrb[1].mxu1  ;;  %v1058_v15 = vadd.f32 %v1057_v14, %v1056_v13  ;;  %v1059_v16 = vpop.f32.mrb[2].mxu0 }
  0xfd   : > { %v1080_v10 = vadd.f32 %v1079_v9, %v1078_v8  ;;  %v1081_v11 = vpop.f32.mrb[2].mxu1  ;;  %v1060_v17 = vpop.f32.mrb[3].mxu0 }
  0xfe   : > { %v1082_v12 = vpop.f32.mrb[3].mxu1 }
  0xff   : > { %v559_v18 = vadd.f32 %v1080_v10, %v1058_v15 }
 0x101   : > { %v660_v19 = vmul.f32 %v559_v18, %v559_v18  ;;  %1157 = vmatmul.mubr.f32.vlgmr.msra.gmra.mrb[4].mxu0 %v559_v18 }
 0x102   : > { %1198 = vmatprep.mubr.msk.f32.mxu0 %vm1320_vm0, %v1321_v7  ;;  %1258 = vmatpush3.bf16.msra.mxu0 %v1257_v22 }
 0x103   : > { %1192 = vmatmul.mubr.f32.vlgmr.msra.gmra.mrb[4].mxu1 %v660_v19 }
 0x104   : > { %1205 = vmatprep.mubr.msk.f32.mxu1 %vm1320_vm0, %v1321_v7  ;;  %1261 = vmatpush3.bf16.msra.mxu1 %v1257_v22 }
 0x1d4   : > { %v648_v23 = vpop.f32.mrb[4].mxu0 }
 0x1d5   : > { %v653_v24 = vsel %vm652_vm1, %v648_v23, 0.0  ;;  %v1158_v25 = vpop.f32.mrb[5].mxu0 }
 0x1d6   : > { %v654_v26 = vrot.slane %v653_v24, 4  ;;  %v727_v27 = vpop.f32.mrb[4].mxu1 }
 0x1d7   : > { %v731_v28 = vsel %vm652_vm1, %v727_v27, 0.0  ;;  %v1193_v29 = vpop.f32.mrb[5].mxu1 }
 0x1d8   : > { %v655_v30 = vadd.f32 %v654_v26, %v653_v24  ;;  %v732_v31 = vrot.slane %v731_v28, 4 }
 0x1da   : > { %v656_v32 = vrot.slane %v655_v30, 2  ;;  %v733_v33 = vadd.f32 %v732_v31, %v731_v28 }
 0x1dc   : > { %v657_v34 = vadd.f32 %v656_v32, %v655_v30  ;;  %v734_v35 = vrot.slane %v733_v33, 2 }
 0x1de   : > { %v658_v36 = vrot.slane %v657_v34, 1  ;;  %v735_v37 = vadd.f32 %v734_v35, %v733_v33 }
 0x1e0   : > { %v659_v38 = vadd.f32 %v658_v36, %v657_v34  ;;  %v736_v39 = vrot.slane %v735_v37, 1 }
 0x1e2   : > { %v738_v40 = vmul.f32 0.015625, %v659_v38  ;;  %v737_v41 = vadd.f32 %v736_v39, %v735_v37 }
 0x1e4   : > { %v740_v42 = vmul.f32 %v738_v40, %v738_v40  ;;  %v739_v43 = vmul.f32 0.015625, %v737_v41  ;;  %v745_v47 = vsub.f32 0.0, %v738_v40 }
 0x1e6   : > { %v741_v44 = vsub.f32 %v739_v43, %v740_v42 }
 0x1e8   : > { %v742_v45 = vmax.f32 %v741_v44, 0.0 }
 0x1ea   : > { %v743_v46 = vadd.f32 1e-05, %v742_v45 }
 0x1ec   : > { %1309 = vrsqrt.f32 %v743_v46 }
 0x1f6   : > { %v1310_v48 = vpop.eup %1309 }
 0x1f7   : > { %1199 = vmatmul.mubr.msk.f32.vlgmr.msra.gmra.mrb[6].mxu0 %vm652_vm1, %v1310_v48  ;;  %v746_v49 = vmul.f32 %v1310_v48, %v745_v47 }
 0x1f9   : > { %1206 = vmatmul.mubr.msk.f32.vlgmr.msra.gmra.mrb[6].mxu1 %vm652_vm1, %v746_v49 }
 0x2ca   : > { %v816_v53 = vpop.f32.mrb[6].mxu0 }
 0x2cb   : > { %v896_v54 = vrot.slane %v816_v53, %v895_v52  ;;  %v1200_v55 = vpop.f32.mrb[7].mxu0 }
 0x2cc   : > { %v889_v56 = vpop.f32.mrb[6].mxu1 }
 0x2cd   : > { %v897_v57 = vmul.f32 %v896_v54, %v559_v18  ;;  %v901_v58 = vrot.slane %v889_v56, %v895_v52  ;;  %v1207_v59 = vpop.f32.mrb[7].mxu1 }
 0x2cf   : > { %v902_v60 = vadd.f32 %v901_v58, %v897_v57 }
 0x2d1   : > { %v903_v61 = vmax.f32 %v902_v60, 0.0 }
 0x2d3   : > { %v904_v62 = vpack.c.bf16 %v903_v61, %v903_v61 }
 0x2d5   : > { %905 = vst [vmem:[%s195_s28] sm:$0xf] %v904_v62 }
 0x2d6 PF: > { %s14_s15 = sadd.s32 1, %s1317_s15  }
 0x2d7   : > { %p11_p4 = scmp.ge.s32.totalorder %s14_s15, 4  }
 0x2d9   :  { %13 = sbr.rel (!%p11_p4) target bundleno = 1 (0x1), region = 67 }

// kernel: encoder_forward.9
= control target key start
LH: loop header
LB: loop body
LE: loop exit
PB: predicated region body
PF: predicated region fallthrough
CT: control target
= control target key end

     0   :  { %s1368_s15 = smov 0   ;;  %s1573_s0 = inlined_call_operand.vmem [shape: bf16[2,5,256], index: 0, kind: input, shape index: {}]   ;;  %s1574_s1 = inlined_call_operand.vmem [shape: bf16[2,256,128], index: 1, kind: input, shape index: {}]   ;;  %s1575_s2 = inlined_call_operand.vmem [shape: f32[128,32], index: 2, kind: input, shape index: {}]   ;;  %s1576_s3 = inlined_call_operand.vmem [shape: f32[32,128], index: 3, kind: input, shape index: {}]   ;;  %s1577_s4 = inlined_call_operand.vmem [shape: bf16[2,4,128], index: 4, kind: output, shape index: {}]  }
   0x1 LB: > { %s962_s16 = sadd.s32 4294967295, %s1338_s15   ;;  %p966_p0 = scmp.ge.s32.totalorder %s1338_s15, 1  ;;  %s1338_s15 = sphi %s1368_s15, %s14_s15  }
   0x2   : > { %p162_p1 = scmp.lt.s32.totalorder %s1338_s15, 3 }
   0x4   : > { %p163_p2 = pnand %p966_p0, %p162_p1 }
   0x5   : > { %v1294_v0 = vld [vmem:[%s1574_s1 + $0xc0] sm:$0xff] (!%p163_p2)   ;;  %v1298_v4 = vld [vmem:[%s1574_s1 + $0xc8] sm:$0xff] (!%p163_p2)   ;;  %v1302_v8 = vld [vmem:[%s1574_s1 + $0xd0] sm:$0xff] (!%p163_p2)   ;;  %p187_p3 = scmp.lt.s32.totalorder (!%p163_p2), %s962_s16, 1  ;;  %v1340_v40 = vmov (!%p163_p2), 0.0|0.0   ;;  %vm1341_vm0 = vmmov (!%p163_p2), 0  }
   0x6   : > { %166 = sbr.rel (%p163_p2) target bundleno = 726 (0x2d6), region = 36  ;;  %v1295_v1 = vld [vmem:[%s1574_s1 + $0x40] sm:$0xff] (!%p163_p2)   ;;  %1043 = vmatprep.subr.bf16.mxu0 (!%p163_p2), %v1294_v0  ;;  %v1299_v5 = vld [vmem:[%s1574_s1 + $0x48] sm:$0xff] (!%p163_p2)   ;;  %v1303_v9 = vld [vmem:[%s1574_s1 + $0x50] sm:$0xff] (!%p163_p2)   ;;  %vm654_vm1 = vcmask (!%p163_p2), 257024   ;;  %vm749_vm2 = vcmask (!%p163_p2), 261120  }
   0x7   : > { %v1296_v2 = vld [vmem:[%s1574_s1 + $0x80] sm:$0xff] (!%p163_p2)   ;;  %1065 = vmatprep.subr.bf16.mxu1 (!%p163_p2), %v1295_v1  ;;  %v1300_v6 = vld [vmem:[%s1574_s1 + $0x88] sm:$0xff] (!%p163_p2)   ;;  %v1304_v10 = vld [vmem:[%s1574_s1 + $0x90] sm:$0xff] (!%p163_p2)  }
   0x8   : > { %v1297_v3 = vld [vmem:[%s1574_s1] sm:$0xff] (!%p163_p2)   ;;  %1044 = vmatpush3.bf16.msra.mxu0 (!%p163_p2), %v1296_v2  ;;  %v1301_v7 = vld [vmem:[%s1574_s1 + $0x8] sm:$0xff] (!%p163_p2)   ;;  %v1305_v11 = vld [vmem:[%s1574_s1 + $0x10] sm:$0xff] (!%p163_p2)  }
   0x9   : > { %1066 = vmatpush3.bf16.msra.mxu1 (!%p163_p2), %v1297_v3  ;;  %1045 = vmatprep.subr.bf16.mxu0 (!%p163_p2), %v1298_v4  ;;  %v1306_v12 = vld [vmem:[%s1574_s1 + $0xd8] sm:$0xff] (!%p163_p2)   ;;  %v1310_v16 = vld [vmem:[%s1574_s1 + $0xe0] sm:$0xff] (!%p163_p2)   ;;  %v1314_v20 = vld [vmem:[%s1574_s1 + $0xe8] sm:$0xff] (!%p163_p2)  }
   0xa   : > { %1067 = vmatprep.subr.bf16.mxu1 (!%p163_p2), %v1299_v5  ;;  %v1307_v13 = vld [vmem:[%s1574_s1 + $0x58] sm:$0xff] (!%p163_p2)   ;;  %v1311_v17 = vld [vmem:[%s1574_s1 + $0x60] sm:$0xff] (!%p163_p2)   ;;  %v1315_v21 = vld [vmem:[%s1574_s1 + $0x68] sm:$0xff] (!%p163_p2)  }
   0xb   : > { %v1308_v14 = vld [vmem:[%s1574_s1 + $0x98] sm:$0xff] (!%p163_p2)   ;;  %v1312_v18 = vld [vmem:[%s1574_s1 + $0xa0] sm:$0xff] (!%p163_p2)   ;;  %v1316_v22 = vld [vmem:[%s1574_s1 + $0xa8] sm:$0xff] (!%p163_p2)  }
   0xc   : > { %1046 = vmatpush3.bf16.msra.mxu0 (!%p163_p2), %v1300_v6  ;;  %v1309_v15 = vld [vmem:[%s1574_s1 + $0x18] sm:$0xff] (!%p163_p2)   ;;  %v1313_v19 = vld [vmem:[%s1574_s1 + $0x20] sm:$0xff] (!%p163_p2)   ;;  %v1317_v23 = vld [vmem:[%s1574_s1 + $0x28] sm:$0xff] (!%p163_p2)  }
   0xd   : > { %1068 = vmatpush3.bf16.msra.mxu1 %v1301_v7  ;;  %1047 = vmatprep.subr.bf16.mxu0 %v1302_v8  ;;  %s1579_s16 = smov (!%p187_p3, %s962_s16), 1  ;;  %v1318_v24 = vld [vmem:[%s1574_s1 + $0xf0] sm:$0xff]   ;;  %v1322_v28 = vld [vmem:[%s1574_s1 + $0xf8] sm:$0xff]   ;;  %v564_v34 = vld [vmem:[%s1575_s2] sm:$0xff]  ;;  %v1342_v7 = vmov 0.0  }
   0xe   : > { %1069 = vmatprep.subr.bf16.mxu1 %v1303_v9  ;;  %v1319_v25 = vld [vmem:[%s1574_s1 + $0x70] sm:$0xff]   ;;  %s1042_s23 = sshll.u32 %s1579_s16, 3  ;;  %v1323_v29 = vld [vmem:[%s1574_s1 + $0x78] sm:$0xff]   ;;  %v565_v39 = vld [vmem:[%s1575_s2 + $0x8] sm:$0xff]  ;;  %s969_s29 = sshll.u32 %s1579_s16, 1 }
   0xf   : > { %v1320_v26 = vld [vmem:[%s1574_s1 + $0xb0] sm:$0xff]   ;;  %s191_s6 = scalar_lea.vmem %s1573_s0, %s1042_s23  ;;  %v1324_v30 = vld [vmem:[%s1574_s1 + $0xb8] sm:$0xff]   ;;  %v1224_v41 = vpack.c.bf16 %v565_v39, %v564_v34  ;;  %v568_v53 = vld [vmem:[%s1575_s2 + $0x20] sm:$0xff] }
  0x10   : > { %1048 = vmatpush3.bf16.msra.mxu0 %v1304_v10  ;;  %v1321_v27 = vld [vmem:[%s1574_s1 + $0x30] sm:$0xff]   ;;  %v1325_v31 = vld [vmem:[%s1574_s1 + $0x38] sm:$0xff]   ;;  %v230_v32 = vld [vmem:[%s191_s6] sm:$0x77] }
  0x11   : > { %1070 = vmatpush3.bf16.msra.mxu1 %v1305_v11  ;;  %1049 = vmatprep.subr.bf16.mxu0 %v1306_v12  ;;  %v197_v33 = vld [vmem:[%s191_s6] sm:$0x33]  ;;  %v1002_v35 = vcombine.low %v230_v32, %v230_v32  ;;  %v1003_v36 = vcombine.high %v230_v32, %v230_v32  ;;  %v566_v46 = vld [vmem:[%s1575_s2 + $0x10] sm:$0xff]  ;;  %v567_v47 = vld [vmem:[%s1575_s2 + $0x18] sm:$0xff]  ;;  %s195_s6 = scalar_lea.vmem %s1577_s4, %s969_s29 }
  0x12   : > { %1071 = vmatprep.subr.bf16.mxu1 %v1307_v13  ;;  %v1020_v37 = vcombine.low %v197_v33, %v197_v33  ;;  %v1021_v38 = vcombine.high %v197_v33, %v197_v33  ;;  %v1227_v52 = vpack.c.bf16 %v567_v47, %v566_v46  ;;  %v569_v54 = vld [vmem:[%s1575_s2 + $0x28] sm:$0xff]  ;;  %v570_v56 = vld [vmem:[%s1575_s2 + $0x30] sm:$0xff]  ;;  %v571_v57 = vld [vmem:[%s1575_s2 + $0x38] sm:$0xff] }
  0x13   : > { %v277_v42 = vshrl.u32 %v1003_v36, 16  ;;  %v279_v43 = vshll.u32 %v1003_v36, 16  ;;  %v270_v44 = vshrl.u32 %v1002_v35, 16  ;;  %v272_v45 = vshll.u32 %v1002_v35, 16  ;;  %v572_v59 = vld [vmem:[%s1575_s2 + $0x40] sm:$0xff]  ;;  %v573_v60 = vld [vmem:[%s1575_s2 + $0x48] sm:$0xff] }
  0x14   : > { %1050 = vmatpush3.bf16.msra.mxu0 %v1308_v14  ;;  %556 = vmatprep.mubr.bf16.mxu1 %v1021_v38  ;;  %v1230_v55 = vpack.c.bf16 %v569_v54, %v568_v53  ;;  %v1233_v58 = vpack.c.bf16 %v571_v57, %v570_v56  ;;  %v1236_v61 = vpack.c.bf16 %v573_v60, %v572_v59  ;;  %v574_v62 = vld [vmem:[%s1575_s2 + $0x50] sm:$0xff]  ;;  %v575_v63 = vld [vmem:[%s1575_s2 + $0x58] sm:$0xff]  ;;  %v576_v1 = vld [vmem:[%s1575_s2 + $0x60] sm:$0xff]  ;;  %v896_v53 = vlaneseq }
  0x15   : > { %1072 = vmatpush3.bf16.msra.mxu1 %v1309_v15  ;;  %1051 = vmatprep.subr.bf16.mxu0 %v1310_v16  ;;  %v281_v48 = vrot.slane %v279_v43, 1  ;;  %v274_v49 = vrot.slane %v272_v45, 1  ;;  %v1239_v0 = vpack.c.bf16 %v575_v63, %v574_v62  ;;  %v577_v2 = vld [vmem:[%s1575_s2 + $0x68] sm:$0xff]  ;;  %v578_v4 = vld [vmem:[%s1575_s2 + $0x70] sm:$0xff]  ;;  %v579_v5 = vld [vmem:[%s1575_s2 + $0x78] sm:$0xff] }
  0x16   : > { %1073 = vmatprep.subr.bf16.mxu1 %v1311_v17  ;;  %v1242_v3 = vpack.c.bf16 %v577_v2, %v576_v1  ;;  %v1245_v6 = vpack.c.bf16 %v579_v5, %v578_v4  ;;  %v897_v54 = vshrl.u32 %v896_v53, 7 }
  0x17   : > { %v282_v50 = vor.u32 %v281_v48, %v277_v42  ;;  %v275_v51 = vor.u32 %v274_v49, %v270_v44 }
  0x18   : > { %1052 = vmatpush3.bf16.msra.mxu0 %v1312_v18 }
  0x19   : > { %1074 = vmatpush3.bf16.msra.mxu1 %v1313_v19  ;;  %1053 = vmatprep.subr.bf16.mxu0 %v1314_v20  ;;  %v580_v20 = vld [vmem:[%s1576_s3] sm:$0xff] }
  0x1a   : > { %1075 = vmatprep.subr.bf16.mxu1 %v1315_v21  ;;  %413 = vmatprep.mubr.bf16.mxu0 %v282_v50  ;;  %v581_v21 = vld [vmem:[%s1576_s3 + $0x8] sm:$0xff] }
  0x1c   : > { %1054 = vmatpush3.bf16.msra.mxu0 %v1316_v22  ;;  %v582_v22 = vld [vmem:[%s1576_s3 + $0x10] sm:$0xff] }
  0x1d   : > { %1076 = vmatpush3.bf16.msra.mxu1 %v1317_v23  ;;  %1055 = vmatprep.subr.bf16.mxu0 %v1318_v24  ;;  %v1272_v23 = vpack.c.bf16 %v581_v21, %v580_v20  ;;  %v583_v24 = vld [vmem:[%s1576_s3 + $0x18] sm:$0xff] }
  0x1e   : > { %1077 = vmatprep.subr.bf16.mxu1 %v1319_v25  ;;  %v1275_v25 = vpack.c.bf16 %v583_v24, %v582_v22 }
  0x20   : > { %1056 = vmatpush3.bf16.msra.mxu0 %v1320_v26 }
  0x21   : > { %1078 = vmatpush3.bf16.msra.mxu1 %v1321_v27  ;;  %1057 = vmatprep.subr.bf16.mxu0 %v1322_v28 }
  0x22   : > { %1079 = vmatprep.subr.bf16.mxu1 %v1323_v29 }
  0x24   : > { %1058 = vmatpush3.bf16.msra.mxu0 %v1324_v30 }
  0x25   : > { %1080 = vmatpush3.bf16.msra.mxu1 %v1325_v31  ;;  %1223 = vmatprep.subr.bf16.mxu0 %v1340_v40 }
  0x26   : > { %1247 = vmatprep.subr.bf16.mxu1 %v1340_v40 }
  0x27   : > { %414 = vmatmul.mubr.bf16.vlgmr.msra.gmra.mrb[0].mxu0 %v275_v51 }
  0x28   : > { %557 = vmatmul.mubr.bf16.vlgmr.msra.gmra.mrb[0].mxu1 %v1020_v37  ;;  %1225 = vmatpush3.bf16.msra.mxu0 %v1224_v41 }
  0x29   : > { %1249 = vmatpush3.bf16.msra.mxu1 %v1224_v41  ;;  %1226 = vmatprep.subr.bf16.mxu0 %v1340_v40 }
  0x2a   : > { %1250 = vmatprep.subr.bf16.mxu1 %v1340_v40  ;;  %1163 = vmatprep.mubr.msk.f32.mxu0 %vm1341_vm0, %v1342_v7 }
  0x2b   : > { %1198 = vmatprep.mubr.msk.f32.mxu1 %vm1341_vm0, %v1342_v7 }
  0x2c   : > { %1228 = vmatpush3.bf16.msra.mxu0 %v1227_v52 }
  0x2d   : > { %1252 = vmatpush3.bf16.msra.mxu1 %v1227_v52  ;;  %1229 = vmatprep.subr.bf16.mxu0 %v1340_v40 }
  0x2e   : > { %1253 = vmatprep.subr.bf16.mxu1 %v1340_v40 }
  0x30   : > { %1231 = vmatpush3.bf16.msra.mxu0 %v1230_v55 }
  0x31   : > { %1255 = vmatpush3.bf16.msra.mxu1 %v1230_v55  ;;  %1232 = vmatprep.subr.bf16.mxu0 %v1340_v40  ;;  %v898_v55 = vsub.s32 0, %v897_v54 }
  0x32   : > { %1256 = vmatprep.subr.bf16.mxu1 %v1340_v40 }
  0x34   : > { %1234 = vmatpush3.bf16.msra.mxu0 %v1233_v58 }
  0x35   : > { %1258 = vmatpush3.bf16.msra.mxu1 %v1233_v58  ;;  %1235 = vmatprep.subr.bf16.mxu0 %v1340_v40 }
  0x36   : > { %1259 = vmatprep.subr.bf16.mxu1 %v1340_v40 }
  0x38   : > { %1237 = vmatpush3.bf16.msra.mxu0 %v1236_v61 }
  0x39   : > { %1261 = vmatpush3.bf16.msra.mxu1 %v1236_v61  ;;  %1238 = vmatprep.subr.bf16.mxu0 %v1340_v40 }
  0x3a   : > { %1262 = vmatprep.subr.bf16.mxu1 %v1340_v40 }
  0x3c   : > { %1240 = vmatpush3.bf16.msra.mxu0 %v1239_v0 }
  0x3d   : > { %1264 = vmatpush3.bf16.msra.mxu1 %v1239_v0  ;;  %1241 = vmatprep.subr.bf16.mxu0 %v1340_v40 }
  0x3e   : > { %1265 = vmatprep.subr.bf16.mxu1 %v1340_v40 }
  0x40   : > { %1243 = vmatpush3.bf16.msra.mxu0 %v1242_v3 }
  0x41   : > { %1267 = vmatpush3.bf16.msra.mxu1 %v1242_v3  ;;  %1244 = vmatprep.subr.bf16.mxu0 %v1340_v40 }
  0x42   : > { %1268 = vmatprep.subr.bf16.mxu1 %v1340_v40 }
  0x44   : > { %1246 = vmatpush3.bf16.msra.mxu0 %v1245_v6 }
  0x45   : > { %1270 = vmatpush3.bf16.msra.mxu1 %v1245_v6  ;;  %1271 = vmatprep.subr.bf16.mxu0 %v1340_v40 }
  0x46   : > { %1277 = vmatprep.subr.bf16.mxu1 %v1340_v40 }
  0xfa   : > { %v1059_v13 = vpop.f32.mrb[0].mxu0 }
  0xfb   : > { %v1081_v8 = vpop.f32.mrb[0].mxu1  ;;  %v1060_v14 = vpop.f32.mrb[1].mxu0 }
  0xfc   : > { %v1082_v9 = vpop.f32.mrb[1].mxu1  ;;  %v1061_v15 = vadd.f32 %v1060_v14, %v1059_v13  ;;  %v1062_v16 = vpop.f32.mrb[2].mxu0 }
  0xfd   : > { %v1083_v10 = vadd.f32 %v1082_v9, %v1081_v8  ;;  %v1084_v11 = vpop.f32.mrb[2].mxu1  ;;  %v1063_v17 = vpop.f32.mrb[3].mxu0 }
  0xfe   : > { %v1085_v12 = vpop.f32.mrb[3].mxu1 }
  0xff   : > { %v559_v18 = vadd.f32 %v1083_v10, %v1061_v15 }
 0x101   : > { %v662_v19 = vmul.f32 %v559_v18, %v559_v18  ;;  %1164 = vmatmul.mubr.f32.vlgmr.msra.gmra.mrb[4].mxu0 %v559_v18 }
 0x102   : > { %1209 = vmatprep.mubr.msk.f32.mxu0 %vm1341_vm0, %v1342_v7  ;;  %1273 = vmatpush3.bf16.msra.mxu0 %v1272_v23 }
 0x103   : > { %1199 = vmatmul.mubr.f32.vlgmr.msra.gmra.mrb[4].mxu1 %v662_v19  ;;  %1274 = vmatprep.subr.bf16.mxu0 %v1340_v40 }
 0x104   : > { %1220 = vmatprep.mubr.msk.f32.mxu1 %vm1341_vm0, %v1342_v7  ;;  %1279 = vmatpush3.bf16.msra.mxu1 %v1272_v23 }
 0x105   : > { %1280 = vmatprep.subr.bf16.mxu1 %v1340_v40 }
 0x106   : > { %1276 = vmatpush3.bf16.msra.mxu0 %v1275_v25 }
 0x108   : > { %1282 = vmatpush3.bf16.msra.mxu1 %v1275_v25 }
 0x1d4   : > { %v650_v26 = vpop.f32.mrb[4].mxu0 }
 0x1d5   : > { %v655_v27 = vsel %vm654_vm1, %v650_v26, 0.0  ;;  %v1165_v28 = vpop.f32.mrb[5].mxu0 }
 0x1d6   : > { %v656_v29 = vrot.slane %v655_v27, 4  ;;  %v729_v30 = vpop.f32.mrb[4].mxu1 }
 0x1d7   : > { %v733_v31 = vsel %vm654_vm1, %v729_v30, 0.0  ;;  %v1200_v32 = vpop.f32.mrb[5].mxu1 }
 0x1d8   : > { %v657_v33 = vadd.f32 %v656_v29, %v655_v27  ;;  %v734_v34 = vrot.slane %v733_v31, 4 }
 0x1da   : > { %v658_v35 = vrot.slane %v657_v33, 2  ;;  %v735_v36 = vadd.f32 %v734_v34, %v733_v31 }
 0x1dc   : > { %v659_v37 = vadd.f32 %v658_v35, %v657_v33  ;;  %v736_v38 = vrot.slane %v735_v36, 2 }
 0x1de   : > { %v660_v39 = vrot.slane %v659_v37, 1  ;;  %v737_v41 = vadd.f32 %v736_v38, %v735_v36 }
 0x1e0   : > { %v661_v42 = vadd.f32 %v660_v39, %v659_v37  ;;  %v738_v40 = vrot.slane %v737_v41, 1 }
 0x1e2   : > { %v740_v43 = vmul.f32 0.0625, %v661_v42  ;;  %v739_v44 = vadd.f32 %v738_v40, %v737_v41 }
 0x1e4   : > { %v742_v45 = vmul.f32 %v740_v43, %v740_v43  ;;  %v741_v46 = vmul.f32 0.0625, %v739_v44  ;;  %v747_v50 = vsub.f32 0.0, %v740_v43 }
 0x1e6   : > { %v743_v47 = vsub.f32 %v741_v46, %v742_v45 }
 0x1e8   : > { %v744_v48 = vmax.f32 %v743_v47, 0.0 }
 0x1ea   : > { %v745_v49 = vadd.f32 1e-05, %v744_v48 }
 0x1ec   : > { %1330 = vrsqrt.f32 %v745_v49 }
 0x1f6   : > { %v1331_v51 = vpop.eup %1330 }
 0x1f7   : > { %1210 = vmatmul.mubr.msk.f32.vlgmr.msra.gmra.mrb[6].mxu0 %vm749_vm2, %v1331_v51  ;;  %v748_v52 = vmul.f32 %v1331_v51, %v747_v50 }
 0x1f9   : > { %1221 = vmatmul.mubr.msk.f32.vlgmr.msra.gmra.mrb[6].mxu1 %vm749_vm2, %v748_v52 }
 0x2ca   : > { %v819_v56 = vpop.f32.mrb[6].mxu0 }
 0x2cb   : > { %v899_v57 = vrot.slane %v819_v56, %v898_v55  ;;  %v1211_v58 = vpop.f32.mrb[7].mxu0 }
 0x2cc   : > { %v892_v59 = vpop.f32.mrb[6].mxu1 }
 0x2cd   : > { %v900_v60 = vmul.f32 %v899_v57, %v559_v18  ;;  %v904_v61 = vrot.slane %v892_v59, %v898_v55  ;;  %v1222_v62 = vpop.f32.mrb[7].mxu1 }
 0x2cf   : > { %v905_v63 = vadd.f32 %v904_v61, %v900_v60 }
 0x2d1   : > { %v906_v0 = vmax.f32 %v905_v63, 0.0 }
 0x2d3   : > { %v907_v1 = vpack.c.bf16 %v906_v0, %v906_v0 }
 0x2d5   : > { %908 = vst [vmem:[%s195_s6] sm:$0x3] %v907_v1 }
 0x2d6 PF: > { %s14_s15 = sadd.s32 1, %s1338_s15  }
 0x2d7   : > { %p11_p4 = scmp.ge.s32.totalorder %s14_s15, 4  }
 0x2d9   :  { %13 = sbr.rel (!%p11_p4) target bundleno = 1 (0x1), region = 67 }

// kernel: tile.78
= control target key start
LH: loop header
LB: loop body
LE: loop exit
PB: predicated region body
PF: predicated region fallthrough
CT: control target
= control target key end

     0   :  { %s22_s0 = inlined_call_operand.vmem [shape: f32[32], index: 0, kind: input, shape index: {}]   ;;  %s23_s1 = inlined_call_operand.vmem [shape: f32[4,32], index: 1, kind: output, shape index: {}]  }
   0x1   :  { %v4_v0 = vld [vmem:[%s22_s0] ss:$0 sm:$0xff] }
   0x2   :  { %5 = vst [vmem:[%s23_s1] sm:$0xf] %v4_v0 }

// kernel: tile.79
= control target key start
LH: loop header
LB: loop body
LE: loop exit
PB: predicated region body
PF: predicated region fallthrough
CT: control target
= control target key end

     0   :  { %vm7_vm0 = vcmask 261120   ;;  %s37_s8 = smov 32   ;;  %s38_s9 = smov 64   ;;  %vm13_vm1 = vcmask 1048320   ;;  %vm19_vm2 = vcmask 785920   ;;  %vm25_vm3 = vcmask 523520   ;;  %s55_s0 = inlined_call_operand.vmem [shape: f32[4,32], index: 0, kind: input, shape index: {}]   ;;  %s56_s1 = inlined_call_operand.vmem [shape: f32[1,128], index: 1, kind: output, shape index: {}]  }
   0x1   :  { %v4_v0 = vld [vmem:[%s55_s0] sm:$0xf]  ;;  %s36_s0 = smov 96  }
   0x2   :  { %5 = vst [vmem:[#allocation1] sm:$0xf] %v4_v0 }
   0x9   :  { %v10_v1 = vld [vmem:[#allocation1 + $0x3] sm:$0x1]   ;;  %v22_v2 = vld [vmem:[#allocation1 + $0x1] sm:$0x1]   ;;  %v6_v3 = vld [vmem:[#allocation1] sm:$0x1]  }
   0xa   :  { %11 = vrot.lane.b32.xlu0 %v10_v1, %s36_s0  ;;  %23 = vrot.lane.b32.xlu1 %v22_v2, %s37_s8  ;;  %v16_v4 = vld [vmem:[#allocation1 + $0x2] sm:$0x1]   ;;  %8 = vst.msk [vmem:[#allocation0] sm:$0x1] %vm7_vm0, %v6_v3  }
   0xe   :  { %17 = vrot.lane.b32.xlu0 %v16_v4, %s38_s9 }
  0x7c   :  { %v12_v5 = vpop.permute.xlu0 %11   ;;  %v24_v6 = vpop.permute.xlu1 %23  }
  0x7d   :  { %14 = vst.msk [vmem:[#allocation0] sm:$0x1] %vm13_vm1, %v12_v5  }
  0x80   :  { %v18_v7 = vpop.permute.xlu0 %17  }
  0x81   :  { %20 = vst.msk [vmem:[#allocation0] sm:$0x1] %vm19_vm2, %v18_v7  }
  0x82   :  { %26 = vst.msk [vmem:[#allocation0] sm:$0x1] %vm25_vm3, %v24_v6  }
  0x89   :  { %v30_v8 = vld [vmem:[#allocation0] sm:$0x1] }
  0x8a   :  { %32 = vst [vmem:[%s56_s1] sm:$0x1] %v30_v8 }

// kernel: encoder_forward.10
= control target key start
LH: loop header
LB: loop body
LE: loop exit
PB: predicated region body
PF: predicated region fallthrough
CT: control target
= control target key end

     0   :  { %s2437_s18 = smov 0   ;;  %s2874_s0 = inlined_call_operand.vmem [shape: bf16[2,6,128], index: 0, kind: input, shape index: {}]   ;;  %s2875_s1 = inlined_call_operand.vmem [shape: bf16[3,128,128], index: 1, kind: input, shape index: {}]   ;;  %s2876_s2 = inlined_call_operand.vmem [shape: bf16[3,128,128], index: 2, kind: input, shape index: {}]   ;;  %s2877_s3 = inlined_call_operand.vmem [shape: f32[128,32], index: 3, kind: input, shape index: {}]   ;;  %s2878_s4 = inlined_call_operand.vmem [shape: f32[32,128], index: 4, kind: input, shape index: {}]   ;;  %s2879_s5 = inlined_call_operand.vmem [shape: bf16[2,4,128], index: 5, kind: output, shape index: {}]  }
   0x1 LB: > { %s1622_s19 = sadd.s32 4294967295, %s2402_s18   ;;  %p1626_p0 = scmp.ge.s32.totalorder %s2402_s18, 1  ;;  %s2402_s18 = sphi %s2437_s18, %s15_s18  }
   0x2   : > { %p186_p1 = scmp.lt.s32.totalorder %s2402_s18, 3 }
   0x4   : > { %p187_p2 = pnand %p1626_p0, %p186_p1 }
   0x5   : > { %v2342_v0 = vld [vmem:[%s2875_s1 + $0x40] sm:$0xff] (!%p187_p2)   ;;  %v2404_v1 = vmov (!%p187_p2), 0.0   ;;  %v2343_v2 = vld [vmem:[%s2875_s1 + $0x48] sm:$0xff] (!%p187_p2)   ;;  %vm2405_vm0 = vmmov (!%p187_p2), 0   ;;  %p212_p3 = scmp.lt.s32.totalorder (!%p187_p2), %s1622_s19, 1  ;;  %v2406_v3 = vmov (!%p187_p2), 0.0|0.0  }
   0x6   : > { %190 = sbr.rel (%p187_p2) target bundleno = 1615 (0x64f), region = 40  ;;  %1891 = vmatprep.subr.bf16.mxu0 (!%p187_p2), %v2404_v1  ;;  %1907 = vmatprep.mubr.msk.bf16.mxu0 (!%p187_p2), %vm2405_vm0, %v2404_v1  ;;  %v2344_v4 = vld [vmem:[%s2875_s1 + $0x50] sm:$0xff] (!%p187_p2)   ;;  %v2345_v5 = vld [vmem:[%s2875_s1 + $0x58] sm:$0xff] (!%p187_p2)   ;;  %v2346_v6 = vld [vmem:[%s2875_s1 + $0x60] sm:$0xff] (!%p187_p2)   ;;  %vm645_vm1 = vcmask (!%p187_p2), 257024   ;;  %vm740_vm2 = vcmask (!%p187_p2), 261120  }
   0x7   : > { %1892 = vmatpush3.bf16.msra.mxu0 (!%p187_p2), %v2342_v0  ;;  %1983 = vmatprep.mubr.msk.f32.mxu1 (!%p187_p2), %vm2405_vm0, %v2404_v1  ;;  %v2347_v9 = vld [vmem:[%s2875_s1 + $0x68] sm:$0xff] (!%p187_p2)   ;;  %v2348_v11 = vld [vmem:[%s2875_s1 + $0x70] sm:$0xff] (!%p187_p2)   ;;  %v221_v14 = vld [vmem:[%s2877_s3] sm:$0xff] (!%p187_p2)  ;;  %vm907_vm3 = vcmask (!%p187_p2), 1040384   ;;  %vm908_vm4 = vsmask.f32 (!%p187_p2), 256 }
   0x8   : > { %1893 = vmatprep.subr.bf16.mxu0 (!%p187_p2), %v2404_v1  ;;  %2195 = vmatprep.subr.bf16.mxu1 (!%p187_p2), %v2406_v3  ;;  %v222_v15 = vld [vmem:[%s2877_s3 + $0x8] sm:$0xff] (!%p187_p2)  ;;  %v2349_v16 = vld [vmem:[%s2875_s1 + $0x78] sm:$0xff] (!%p187_p2)   ;;  %v223_v18 = vld [vmem:[%s2877_s3 + $0x10] sm:$0xff] (!%p187_p2)  ;;  %vm911_vm5 = vcmask (!%p187_p2), 1042432   ;;  %vm912_vm6 = vsmask.f32 (!%p187_p2), 2304 }
   0x9   : > { %v2500_v17 = vpack.c.bf16 (!%p187_p2), %v222_v15, %v221_v14  ;;  %v224_v19 = vld [vmem:[%s2877_s3 + $0x18] sm:$0xff] (!%p187_p2)  ;;  %v225_v22 = vld [vmem:[%s2877_s3 + $0x20] sm:$0xff] (!%p187_p2)  ;;  %v226_v23 = vld [vmem:[%s2877_s3 + $0x28] sm:$0xff] (!%p187_p2) }
   0xa   : > { %v2510_v20 = vpack.c.bf16 (!%p187_p2), %v224_v19, %v223_v18  ;;  %v2351_v24 = vld [vmem:[%s2875_s1] sm:$0xff] (!%p187_p2)   ;;  %v227_v25 = vld [vmem:[%s2877_s3 + $0x30] sm:$0xff] (!%p187_p2)  ;;  %v228_v26 = vld [vmem:[%s2877_s3 + $0x38] sm:$0xff] (!%p187_p2)  ;;  %v2533_v28 = vpack.c.bf16 (!%p187_p2), %v226_v23, %v225_v22 }
   0xb   : > { %1894 = vmatpush3.bf16.msra.mxu0 (!%p187_p2), %v2343_v2  ;;  %2197 = vmatpush3.bf16.msra.mxu1 (!%p187_p2), %v2500_v17  ;;  %v2352_v27 = vld [vmem:[%s2875_s1 + $0x8] sm:$0xff] (!%p187_p2)   ;;  %v229_v29 = vld [vmem:[%s2877_s3 + $0x40] sm:$0xff] (!%p187_p2)  ;;  %v2353_v31 = vld [vmem:[%s2875_s1 + $0x10] sm:$0xff] (!%p187_p2)   ;;  %v2549_v32 = vpack.c.bf16 (!%p187_p2), %v228_v26, %v227_v25 }
   0xc   : > { %1895 = vmatprep.subr.bf16.mxu0 (!%p187_p2), %v2404_v1  ;;  %2198 = vmatprep.subr.bf16.mxu1 (!%p187_p2), %v2406_v3  ;;  %v230_v30 = vld [vmem:[%s2877_s3 + $0x48] sm:$0xff] (!%p187_p2)  ;;  %v231_v33 = vld [vmem:[%s2877_s3 + $0x50] sm:$0xff] (!%p187_p2)  ;;  %v232_v34 = vld [vmem:[%s2877_s3 + $0x58] sm:$0xff] (!%p187_p2) }
   0xd   : > { %s2881_s19 = smov (!%p212_p3, %s1622_s19), 1  ;;  %v2354_v35 = vld [vmem:[%s2875_s1 + $0x18] sm:$0xff]   ;;  %v2563_v36 = vpack.c.bf16 %v230_v30, %v229_v29  ;;  %v233_v37 = vld [vmem:[%s2877_s3 + $0x60] sm:$0xff]  ;;  %v234_v38 = vld [vmem:[%s2877_s3 + $0x68] sm:$0xff]  ;;  %v2574_v39 = vpack.c.bf16 %v232_v34, %v231_v33 }
   0xe   : > { %s1627_s26 = sshll.u32 %s2881_s19, 2  ;;  %v2355_v40 = vld [vmem:[%s2875_s1 + $0x20] sm:$0xff]   ;;  %v2582_v41 = vpack.c.bf16 %v234_v38, %v233_v37  ;;  %v235_v42 = vld [vmem:[%s2877_s3 + $0x70] sm:$0xff]  ;;  %v236_v43 = vld [vmem:[%s2877_s3 + $0x78] sm:$0xff]  ;;  %s1628_s24 = sshll.u32 %s2881_s19, 1 }
   0xf   : > { %1896 = vmatpush3.bf16.msra.mxu0 %v2344_v4  ;;  %s2472_s6 = scalar_lea.vmem %s2874_s0, %s1627_s26  ;;  %2200 = vmatpush3.bf16.msra.mxu1 %v2510_v20  ;;  %v2356_v44 = vld [vmem:[%s2875_s1 + $0x28] sm:$0xff]   ;;  %v2596_v45 = vpack.c.bf16 %v236_v43, %v235_v42  ;;  %v2357_v46 = vld [vmem:[%s2875_s1 + $0x30] sm:$0xff]   ;;  %v2358_v47 = vld [vmem:[%s2875_s1 + $0x38] sm:$0xff]   ;;  %s219_s27 = scalar_lea.vmem %s2879_s5, %s1628_s24 }
  0x10   : > { %1897 = vmatprep.subr.bf16.mxu0 %v2404_v1  ;;  %v2478_v7 = vld [vmem:[%s2472_s6] sm:$0x7]  ;;  %2201 = vmatprep.subr.bf16.mxu1 %v2406_v3  ;;  %v2360_v50 = vld [vmem:[%s2875_s1 + $0x88] sm:$0xff]   ;;  %v2361_v51 = vld [vmem:[%s2875_s1 + $0x90] sm:$0xff]  }
  0x11   : > { %v1645_v8 = vcombine.low %v2478_v7, %v2478_v7  ;;  %v241_v48 = vld [vmem:[%s2472_s6] sm:$0x3]  ;;  %v2362_v52 = vld [vmem:[%s2875_s1 + $0x98] sm:$0xff]   ;;  %v2364_v54 = vld [vmem:[%s2875_s1 + $0xa8] sm:$0xff]  }
  0x12   : > { %v2359_v49 = vld [vmem:[%s2875_s1 + $0x80] sm:$0xff]   ;;  %v2365_v55 = vld [vmem:[%s2875_s1 + $0xb0] sm:$0xff]   ;;  %v2366_v57 = vld [vmem:[%s2875_s1 + $0xb8] sm:$0xff]  }
  0x13   : > { %1898 = vmatpush3.bf16.msra.mxu0 %v2345_v5  ;;  %v282_v10 = vshll.u32 %v1645_v8, 16  ;;  %v280_v12 = vshrl.u32 %v1645_v8, 16  ;;  %2203 = vmatpush3.bf16.msra.mxu1 %v2533_v28  ;;  %v2363_v53 = vld [vmem:[%s2875_s1 + $0xa0] sm:$0xff]   ;;  %v238_v2 = vld [vmem:[%s2878_s4 + $0x8] sm:$0xff]  ;;  %v239_v4 = vld [vmem:[%s2878_s4 + $0x10] sm:$0xff] }
  0x14   : > { %1899 = vmatprep.subr.bf16.mxu0 %v2404_v1  ;;  %2204 = vmatprep.subr.bf16.mxu1 %v2406_v3  ;;  %v2367_v56 = vld [vmem:[%s2472_s6] ss:$0 sps:$4 sm:$0x66]   ;;  %vm909_vm7 = vmand %vm907_vm3, %vm908_vm4 }
  0x15   : > { %v284_v13 = vrot.slane %v282_v10, 1  ;;  %v484_v58 = vrot.slane %v2367_v56, 1  ;;  %v237_v0 = vld [vmem:[%s2878_s4] sm:$0xff]  ;;  %vm913_vm8 = vmand %vm911_vm5, %vm912_vm6 }
  0x16   : > { %v2698_v5 = vpack.c.bf16 %v238_v2, %v237_v0  ;;  %v2368_v43 = vld [vmem:[%s2876_s2 + $0x40] sm:$0xff]  }
  0x17   : > { %1900 = vmatpush3.bf16.msra.mxu0 %v2346_v6  ;;  %v285_v21 = vor.u32 %v284_v13, %v280_v12  ;;  %2206 = vmatpush3.bf16.msra.mxu1 %v2549_v32  ;;  %v240_v6 = vld [vmem:[%s2878_s4 + $0x18] sm:$0xff] }
  0x18   : > { %1901 = vmatprep.subr.bf16.mxu0 %v2404_v1  ;;  %2207 = vmatprep.subr.bf16.mxu1 %v2406_v3  ;;  %v2704_v8 = vpack.c.bf16 %v240_v6, %v239_v4 }
  0x1b   : > { %1902 = vmatpush3.bf16.msra.mxu0 %v2347_v9  ;;  %2209 = vmatpush3.bf16.msra.mxu1 %v2563_v36 }
  0x1c   : > { %1903 = vmatprep.subr.bf16.mxu0 %v2404_v1  ;;  %2210 = vmatprep.subr.bf16.mxu1 %v2406_v3 }
  0x1f   : > { %1904 = vmatpush3.bf16.msra.mxu0 %v2348_v11  ;;  %2212 = vmatpush3.bf16.msra.mxu1 %v2574_v39 }
  0x20   : > { %1905 = vmatprep.subr.bf16.mxu0 %v2404_v1  ;;  %2213 = vmatprep.subr.bf16.mxu1 %v2406_v3 }
  0x23   : > { %1906 = vmatpush3.bf16.msra.mxu0 %v2349_v16  ;;  %2215 = vmatpush3.bf16.msra.mxu1 %v2582_v41 }
  0x24   : > { %1911 = vmatprep.subr.bf16.mxu0 %v2404_v1  ;;  %2216 = vmatprep.subr.bf16.mxu1 %v2406_v3 }
  0x26   : > { %1908 = vmatmul.mubr.bf16.vlgmr.msra.gmra.mrb[0].mxu0 %v285_v21 }
  0x27   : > { %1912 = vmatpush3.bf16.msra.mxu0 %v2351_v24  ;;  %1927 = vmatprep.mubr.msk.bf16.mxu0 %vm2405_vm0, %v2404_v1 }
  0x28   : > { %1913 = vmatprep.subr.bf16.mxu0 %v2404_v1  ;;  %2218 = vmatpush3.bf16.msra.mxu1 %v2596_v45 }
  0x29   : > { %2219 = vmatprep.subr.bf16.mxu1 %v2406_v3 }
  0x2b   : > { %1914 = vmatpush3.bf16.msra.mxu0 %v2352_v27 }
  0x2c   : > { %1915 = vmatprep.subr.bf16.mxu0 %v2404_v1 }
  0x2f   : > { %1916 = vmatpush3.bf16.msra.mxu0 %v2353_v31 }
  0x30   : > { %1917 = vmatprep.subr.bf16.mxu0 %v2404_v1 }
  0x33   : > { %1918 = vmatpush3.bf16.msra.mxu0 %v2354_v35 }
  0x34   : > { %1919 = vmatprep.subr.bf16.mxu0 %v2404_v1 }
  0x37   : > { %1920 = vmatpush3.bf16.msra.mxu0 %v2355_v40 }
  0x38   : > { %1921 = vmatprep.subr.bf16.mxu0 %v2404_v1 }
  0x3b   : > { %1922 = vmatpush3.bf16.msra.mxu0 %v2356_v44  ;;  %v2369_v44 = vld [vmem:[%s2876_s2 + $0x48] sm:$0xff]  }
  0x3c   : > { %1923 = vmatprep.subr.bf16.mxu0 %v2404_v1 }
  0x3f   : > { %1924 = vmatpush3.bf16.msra.mxu0 %v2357_v46  ;;  %v2370_v46 = vld [vmem:[%s2876_s2 + $0x50] sm:$0xff]  }
  0x40   : > { %1925 = vmatprep.subr.bf16.mxu0 %v2404_v1 }
  0x43   : > { %1926 = vmatpush3.bf16.msra.mxu0 %v2358_v47  ;;  %v2371_v47 = vld [vmem:[%s2876_s2 + $0x58] sm:$0xff]  }
  0x44   : > { %1931 = vmatprep.subr.bf16.mxu0 %v2404_v1 }
  0x46   : > { %1928 = vmatmul.mubr.bf16.vlgmr.msra.gmra.mrb[0].mxu0 %v241_v48  ;;  %v2372_v48 = vld [vmem:[%s2876_s2 + $0x60] sm:$0xff]  }
  0x47   : > { %1932 = vmatpush3.bf16.msra.mxu0 %v2359_v49  ;;  %1947 = vmatprep.mubr.msk.bf16.mxu0 %vm2405_vm0, %v2404_v1  ;;  %v2373_v49 = vld [vmem:[%s2876_s2 + $0x68] sm:$0xff]  }
  0x48   : > { %1933 = vmatprep.subr.bf16.mxu0 %v2404_v1 }
  0x4b   : > { %1934 = vmatpush3.bf16.msra.mxu0 %v2360_v50  ;;  %v2374_v50 = vld [vmem:[%s2876_s2 + $0x70] sm:$0xff]  }
  0x4c   : > { %1935 = vmatprep.subr.bf16.mxu0 %v2404_v1 }
  0x4f   : > { %1936 = vmatpush3.bf16.msra.mxu0 %v2361_v51  ;;  %v2375_v51 = vld [vmem:[%s2876_s2 + $0x78] sm:$0xff]  }
  0x50   : > { %1937 = vmatprep.subr.bf16.mxu0 %v2404_v1 }
  0x53   : > { %1938 = vmatpush3.bf16.msra.mxu0 %v2362_v52  ;;  %v887_v52 = vlaneseq }
  0x54   : > { %1939 = vmatprep.subr.bf16.mxu0 %v2404_v1 }
  0x57   : > { %1940 = vmatpush3.bf16.msra.mxu0 %v2363_v53  ;;  %v888_v53 = vshrl.u32 %v887_v52, 7 }
  0x58   : > { %1941 = vmatprep.subr.bf16.mxu0 %v2404_v1 }
  0x5b   : > { %1942 = vmatpush3.bf16.msra.mxu0 %v2364_v54  ;;  %v2753_v54 = vsub.s32 0, %v888_v53 }
  0x5c   : > { %1943 = vmatprep.subr.bf16.mxu0 %v2404_v1 }
  0x5f   : > { %1944 = vmatpush3.bf16.msra.mxu0 %v2365_v55 }
  0x60   : > { %1945 = vmatprep.subr.bf16.mxu0 %v2404_v1 }
  0x63   : > { %1946 = vmatpush3.bf16.msra.mxu0 %v2366_v57 }
  0x64   : > { %2255 = vmatprep.subr.bf16.mxu0 %v2406_v3 }
  0x66   : > { %1948 = vmatmul.mubr.bf16.vlgmr.msra.gmra.mrb[0].mxu0 %v484_v58 }
  0x67   : > { %2257 = vmatpush3.bf16.msra.mxu0 %v2500_v17  ;;  %2135 = vmatprep.mubr.msk.f32.mxu0 %vm2405_vm0, %v2404_v1 }
  0x68   : > { %2258 = vmatprep.subr.bf16.mxu0 %v2406_v3 }
  0x6b   : > { %2260 = vmatpush3.bf16.msra.mxu0 %v2510_v20 }
  0x6c   : > { %2261 = vmatprep.subr.bf16.mxu0 %v2406_v3 }
  0x6f   : > { %2263 = vmatpush3.bf16.msra.mxu0 %v2533_v28 }
  0x70   : > { %2264 = vmatprep.subr.bf16.mxu0 %v2406_v3 }
  0x73   : > { %2266 = vmatpush3.bf16.msra.mxu0 %v2549_v32 }
  0x74   : > { %2267 = vmatprep.subr.bf16.mxu0 %v2406_v3 }
  0x77   : > { %2269 = vmatpush3.bf16.msra.mxu0 %v2563_v36 }
  0x78   : > { %2270 = vmatprep.subr.bf16.mxu0 %v2406_v3 }
  0x7b   : > { %2272 = vmatpush3.bf16.msra.mxu0 %v2574_v39 }
  0x7c   : > { %2273 = vmatprep.subr.bf16.mxu0 %v2406_v3 }
  0x7f   : > { %2275 = vmatpush3.bf16.msra.mxu0 %v2582_v41 }
  0x80   : > { %2276 = vmatprep.subr.bf16.mxu0 %v2406_v3 }
  0x83   : > { %2278 = vmatpush3.bf16.msra.mxu0 %v2596_v45 }
  0x84   : > { %2279 = vmatprep.subr.bf16.mxu0 %v2406_v3 }
 0x139   : > { %v2664_v59 = vpop.f32.mrb[0].mxu0 }
 0x13a   : > { %v1949_v60 = vpop.f32.mrb[1].mxu0  ;;  %1984 = vmatmul.mubr.f32.vlgmr.msra.gmra.mrb[0].mxu1 %v2664_v59  ;;  %v653_v63 = vmul.f32 %v2664_v59, %v2664_v59 }
 0x13b   : > { %2221 = vmatpush3.bf16.msra.mxu1 %v2500_v17  ;;  %v571_v61 = vpop.f32.mrb[2].mxu0  ;;  %2018 = vmatprep.mubr.msk.f32.mxu1 %vm2405_vm0, %v2404_v1 }
 0x13c   : > { %v1950_v62 = vpop.f32.mrb[3].mxu0  ;;  %2222 = vmatprep.subr.bf16.mxu1 %v2406_v3 }
 0x13f   : > { %2224 = vmatpush3.bf16.msra.mxu1 %v2510_v20 }
 0x140   : > { %2225 = vmatprep.subr.bf16.mxu1 %v2406_v3 }
 0x143   : > { %2227 = vmatpush3.bf16.msra.mxu1 %v2533_v28 }
 0x144   : > { %2228 = vmatprep.subr.bf16.mxu1 %v2406_v3 }
 0x147   : > { %2230 = vmatpush3.bf16.msra.mxu1 %v2549_v32 }
 0x148   : > { %2231 = vmatprep.subr.bf16.mxu1 %v2406_v3 }
 0x14b   : > { %2233 = vmatpush3.bf16.msra.mxu1 %v2563_v36 }
 0x14c   : > { %2234 = vmatprep.subr.bf16.mxu1 %v2406_v3 }
 0x14f   : > { %2236 = vmatpush3.bf16.msra.mxu1 %v2574_v39 }
 0x150   : > { %2237 = vmatprep.subr.bf16.mxu1 %v2406_v3 }
 0x153   : > { %2239 = vmatpush3.bf16.msra.mxu1 %v2582_v41 }
 0x154   : > { %2240 = vmatprep.subr.bf16.mxu1 %v2406_v3 }
 0x157   : > { %2242 = vmatpush3.bf16.msra.mxu1 %v2596_v45 }
 0x158   : > { %2243 = vmatprep.subr.bf16.mxu1 %v2406_v3 }
 0x15a   : > { %2019 = vmatmul.mubr.f32.vlgmr.msra.gmra.mrb[2].mxu1 %v653_v63 }
 0x15b   : > { %2029 = vmatprep.mubr.msk.f32.mxu1 %vm2405_vm0, %v2404_v1  ;;  %2245 = vmatpush3.bf16.msra.mxu1 %v2698_v5 }
 0x15c   : > { %2246 = vmatprep.subr.bf16.mxu1 %v2406_v3 }
 0x15f   : > { %2248 = vmatpush3.bf16.msra.mxu1 %v2704_v8 }
 0x160   : > { %2249 = vmatprep.subr.bf16.mxu1 %v2406_v3 }
 0x20d   : > { %v641_v9 = vpop.f32.mrb[0].mxu1 }
 0x20e   : > { %v1985_v10 = vpop.f32.mrb[1].mxu1  ;;  %v646_v11 = vsel %vm645_vm1, %v641_v9, 0.0 }
 0x20f   : > { %v647_v12 = vrot.slane %v646_v11, 4 }
 0x211   : > { %v648_v13 = vadd.f32 %v647_v12, %v646_v11 }
 0x213   : > { %v649_v14 = vrot.slane %v648_v13, 2 }
 0x215   : > { %v650_v15 = vadd.f32 %v649_v14, %v648_v13 }
 0x217   : > { %v651_v21 = vrot.slane %v650_v15, 1 }
 0x219   : > { %v652_v24 = vadd.f32 %v651_v21, %v650_v15  ;;  %v2376_v15 = vld [vmem:[%s2876_s2] sm:$0xff]   ;;  %v2379_v21 = vld [vmem:[%s2876_s2 + $0x18] sm:$0xff]  }
 0x21b   : > { %v731_v27 = vmul.f32 0.0625, %v652_v24  ;;  %v2382_v24 = vld [vmem:[%s2876_s2 + $0x30] sm:$0xff]  }
 0x21d   : > { %v733_v31 = vmul.f32 %v731_v27, %v731_v27  ;;  %v738_v38 = vsub.f32 0.0, %v731_v27  ;;  %v2385_v27 = vld [vmem:[%s2876_s2 + $0x88] sm:$0xff]  }
 0x22d   : > { %v720_v16 = vpop.f32.mrb[2].mxu1 }
 0x22e   : > { %v724_v18 = vsel %vm645_vm1, %v720_v16, 0.0  ;;  %v2020_v19 = vpop.f32.mrb[3].mxu1 }
 0x22f   : > { %v725_v22 = vrot.slane %v724_v18, 4  ;;  %v2378_v19 = vld [vmem:[%s2876_s2 + $0x10] sm:$0xff]  }
 0x231   : > { %v726_v23 = vadd.f32 %v725_v22, %v724_v18  ;;  %v2377_v18 = vld [vmem:[%s2876_s2 + $0x8] sm:$0xff]   ;;  %v2380_v22 = vld [vmem:[%s2876_s2 + $0x20] sm:$0xff]  }
 0x233   : > { %v727_v25 = vrot.slane %v726_v23, 2 }
 0x235   : > { %v728_v26 = vadd.f32 %v727_v25, %v726_v23  ;;  %v2381_v23 = vld [vmem:[%s2876_s2 + $0x28] sm:$0xff]   ;;  %v2383_v25 = vld [vmem:[%s2876_s2 + $0x38] sm:$0xff]  }
 0x237   : > { %v729_v29 = vrot.slane %v728_v26, 1 }
 0x239   : > { %v730_v30 = vadd.f32 %v729_v29, %v728_v26  ;;  %v2384_v26 = vld [vmem:[%s2876_s2 + $0x80] sm:$0xff]   ;;  %v2386_v29 = vld [vmem:[%s2876_s2 + $0x90] sm:$0xff]  }
 0x23b   : > { %v732_v33 = vmul.f32 0.0625, %v730_v30  ;;  %v2387_v30 = vld [vmem:[%s2876_s2 + $0x98] sm:$0xff]  }
 0x23d   : > { %v734_v34 = vsub.f32 %v732_v33, %v733_v31  ;;  %v2388_v31 = vld [vmem:[%s2876_s2 + $0xa0] sm:$0xff]   ;;  %v2389_v33 = vld [vmem:[%s2876_s2 + $0xa8] sm:$0xff]  }
 0x23f   : > { %v735_v35 = vmax.f32 %v734_v34, 0.0  ;;  %v2390_v34 = vld [vmem:[%s2876_s2 + $0xb0] sm:$0xff]  }
 0x241   : > { %v736_v37 = vadd.f32 1e-05, %v735_v35  ;;  %v2391_v35 = vld [vmem:[%s2876_s2 + $0xb8] sm:$0xff]  }
 0x243   : > { %2392 = vrsqrt.f32 %v736_v37 }
 0x24d   : > { %v2393_v40 = vpop.eup %2392 }
 0x24e   : > { %2030 = vmatmul.mubr.msk.f32.vlgmr.msra.gmra.mrb[4].mxu1 %vm740_vm2, %v2393_v40  ;;  %v739_v42 = vmul.f32 %v2393_v40, %v738_v38 }
 0x24f   : > { %2251 = vmatpush3.bf16.msra.mxu1 %v2698_v5  ;;  %2040 = vmatprep.mubr.msk.f32.mxu1 %vm2405_vm0, %v2404_v1 }
 0x250   : > { %2252 = vmatprep.subr.bf16.mxu1 %v2406_v3 }
 0x253   : > { %2254 = vmatpush3.bf16.msra.mxu1 %v2704_v8 }
 0x254   : > { %2043 = vmatprep.subr.bf16.mxu1 %v2404_v1 }
 0x256   : > { %2041 = vmatmul.mubr.msk.f32.vlgmr.msra.gmra.mrb[6].mxu1 %vm740_vm2, %v739_v42 }
 0x257   : > { %2044 = vmatpush3.bf16.msra.mxu1 %v2368_v43  ;;  %2059 = vmatprep.mubr.msk.bf16.mxu1 %vm2405_vm0, %v2404_v1 }
 0x258   : > { %2045 = vmatprep.subr.bf16.mxu1 %v2404_v1 }
 0x25b   : > { %2046 = vmatpush3.bf16.msra.mxu1 %v2369_v44 }
 0x25c   : > { %2047 = vmatprep.subr.bf16.mxu1 %v2404_v1 }
 0x25f   : > { %2048 = vmatpush3.bf16.msra.mxu1 %v2370_v46 }
 0x260   : > { %2049 = vmatprep.subr.bf16.mxu1 %v2404_v1 }
 0x263   : > { %2050 = vmatpush3.bf16.msra.mxu1 %v2371_v47 }
 0x264   : > { %2051 = vmatprep.subr.bf16.mxu1 %v2404_v1 }
 0x267   : > { %2052 = vmatpush3.bf16.msra.mxu1 %v2372_v48 }
 0x268   : > { %2053 = vmatprep.subr.bf16.mxu1 %v2404_v1 }
 0x26b   : > { %2054 = vmatpush3.bf16.msra.mxu1 %v2373_v49 }
 0x26c   : > { %2055 = vmatprep.subr.bf16.mxu1 %v2404_v1 }
 0x26f   : > { %2056 = vmatpush3.bf16.msra.mxu1 %v2374_v50 }
 0x270   : > { %2057 = vmatprep.subr.bf16.mxu1 %v2404_v1 }
 0x273   : > { %2058 = vmatpush3.bf16.msra.mxu1 %v2375_v51 }
 0x274   : > { %2063 = vmatprep.subr.bf16.mxu1 %v2404_v1 }
 0x321   : > { %v810_v55 = vpop.f32.mrb[4].mxu1 }
 0x322   : > { %v890_v56 = vrot.slane %v810_v55, %v2753_v54  ;;  %v2031_v57 = vpop.f32.mrb[5].mxu1 }
 0x324   : > { %v891_v58 = vmul.f32 %v890_v56, %v2664_v59 }
 0x329   : > { %v883_v60 = vpop.f32.mrb[6].mxu1 }
 0x32a   : > { %v895_v61 = vrot.slane %v883_v60, %v2753_v54  ;;  %v2042_v62 = vpop.f32.mrb[7].mxu1 }
 0x32c   : > { %v896_v63 = vadd.f32 %v895_v61, %v891_v58 }
 0x32e   : > { %v897_v0 = vmax.f32 %v896_v63, 0.0 }
 0x330   : > { %v898_v2 = vpack.c.bf16 %v897_v0, %v897_v0 }
 0x332   : > { %v900_v4 = vshrl.u32 %v898_v2, 16  ;;  %v903_v9 = vshll.u32 %v898_v2, 16 }
 0x334   : > { %v902_v6 = vrot.slane %v900_v4, 7 }
 0x336   : > { %v905_v10 = vor.u32 %v903_v9, %v902_v6 }
 0x338   : > { %v910_v11 = vsel %vm909_vm7, 0, %v905_v10 }
 0x339   : > { %v914_v12 = vsel %vm913_vm8, %v910_v11, 0 }
 0x33a   : > { %v951_v59 = vshll.u32 %v914_v12, 16  ;;  %v949_v13 = vshrl.u32 %v914_v12, 16  ;;  %v1150_v37 = vrot.slane %v914_v12, 1 }
 0x33c   : > { %v953_v14 = vrot.slane %v951_v59, 1 }
 0x33e   : > { %v954_v16 = vor.u32 %v953_v14, %v949_v13 }
 0x340   : > { %2060 = vmatmul.mubr.bf16.vlgmr.msra.gmra.mrb[8].mxu1 %v954_v16 }
 0x341   : > { %2064 = vmatpush3.bf16.msra.mxu1 %v2376_v15  ;;  %2079 = vmatprep.mubr.msk.bf16.mxu1 %vm2405_vm0, %v2404_v1 }
 0x342   : > { %2065 = vmatprep.subr.bf16.mxu1 %v2404_v1 }
 0x345   : > { %2066 = vmatpush3.bf16.msra.mxu1 %v2377_v18 }
 0x346   : > { %2067 = vmatprep.subr.bf16.mxu1 %v2404_v1 }
 0x349   : > { %2068 = vmatpush3.bf16.msra.mxu1 %v2378_v19 }
 0x34a   : > { %2069 = vmatprep.subr.bf16.mxu1 %v2404_v1 }
 0x34d   : > { %2070 = vmatpush3.bf16.msra.mxu1 %v2379_v21 }
 0x34e   : > { %2071 = vmatprep.subr.bf16.mxu1 %v2404_v1 }
 0x351   : > { %2072 = vmatpush3.bf16.msra.mxu1 %v2380_v22 }
 0x352   : > { %2073 = vmatprep.subr.bf16.mxu1 %v2404_v1 }
 0x355   : > { %2074 = vmatpush3.bf16.msra.mxu1 %v2381_v23 }
 0x356   : > { %2075 = vmatprep.subr.bf16.mxu1 %v2404_v1 }
 0x359   : > { %2076 = vmatpush3.bf16.msra.mxu1 %v2382_v24 }
 0x35a   : > { %2077 = vmatprep.subr.bf16.mxu1 %v2404_v1 }
 0x35d   : > { %2078 = vmatpush3.bf16.msra.mxu1 %v2383_v25 }
 0x35e   : > { %2083 = vmatprep.subr.bf16.mxu1 %v2404_v1 }
 0x360   : > { %2080 = vmatmul.mubr.bf16.vlgmr.msra.gmra.mrb[8].mxu1 %v914_v12  ;;  %v1561_v12 = vunpack.c.l.bf16 %v2478_v7 }
 0x361   : > { %2084 = vmatpush3.bf16.msra.mxu1 %v2384_v26  ;;  %2099 = vmatprep.mubr.msk.bf16.mxu1 %vm2405_vm0, %v2404_v1 }
 0x362   : > { %2085 = vmatprep.subr.bf16.mxu1 %v2404_v1  ;;  %v1563_v13 = vrot.slane %v1561_v12, 1 }
 0x365   : > { %2086 = vmatpush3.bf16.msra.mxu1 %v2385_v27 }
 0x366   : > { %2087 = vmatprep.subr.bf16.mxu1 %v2404_v1 }
 0x369   : > { %2088 = vmatpush3.bf16.msra.mxu1 %v2386_v29 }
 0x36a   : > { %2089 = vmatprep.subr.bf16.mxu1 %v2404_v1 }
 0x36d   : > { %2090 = vmatpush3.bf16.msra.mxu1 %v2387_v30 }
 0x36e   : > { %2091 = vmatprep.subr.bf16.mxu1 %v2404_v1 }
 0x371   : > { %2092 = vmatpush3.bf16.msra.mxu1 %v2388_v31 }
 0x372   : > { %2093 = vmatprep.subr.bf16.mxu1 %v2404_v1 }
 0x375   : > { %2094 = vmatpush3.bf16.msra.mxu1 %v2389_v33 }
 0x376   : > { %2095 = vmatprep.subr.bf16.mxu1 %v2404_v1 }
 0x379   : > { %2096 = vmatpush3.bf16.msra.mxu1 %v2390_v34 }
 0x37a   : > { %2097 = vmatprep.subr.bf16.mxu1 %v2404_v1 }
 0x37d   : > { %2098 = vmatpush3.bf16.msra.mxu1 %v2391_v35 }
 0x380   : > { %2100 = vmatmul.mubr.bf16.vlgmr.msra.gmra.mrb[8].mxu1 %v1150_v37 }
 0x453   : > { %v2825_v38 = vpop.f32.mrb[8].mxu1 }
 0x454   : > { %v2101_v40 = vpop.f32.mrb[9].mxu1  ;;  %2136 = vmatmul.mubr.f32.vlgmr.msra.gmra.mrb[4].mxu0 %v2825_v38 }
 0x455   : > { %2281 = vmatpush3.bf16.msra.mxu0 %v2500_v17  ;;  %v1237_v42 = vpop.f32.mrb[10].mxu1  ;;  %2170 = vmatprep.mubr.msk.f32.mxu0 %vm2405_vm0, %v2404_v1  ;;  %v1318_v17 = vmul.f32 %v2825_v38, %v2825_v38 }
 0x456   : > { %v2102_v43 = vpop.f32.mrb[11].mxu1  ;;  %2282 = vmatprep.subr.bf16.mxu0 %v2406_v3 }
 0x459   : > { %2284 = vmatpush3.bf16.msra.mxu0 %v2510_v20 }
 0x45a   : > { %2285 = vmatprep.subr.bf16.mxu0 %v2406_v3 }
 0x45d   : > { %2287 = vmatpush3.bf16.msra.mxu0 %v2533_v28 }
 0x45e   : > { %2288 = vmatprep.subr.bf16.mxu0 %v2406_v3 }
 0x461   : > { %2290 = vmatpush3.bf16.msra.mxu0 %v2549_v32 }
 0x462   : > { %2291 = vmatprep.subr.bf16.mxu0 %v2406_v3 }
 0x465   : > { %2293 = vmatpush3.bf16.msra.mxu0 %v2563_v36 }
 0x466   : > { %2294 = vmatprep.subr.bf16.mxu0 %v2406_v3 }
 0x469   : > { %2296 = vmatpush3.bf16.msra.mxu0 %v2574_v39 }
 0x46a   : > { %2297 = vmatprep.subr.bf16.mxu0 %v2406_v3 }
 0x46d   : > { %2299 = vmatpush3.bf16.msra.mxu0 %v2582_v41 }
 0x46e   : > { %2300 = vmatprep.subr.bf16.mxu0 %v2406_v3 }
 0x471   : > { %2302 = vmatpush3.bf16.msra.mxu0 %v2596_v45 }
 0x472   : > { %2303 = vmatprep.subr.bf16.mxu0 %v2406_v3 }
 0x474   : > { %2171 = vmatmul.mubr.f32.vlgmr.msra.gmra.mrb[6].mxu0 %v1318_v17 }
 0x475   : > { %2305 = vmatpush3.bf16.msra.mxu0 %v2698_v5  ;;  %2181 = vmatprep.mubr.msk.f32.mxu0 %vm2405_vm0, %v2404_v1 }
 0x476   : > { %2306 = vmatprep.subr.bf16.mxu0 %v2406_v3 }
 0x479   : > { %2308 = vmatpush3.bf16.msra.mxu0 %v2704_v8 }
 0x47a   : > { %2309 = vmatprep.subr.bf16.mxu0 %v2406_v3 }
 0x527   : > { %v1307_v20 = vpop.f32.mrb[4].mxu0 }
 0x528   : > { %v2137_v28 = vpop.f32.mrb[5].mxu0  ;;  %v1311_v32 = vsel %vm645_vm1, %v1307_v20, 0.0 }
 0x529   : > { %v1312_v36 = vrot.slane %v1311_v32, 4 }
 0x52b   : > { %v1313_v39 = vadd.f32 %v1312_v36, %v1311_v32 }
 0x52d   : > { %v1314_v41 = vrot.slane %v1313_v39, 2 }
 0x52f   : > { %v1315_v45 = vadd.f32 %v1314_v41, %v1313_v39 }
 0x531   : > { %v1316_v48 = vrot.slane %v1315_v45, 1 }
 0x533   : > { %v1317_v51 = vadd.f32 %v1316_v48, %v1315_v45 }
 0x535   : > { %v1396_v55 = vmul.f32 0.0625, %v1317_v51 }
 0x537   : > { %v1398_v58 = vmul.f32 %v1396_v55, %v1396_v55  ;;  %v1403_v0 = vsub.f32 0.0, %v1396_v55 }
 0x547   : > { %v1385_v44 = vpop.f32.mrb[6].mxu0 }
 0x548   : > { %v1389_v46 = vsel %vm645_vm1, %v1385_v44, 0.0  ;;  %v2172_v47 = vpop.f32.mrb[7].mxu0 }
 0x549   : > { %v1390_v49 = vrot.slane %v1389_v46, 4 }
 0x54b   : > { %v1391_v50 = vadd.f32 %v1390_v49, %v1389_v46 }
 0x54d   : > { %v1392_v52 = vrot.slane %v1391_v50, 2 }
 0x54f   : > { %v1393_v53 = vadd.f32 %v1392_v52, %v1391_v50 }
 0x551   : > { %v1394_v56 = vrot.slane %v1393_v53, 1 }
 0x553   : > { %v1395_v57 = vadd.f32 %v1394_v56, %v1393_v53 }
 0x555   : > { %v1397_v60 = vmul.f32 0.0625, %v1395_v57 }
 0x557   : > { %v1399_v61 = vsub.f32 %v1397_v60, %v1398_v58 }
 0x559   : > { %v1400_v62 = vmax.f32 %v1399_v61, 0.0 }
 0x55b   : > { %v1401_v63 = vadd.f32 1e-05, %v1400_v62 }
 0x55d   : > { %2394 = vrsqrt.f32 %v1401_v63 }
 0x567   : > { %v2395_v2 = vpop.eup %2394 }
 0x568   : > { %2182 = vmatmul.mubr.msk.f32.vlgmr.msra.gmra.mrb[8].mxu0 %vm740_vm2, %v2395_v2  ;;  %v1404_v4 = vmul.f32 %v2395_v2, %v1403_v0 }
 0x569   : > { %2311 = vmatpush3.bf16.msra.mxu0 %v2698_v5  ;;  %2192 = vmatprep.mubr.msk.f32.mxu0 %vm2405_vm0, %v2404_v1 }
 0x56a   : > { %2312 = vmatprep.subr.bf16.mxu0 %v2406_v3 }
 0x56d   : > { %2314 = vmatpush3.bf16.msra.mxu0 %v2704_v8 }
 0x570   : > { %2193 = vmatmul.mubr.msk.f32.vlgmr.msra.gmra.mrb[10].mxu0 %vm740_vm2, %v1404_v4 }
 0x63b   : > { %v1474_v6 = vpop.f32.mrb[8].mxu0 }
 0x63c   : > { %v1554_v9 = vrot.slane %v1474_v6, %v2753_v54  ;;  %v2183_v10 = vpop.f32.mrb[9].mxu0 }
 0x63e   : > { %v1555_v11 = vmul.f32 %v1554_v9, %v2825_v38 }
 0x643   : > { %v1547_v59 = vpop.f32.mrb[10].mxu0 }
 0x644   : > { %v1559_v5 = vrot.slane %v1547_v59, %v2753_v54  ;;  %v2194_v14 = vpop.f32.mrb[11].mxu0 }
 0x646   : > { %v1560_v1 = vadd.f32 %v1559_v5, %v1555_v11 }
 0x648   : > { %v1565_v3 = vadd.f32 %v1563_v13, %v1560_v1 }
 0x64a   : > { %v1566_v15 = vmax.f32 %v1565_v3, 0.0 }
 0x64c   : > { %v1567_v8 = vpack.c.bf16 %v1566_v15, %v1566_v15 }
 0x64e   : > { %1568 = vst [vmem:[%s219_s27] sm:$0x3] %v1567_v8 }
 0x64f PF: > { %s15_s18 = sadd.s32 1, %s2402_s18  }
 0x650   : > { %p12_p4 = scmp.ge.s32.totalorder %s15_s18, 4  }
 0x652   :  { %14 = sbr.rel (!%p12_p4) target bundleno = 1 (0x1), region = 74 }

// kernel: encoder_forward.13
= control target key start
LH: loop header
LB: loop body
LE: loop exit
PB: predicated region body
PF: predicated region fallthrough
CT: control target
= control target key end

     0   :  { %s1949_s21 = smov 0   ;;  %s2309_s0 = inlined_call_operand.vmem [shape: bf16[2,6,128], index: 0, kind: input, shape index: {}]   ;;  %s2310_s1 = inlined_call_operand.vmem [shape: bf16[3,128,128], index: 1, kind: input, shape index: {}]   ;;  %s2311_s2 = inlined_call_operand.vmem [shape: bf16[3,128,128], index: 2, kind: input, shape index: {}]   ;;  %s2312_s3 = inlined_call_operand.vmem [shape: f32[128,32], index: 3, kind: input, shape index: {}]   ;;  %s2313_s4 = inlined_call_operand.vmem [shape: f32[32,128], index: 4, kind: input, shape index: {}]   ;;  %s2314_s5 = inlined_call_operand.vmem [shape: f32[1,128], index: 5, kind: input, shape index: {}]   ;;  %s2315_s6 = inlined_call_operand.vmem [shape: bf16[2,4,128], index: 6, kind: output, shape index: {}]  }
   0x1 LB: > { %s1336_s22 = sadd.s32 4294967295, %s1909_s21   ;;  %p1340_p0 = scmp.ge.s32.totalorder %s1909_s21, 1  ;;  %s1909_s21 = sphi %s1949_s21, %s16_s21  }
   0x2   : > { %p211_p1 = scmp.lt.s32.totalorder %s1909_s21, 3 }
   0x4   : > { %p212_p2 = pnand %p1340_p0, %p211_p1 }
   0x5   : > { %v1851_v0 = vld [vmem:[%s2310_s1 + $0x40] sm:$0xff] (!%p212_p2)   ;;  %v1911_v1 = vmov (!%p212_p2), 0.0   ;;  %v1852_v2 = vld [vmem:[%s2310_s1 + $0x48] sm:$0xff] (!%p212_p2)   ;;  %vm1912_vm0 = vmmov (!%p212_p2), 0   ;;  %p239_p3 = scmp.lt.s32.totalorder (!%p212_p2), %s1336_s22, 1  ;;  %v1913_v3 = vmov (!%p212_p2), 0.0|0.0  }
   0x6   : > { %215 = sbr.rel (%p212_p2) target bundleno = 1079 (0x437), region = 44  ;;  %1560 = vmatprep.subr.bf16.mxu0 (!%p212_p2), %v1911_v1  ;;  %1576 = vmatprep.mubr.msk.bf16.mxu0 (!%p212_p2), %vm1912_vm0, %v1911_v1  ;;  %v1853_v4 = vld [vmem:[%s2310_s1 + $0x50] sm:$0xff] (!%p212_p2)   ;;  %v1854_v5 = vld [vmem:[%s2310_s1 + $0x58] sm:$0xff] (!%p212_p2)   ;;  %v1855_v6 = vld [vmem:[%s2310_s1 + $0x60] sm:$0xff] (!%p212_p2)   ;;  %vm672_vm1 = vcmask (!%p212_p2), 257024   ;;  %vm767_vm2 = vcmask (!%p212_p2), 261120  }
   0x7   : > { %1561 = vmatpush3.bf16.msra.mxu0 (!%p212_p2), %v1851_v0  ;;  %1652 = vmatprep.mubr.msk.f32.mxu1 (!%p212_p2), %vm1912_vm0, %v1911_v1  ;;  %v1856_v9 = vld [vmem:[%s2310_s1 + $0x68] sm:$0xff] (!%p212_p2)   ;;  %v1857_v11 = vld [vmem:[%s2310_s1 + $0x70] sm:$0xff] (!%p212_p2)   ;;  %v248_v14 = vld [vmem:[%s2312_s3] sm:$0xff] (!%p212_p2)  ;;  %vm934_vm3 = vcmask (!%p212_p2), 1040384   ;;  %vm935_vm4 = vsmask.f32 (!%p212_p2), 256 }
   0x8   : > { %1562 = vmatprep.subr.bf16.mxu0 (!%p212_p2), %v1911_v1  ;;  %1772 = vmatprep.subr.bf16.mxu1 (!%p212_p2), %v1913_v3  ;;  %v249_v15 = vld [vmem:[%s2312_s3 + $0x8] sm:$0xff] (!%p212_p2)  ;;  %v1858_v16 = vld [vmem:[%s2310_s1 + $0x78] sm:$0xff] (!%p212_p2)   ;;  %v250_v18 = vld [vmem:[%s2312_s3 + $0x10] sm:$0xff] (!%p212_p2)  ;;  %vm938_vm5 = vcmask (!%p212_p2), 1042432   ;;  %vm939_vm6 = vsmask.f32 (!%p212_p2), 2304 }
   0x9   : > { %v2012_v17 = vpack.c.bf16 (!%p212_p2), %v249_v15, %v248_v14  ;;  %v251_v19 = vld [vmem:[%s2312_s3 + $0x18] sm:$0xff] (!%p212_p2)  ;;  %v252_v22 = vld [vmem:[%s2312_s3 + $0x20] sm:$0xff] (!%p212_p2)  ;;  %v253_v23 = vld [vmem:[%s2312_s3 + $0x28] sm:$0xff] (!%p212_p2) }
   0xa   : > { %v2022_v20 = vpack.c.bf16 (!%p212_p2), %v251_v19, %v250_v18  ;;  %v1860_v24 = vld [vmem:[%s2310_s1] sm:$0xff] (!%p212_p2)   ;;  %v254_v25 = vld [vmem:[%s2312_s3 + $0x30] sm:$0xff] (!%p212_p2)  ;;  %v255_v26 = vld [vmem:[%s2312_s3 + $0x38] sm:$0xff] (!%p212_p2)  ;;  %v2045_v28 = vpack.c.bf16 (!%p212_p2), %v253_v23, %v252_v22 }
   0xb   : > { %1563 = vmatpush3.bf16.msra.mxu0 (!%p212_p2), %v1852_v2  ;;  %1774 = vmatpush3.bf16.msra.mxu1 (!%p212_p2), %v2012_v17  ;;  %v1861_v27 = vld [vmem:[%s2310_s1 + $0x8] sm:$0xff] (!%p212_p2)   ;;  %v256_v29 = vld [vmem:[%s2312_s3 + $0x40] sm:$0xff] (!%p212_p2)  ;;  %v1862_v31 = vld [vmem:[%s2310_s1 + $0x10] sm:$0xff] (!%p212_p2)   ;;  %v2061_v32 = vpack.c.bf16 (!%p212_p2), %v255_v26, %v254_v25 }
   0xc   : > { %1564 = vmatprep.subr.bf16.mxu0 (!%p212_p2), %v1911_v1  ;;  %1775 = vmatprep.subr.bf16.mxu1 (!%p212_p2), %v1913_v3  ;;  %v257_v30 = vld [vmem:[%s2312_s3 + $0x48] sm:$0xff] (!%p212_p2)  ;;  %v258_v33 = vld [vmem:[%s2312_s3 + $0x50] sm:$0xff] (!%p212_p2)  ;;  %v259_v34 = vld [vmem:[%s2312_s3 + $0x58] sm:$0xff] (!%p212_p2) }
   0xd   : > { %s2317_s22 = smov (!%p239_p3, %s1336_s22), 1  ;;  %v1863_v35 = vld [vmem:[%s2310_s1 + $0x18] sm:$0xff]   ;;  %v2075_v36 = vpack.c.bf16 %v257_v30, %v256_v29  ;;  %v260_v37 = vld [vmem:[%s2312_s3 + $0x60] sm:$0xff]  ;;  %v261_v38 = vld [vmem:[%s2312_s3 + $0x68] sm:$0xff]  ;;  %v2086_v39 = vpack.c.bf16 %v259_v34, %v258_v33 }
   0xe   : > { %s1341_s29 = sshll.u32 %s2317_s22, 2  ;;  %v1864_v40 = vld [vmem:[%s2310_s1 + $0x20] sm:$0xff]   ;;  %v2094_v41 = vpack.c.bf16 %v261_v38, %v260_v37  ;;  %v262_v42 = vld [vmem:[%s2312_s3 + $0x70] sm:$0xff]  ;;  %v263_v43 = vld [vmem:[%s2312_s3 + $0x78] sm:$0xff]  ;;  %s1342_s12 = sshll.u32 %s2317_s22, 1 }
   0xf   : > { %1565 = vmatpush3.bf16.msra.mxu0 %v1853_v4  ;;  %s1984_s10 = scalar_lea.vmem %s2309_s0, %s1341_s29  ;;  %1777 = vmatpush3.bf16.msra.mxu1 %v2022_v20  ;;  %v1865_v44 = vld [vmem:[%s2310_s1 + $0x28] sm:$0xff]   ;;  %v1794_v45 = vpack.c.bf16 %v263_v43, %v262_v42  ;;  %v1866_v46 = vld [vmem:[%s2310_s1 + $0x30] sm:$0xff]   ;;  %v1867_v47 = vld [vmem:[%s2310_s1 + $0x38] sm:$0xff]   ;;  %s246_s15 = scalar_lea.vmem %s2315_s6, %s1342_s12 }
  0x10   : > { %1566 = vmatprep.subr.bf16.mxu0 %v1911_v1  ;;  %v1990_v7 = vld [vmem:[%s1984_s10] sm:$0x7]  ;;  %1778 = vmatprep.subr.bf16.mxu1 %v1913_v3  ;;  %v1869_v50 = vld [vmem:[%s2310_s1 + $0x88] sm:$0xff]   ;;  %v1870_v51 = vld [vmem:[%s2310_s1 + $0x90] sm:$0xff]  }
  0x11   : > { %v1359_v8 = vcombine.low %v1990_v7, %v1990_v7  ;;  %v268_v48 = vld [vmem:[%s1984_s10] sm:$0x3]  ;;  %v1871_v52 = vld [vmem:[%s2310_s1 + $0x98] sm:$0xff]   ;;  %v1873_v54 = vld [vmem:[%s2310_s1 + $0xa8] sm:$0xff]  }
  0x12   : > { %v1868_v49 = vld [vmem:[%s2310_s1 + $0x80] sm:$0xff]   ;;  %v1874_v55 = vld [vmem:[%s2310_s1 + $0xb0] sm:$0xff]   ;;  %v1875_v57 = vld [vmem:[%s2310_s1 + $0xb8] sm:$0xff]  }
  0x13   : > { %1567 = vmatpush3.bf16.msra.mxu0 %v1854_v5  ;;  %v309_v10 = vshll.u32 %v1359_v8, 16  ;;  %v307_v12 = vshrl.u32 %v1359_v8, 16  ;;  %1780 = vmatpush3.bf16.msra.mxu1 %v2045_v28  ;;  %v1872_v53 = vld [vmem:[%s2310_s1 + $0xa0] sm:$0xff]   ;;  %v265_v2 = vld [vmem:[%s2313_s4 + $0x8] sm:$0xff]  ;;  %v266_v4 = vld [vmem:[%s2313_s4 + $0x10] sm:$0xff] }
  0x14   : > { %1568 = vmatprep.subr.bf16.mxu0 %v1911_v1  ;;  %1781 = vmatprep.subr.bf16.mxu1 %v1913_v3  ;;  %v1876_v56 = vld [vmem:[%s1984_s10] ss:$0 sps:$4 sm:$0x66]   ;;  %v1878_v37 = vld [vmem:[%s2311_s2 + $0x8] sm:$0xff]   ;;  %v1885_v43 = vld [vmem:[%s2311_s2 + $0x58] sm:$0xff]  }
  0x15   : > { %v311_v13 = vrot.slane %v309_v10, 1  ;;  %v511_v58 = vrot.slane %v1876_v56, 1  ;;  %v264_v0 = vld [vmem:[%s2313_s4] sm:$0xff]  ;;  %v1881_v38 = vld [vmem:[%s2311_s2 + $0x48] sm:$0xff]   ;;  %vm936_vm7 = vmand %vm934_vm3, %vm935_vm4 }
  0x16   : > { %v1821_v5 = vpack.c.bf16 %v265_v2, %v264_v0  ;;  %v1884_v42 = vld [vmem:[%s2311_s2 + $0x20] sm:$0xff]   ;;  %vm940_vm8 = vmand %vm938_vm5, %vm939_vm6 }
  0x17   : > { %1569 = vmatpush3.bf16.msra.mxu0 %v1855_v6  ;;  %v312_v21 = vor.u32 %v311_v13, %v307_v12  ;;  %1783 = vmatpush3.bf16.msra.mxu1 %v2061_v32  ;;  %v267_v6 = vld [vmem:[%s2313_s4 + $0x18] sm:$0xff] }
  0x18   : > { %1570 = vmatprep.subr.bf16.mxu0 %v1911_v1  ;;  %1784 = vmatprep.subr.bf16.mxu1 %v1913_v3  ;;  %v1824_v8 = vpack.c.bf16 %v267_v6, %v266_v4 }
  0x1b   : > { %1571 = vmatpush3.bf16.msra.mxu0 %v1856_v9  ;;  %1786 = vmatpush3.bf16.msra.mxu1 %v2075_v36 }
  0x1c   : > { %1572 = vmatprep.subr.bf16.mxu0 %v1911_v1  ;;  %1787 = vmatprep.subr.bf16.mxu1 %v1913_v3 }
  0x1f   : > { %1573 = vmatpush3.bf16.msra.mxu0 %v1857_v11  ;;  %1789 = vmatpush3.bf16.msra.mxu1 %v2086_v39 }
  0x20   : > { %1574 = vmatprep.subr.bf16.mxu0 %v1911_v1  ;;  %1790 = vmatprep.subr.bf16.mxu1 %v1913_v3 }
  0x23   : > { %1575 = vmatpush3.bf16.msra.mxu0 %v1858_v16  ;;  %1792 = vmatpush3.bf16.msra.mxu1 %v2094_v41 }
  0x24   : > { %1580 = vmatprep.subr.bf16.mxu0 %v1911_v1  ;;  %1793 = vmatprep.subr.bf16.mxu1 %v1913_v3 }
  0x26   : > { %1577 = vmatmul.mubr.bf16.vlgmr.msra.gmra.mrb[0].mxu0 %v312_v21 }
  0x27   : > { %1581 = vmatpush3.bf16.msra.mxu0 %v1860_v24  ;;  %1596 = vmatprep.mubr.msk.bf16.mxu0 %vm1912_vm0, %v1911_v1 }
  0x28   : > { %1582 = vmatprep.subr.bf16.mxu0 %v1911_v1  ;;  %1795 = vmatpush3.bf16.msra.mxu1 %v1794_v45 }
  0x29   : > { %1796 = vmatprep.subr.bf16.mxu1 %v1913_v3 }
  0x2b   : > { %1583 = vmatpush3.bf16.msra.mxu0 %v1861_v27 }
  0x2c   : > { %1584 = vmatprep.subr.bf16.mxu0 %v1911_v1 }
  0x2f   : > { %1585 = vmatpush3.bf16.msra.mxu0 %v1862_v31 }
  0x30   : > { %1586 = vmatprep.subr.bf16.mxu0 %v1911_v1 }
  0x33   : > { %1587 = vmatpush3.bf16.msra.mxu0 %v1863_v35  ;;  %v1879_v35 = vld [vmem:[%s2311_s2 + $0x40] sm:$0xff]  }
  0x34   : > { %1588 = vmatprep.subr.bf16.mxu0 %v1911_v1 }
  0x37   : > { %1589 = vmatpush3.bf16.msra.mxu0 %v1864_v40  ;;  %v1882_v40 = vld [vmem:[%s2311_s2 + $0x18] sm:$0xff]  }
  0x38   : > { %1590 = vmatprep.subr.bf16.mxu0 %v1911_v1 }
  0x3b   : > { %1591 = vmatpush3.bf16.msra.mxu0 %v1865_v44  ;;  %v1886_v44 = vld [vmem:[%s2311_s2 + $0x28] sm:$0xff]  }
  0x3c   : > { %1592 = vmatprep.subr.bf16.mxu0 %v1911_v1 }
  0x3f   : > { %1593 = vmatpush3.bf16.msra.mxu0 %v1866_v46  ;;  %v1888_v46 = vld [vmem:[%s2311_s2 + $0x30] sm:$0xff]  }
  0x40   : > { %1594 = vmatprep.subr.bf16.mxu0 %v1911_v1 }
  0x43   : > { %1595 = vmatpush3.bf16.msra.mxu0 %v1867_v47  ;;  %v1889_v47 = vld [vmem:[%s2311_s2 + $0x68] sm:$0xff]  }
  0x44   : > { %1600 = vmatprep.subr.bf16.mxu0 %v1911_v1 }
  0x46   : > { %1597 = vmatmul.mubr.bf16.vlgmr.msra.gmra.mrb[0].mxu0 %v268_v48  ;;  %v1890_v48 = vld [vmem:[%s2311_s2 + $0x38] sm:$0xff]  }
  0x47   : > { %1601 = vmatpush3.bf16.msra.mxu0 %v1868_v49  ;;  %1616 = vmatprep.mubr.msk.bf16.mxu0 %vm1912_vm0, %v1911_v1  ;;  %v1891_v49 = vld [vmem:[%s2311_s2 + $0x70] sm:$0xff]  }
  0x48   : > { %1602 = vmatprep.subr.bf16.mxu0 %v1911_v1 }
  0x4b   : > { %1603 = vmatpush3.bf16.msra.mxu0 %v1869_v50  ;;  %v1892_v50 = vld [vmem:[%s2311_s2 + $0x78] sm:$0xff]  }
  0x4c   : > { %1604 = vmatprep.subr.bf16.mxu0 %v1911_v1 }
  0x4f   : > { %1605 = vmatpush3.bf16.msra.mxu0 %v1870_v51  ;;  %v914_v51 = vlaneseq }
  0x50   : > { %1606 = vmatprep.subr.bf16.mxu0 %v1911_v1 }
  0x53   : > { %1607 = vmatpush3.bf16.msra.mxu0 %v1871_v52  ;;  %v915_v52 = vshrl.u32 %v914_v51, 7 }
  0x54   : > { %1608 = vmatprep.subr.bf16.mxu0 %v1911_v1 }
  0x57   : > { %1609 = vmatpush3.bf16.msra.mxu0 %v1872_v53  ;;  %v916_v53 = vsub.s32 0, %v915_v52 }
  0x58   : > { %1610 = vmatprep.subr.bf16.mxu0 %v1911_v1 }
  0x5b   : > { %1611 = vmatpush3.bf16.msra.mxu0 %v1873_v54 }
  0x5c   : > { %1612 = vmatprep.subr.bf16.mxu0 %v1911_v1 }
  0x5f   : > { %1613 = vmatpush3.bf16.msra.mxu0 %v1874_v55 }
  0x60   : > { %1614 = vmatprep.subr.bf16.mxu0 %v1911_v1 }
  0x63   : > { %1615 = vmatpush3.bf16.msra.mxu0 %v1875_v57 }
  0x64   : > { %1820 = vmatprep.subr.bf16.mxu0 %v1913_v3 }
  0x66   : > { %1617 = vmatmul.mubr.bf16.vlgmr.msra.gmra.mrb[0].mxu0 %v511_v58 }
  0x67   : > { %1698 = vmatprep.mubr.msk.f32.mxu0 %vm1912_vm0, %v1911_v1  ;;  %1822 = vmatpush3.bf16.msra.mxu0 %v1821_v5 }
  0x68   : > { %1823 = vmatprep.subr.bf16.mxu0 %v1913_v3 }
  0x6b   : > { %1825 = vmatpush3.bf16.msra.mxu0 %v1824_v8 }
  0x6c   : > { %1732 = vmatprep.subr.bf16.mxu0 %v1911_v1 }
 0x139   : > { %v2157_v59 = vpop.f32.mrb[0].mxu0 }
 0x13a   : > { %v1618_v60 = vpop.f32.mrb[1].mxu0  ;;  %1653 = vmatmul.mubr.f32.vlgmr.msra.gmra.mrb[0].mxu1 %v2157_v59  ;;  %v680_v63 = vmul.f32 %v2157_v59, %v2157_v59 }
 0x13b   : > { %1798 = vmatpush3.bf16.msra.mxu1 %v2012_v17  ;;  %v598_v61 = vpop.f32.mrb[2].mxu0  ;;  %1687 = vmatprep.mubr.msk.f32.mxu1 %vm1912_vm0, %v1911_v1 }
 0x13c   : > { %v1619_v62 = vpop.f32.mrb[3].mxu0  ;;  %1799 = vmatprep.subr.bf16.mxu1 %v1913_v3 }
 0x13f   : > { %1801 = vmatpush3.bf16.msra.mxu1 %v2022_v20 }
 0x140   : > { %1802 = vmatprep.subr.bf16.mxu1 %v1913_v3 }
 0x143   : > { %1804 = vmatpush3.bf16.msra.mxu1 %v2045_v28 }
 0x144   : > { %1805 = vmatprep.subr.bf16.mxu1 %v1913_v3 }
 0x147   : > { %1807 = vmatpush3.bf16.msra.mxu1 %v2061_v32  ;;  %v1877_v32 = vld [vmem:[%s2311_s2] sm:$0xff]  }
 0x148   : > { %1808 = vmatprep.subr.bf16.mxu1 %v1913_v3 }
 0x14b   : > { %1810 = vmatpush3.bf16.msra.mxu1 %v2075_v36 }
 0x14c   : > { %1811 = vmatprep.subr.bf16.mxu1 %v1913_v3 }
 0x14f   : > { %1813 = vmatpush3.bf16.msra.mxu1 %v2086_v39  ;;  %v1880_v39 = vld [vmem:[%s2311_s2 + $0x10] sm:$0xff]  }
 0x150   : > { %1814 = vmatprep.subr.bf16.mxu1 %v1913_v3 }
 0x153   : > { %1816 = vmatpush3.bf16.msra.mxu1 %v2094_v41  ;;  %v1883_v41 = vld [vmem:[%s2311_s2 + $0x50] sm:$0xff]  }
 0x154   : > { %1817 = vmatprep.subr.bf16.mxu1 %v1913_v3 }
 0x157   : > { %1819 = vmatpush3.bf16.msra.mxu1 %v1794_v45  ;;  %v1887_v45 = vld [vmem:[%s2311_s2 + $0x60] sm:$0xff]  }
 0x158   : > { %1826 = vmatprep.subr.bf16.mxu1 %v1913_v3 }
 0x15a   : > { %1688 = vmatmul.mubr.f32.vlgmr.msra.gmra.mrb[2].mxu1 %v680_v63 }
 0x15b   : > { %1709 = vmatprep.mubr.msk.f32.mxu1 %vm1912_vm0, %v1911_v1  ;;  %1828 = vmatpush3.bf16.msra.mxu1 %v1821_v5 }
 0x15c   : > { %1829 = vmatprep.subr.bf16.mxu1 %v1913_v3 }
 0x15f   : > { %1831 = vmatpush3.bf16.msra.mxu1 %v1824_v8 }
 0x160   : > { %1712 = vmatprep.subr.bf16.mxu1 %v1911_v1 }
 0x20d   : > { %v668_v9 = vpop.f32.mrb[0].mxu1 }
 0x20e   : > { %v1654_v10 = vpop.f32.mrb[1].mxu1  ;;  %v673_v11 = vsel %vm672_vm1, %v668_v9, 0.0 }
 0x20f   : > { %v674_v12 = vrot.slane %v673_v11, 4 }
 0x211   : > { %v675_v13 = vadd.f32 %v674_v12, %v673_v11  ;;  %v1893_v12 = vld [vmem:[%s2311_s2 + $0x80] sm:$0xff]  }
 0x213   : > { %v676_v14 = vrot.slane %v675_v13, 2 }
 0x215   : > { %v677_v15 = vadd.f32 %v676_v14, %v675_v13  ;;  %v1894_v14 = vld [vmem:[%s2311_s2 + $0x88] sm:$0xff]  }
 0x217   : > { %v678_v19 = vrot.slane %v677_v15, 1 }
 0x219   : > { %v679_v21 = vadd.f32 %v678_v19, %v677_v15  ;;  %v1895_v15 = vld [vmem:[%s2311_s2 + $0x90] sm:$0xff]  }
 0x21a   : > { %v1899_v19 = vld [vmem:[%s2311_s2 + $0xb0] sm:$0xff]  }
 0x21b   : > { %v758_v24 = vmul.f32 0.0625, %v679_v21 }
 0x21d   : > { %v760_v27 = vmul.f32 %v758_v24, %v758_v24  ;;  %v765_v33 = vsub.f32 0.0, %v758_v24 }
 0x22d   : > { %v747_v16 = vpop.f32.mrb[2].mxu1 }
 0x22e   : > { %v751_v17 = vsel %vm672_vm1, %v747_v16, 0.0  ;;  %v1689_v18 = vpop.f32.mrb[3].mxu1  ;;  %v1896_v16 = vld [vmem:[%s2311_s2 + $0x98] sm:$0xff]  }
 0x22f   : > { %v752_v20 = vrot.slane %v751_v17, 4  ;;  %v1898_v18 = vld [vmem:[%s2311_s2 + $0xa8] sm:$0xff]  }
 0x231   : > { %v753_v3 = vadd.f32 %v752_v20, %v751_v17  ;;  %v1897_v17 = vld [vmem:[%s2311_s2 + $0xa0] sm:$0xff]   ;;  %v1900_v20 = vld [vmem:[%s2311_s2 + $0xb8] sm:$0xff]  }
 0x233   : > { %v754_v22 = vrot.slane %v753_v3, 2 }
 0x235   : > { %v755_v23 = vadd.f32 %v754_v22, %v753_v3 }
 0x237   : > { %v756_v25 = vrot.slane %v755_v23, 1 }
 0x239   : > { %v757_v26 = vadd.f32 %v756_v25, %v755_v23 }
 0x23b   : > { %v759_v28 = vmul.f32 0.0625, %v757_v26 }
 0x23d   : > { %v761_v29 = vsub.f32 %v759_v28, %v760_v27 }
 0x23f   : > { %v762_v30 = vmax.f32 %v761_v29, 0.0 }
 0x241   : > { %v763_v31 = vadd.f32 1e-05, %v762_v30  ;;  %v1276_v30 = vunpack.c.l.bf16 %v1990_v7 }
 0x243   : > { %1901 = vrsqrt.f32 %v763_v31 }
 0x24d   : > { %v1902_v34 = vpop.eup %1901 }
 0x24e   : > { %1699 = vmatmul.mubr.msk.f32.vlgmr.msra.gmra.mrb[4].mxu0 %vm767_vm2, %v1902_v34  ;;  %v766_v36 = vmul.f32 %v1902_v34, %v765_v33  ;;  %v1278_v33 = vrot.slane %v1276_v30, 1 }
 0x24f   : > { %1733 = vmatpush3.bf16.msra.mxu0 %v1877_v32  ;;  %1748 = vmatprep.mubr.msk.bf16.mxu0 %vm1912_vm0, %v1911_v1 }
 0x250   : > { %1710 = vmatmul.mubr.msk.f32.vlgmr.msra.gmra.mrb[4].mxu1 %vm767_vm2, %v766_v36  ;;  %1734 = vmatprep.subr.bf16.mxu0 %v1911_v1 }
 0x251   : > { %1713 = vmatpush3.bf16.msra.mxu1 %v1879_v35  ;;  %1728 = vmatprep.mubr.msk.bf16.mxu1 %vm1912_vm0, %v1911_v1 }
 0x252   : > { %1714 = vmatprep.subr.bf16.mxu1 %v1911_v1 }
 0x253   : > { %1735 = vmatpush3.bf16.msra.mxu0 %v1878_v37 }
 0x254   : > { %1736 = vmatprep.subr.bf16.mxu0 %v1911_v1 }
 0x255   : > { %1715 = vmatpush3.bf16.msra.mxu1 %v1881_v38 }
 0x256   : > { %1716 = vmatprep.subr.bf16.mxu1 %v1911_v1 }
 0x257   : > { %1737 = vmatpush3.bf16.msra.mxu0 %v1880_v39 }
 0x258   : > { %1738 = vmatprep.subr.bf16.mxu0 %v1911_v1 }
 0x259   : > { %1717 = vmatpush3.bf16.msra.mxu1 %v1883_v41 }
 0x25a   : > { %1718 = vmatprep.subr.bf16.mxu1 %v1911_v1 }
 0x25b   : > { %1739 = vmatpush3.bf16.msra.mxu0 %v1882_v40 }
 0x25c   : > { %1740 = vmatprep.subr.bf16.mxu0 %v1911_v1 }
 0x25d   : > { %1719 = vmatpush3.bf16.msra.mxu1 %v1885_v43 }
 0x25e   : > { %1720 = vmatprep.subr.bf16.mxu1 %v1911_v1 }
 0x25f   : > { %1741 = vmatpush3.bf16.msra.mxu0 %v1884_v42 }
 0x260   : > { %1742 = vmatprep.subr.bf16.mxu0 %v1911_v1 }
 0x261   : > { %1721 = vmatpush3.bf16.msra.mxu1 %v1887_v45 }
 0x262   : > { %1722 = vmatprep.subr.bf16.mxu1 %v1911_v1 }
 0x263   : > { %1743 = vmatpush3.bf16.msra.mxu0 %v1886_v44 }
 0x264   : > { %1744 = vmatprep.subr.bf16.mxu0 %v1911_v1 }
 0x265   : > { %1723 = vmatpush3.bf16.msra.mxu1 %v1889_v47 }
 0x266   : > { %1724 = vmatprep.subr.bf16.mxu1 %v1911_v1 }
 0x267   : > { %1745 = vmatpush3.bf16.msra.mxu0 %v1888_v46 }
 0x268   : > { %1746 = vmatprep.subr.bf16.mxu0 %v1911_v1 }
 0x269   : > { %1725 = vmatpush3.bf16.msra.mxu1 %v1891_v49 }
 0x26a   : > { %1726 = vmatprep.subr.bf16.mxu1 %v1911_v1 }
 0x26b   : > { %1747 = vmatpush3.bf16.msra.mxu0 %v1890_v48 }
 0x26d   : > { %1727 = vmatpush3.bf16.msra.mxu1 %v1892_v50 }
 0x26e   : > { %1752 = vmatprep.subr.bf16.mxu1 %v1911_v1 }
 0x321   : > { %v837_v54 = vpop.f32.mrb[4].mxu0 }
 0x322   : > { %v917_v55 = vrot.slane %v837_v54, %v916_v53  ;;  %v1700_v56 = vpop.f32.mrb[5].mxu0 }
 0x323   : > { %v910_v57 = vpop.f32.mrb[4].mxu1 }
 0x324   : > { %v918_v58 = vmul.f32 %v917_v55, %v2157_v59  ;;  %v922_v60 = vrot.slane %v910_v57, %v916_v53  ;;  %v1711_v61 = vpop.f32.mrb[5].mxu1 }
 0x326   : > { %v923_v62 = vadd.f32 %v922_v60, %v918_v58 }
 0x328   : > { %v924_v63 = vmax.f32 %v923_v62, 0.0 }
 0x32a   : > { %v925_v0 = vpack.c.bf16 %v924_v63, %v924_v63 }
 0x32c   : > { %v927_v2 = vshrl.u32 %v925_v0, 16  ;;  %v930_v5 = vshll.u32 %v925_v0, 16 }
 0x32e   : > { %v929_v4 = vrot.slane %v927_v2, 7 }
 0x330   : > { %v932_v6 = vor.u32 %v930_v5, %v929_v4 }
 0x332   : > { %v937_v8 = vsel %vm936_vm7, 0, %v932_v6 }
 0x333   : > { %v941_v9 = vsel %vm940_vm8, %v937_v8, 0 }
 0x334   : > { %v978_v10 = vshll.u32 %v941_v9, 16  ;;  %1749 = vmatmul.mubr.bf16.vlgmr.msra.gmra.mrb[8].mxu0 %v941_v9  ;;  %v976_v59 = vshrl.u32 %v941_v9, 16  ;;  %v1177_v3 = vrot.slane %v941_v9, 1 }
 0x336   : > { %v980_v11 = vrot.slane %v978_v10, 1 }
 0x338   : > { %v981_v13 = vor.u32 %v980_v11, %v976_v59 }
 0x33a   : > { %1729 = vmatmul.mubr.bf16.vlgmr.msra.gmra.mrb[8].mxu1 %v981_v13 }
 0x33b   : > { %1753 = vmatpush3.bf16.msra.mxu1 %v1893_v12  ;;  %1768 = vmatprep.mubr.msk.bf16.mxu1 %vm1912_vm0, %v1911_v1 }
 0x33c   : > { %1754 = vmatprep.subr.bf16.mxu1 %v1911_v1 }
 0x33f   : > { %1755 = vmatpush3.bf16.msra.mxu1 %v1894_v14 }
 0x340   : > { %1756 = vmatprep.subr.bf16.mxu1 %v1911_v1 }
 0x343   : > { %1757 = vmatpush3.bf16.msra.mxu1 %v1895_v15 }
 0x344   : > { %1758 = vmatprep.subr.bf16.mxu1 %v1911_v1 }
 0x347   : > { %1759 = vmatpush3.bf16.msra.mxu1 %v1896_v16 }
 0x348   : > { %1760 = vmatprep.subr.bf16.mxu1 %v1911_v1 }
 0x34b   : > { %1761 = vmatpush3.bf16.msra.mxu1 %v1897_v17 }
 0x34c   : > { %1762 = vmatprep.subr.bf16.mxu1 %v1911_v1 }
 0x34f   : > { %1763 = vmatpush3.bf16.msra.mxu1 %v1898_v18 }
 0x350   : > { %1764 = vmatprep.subr.bf16.mxu1 %v1911_v1 }
 0x353   : > { %1765 = vmatpush3.bf16.msra.mxu1 %v1899_v19 }
 0x354   : > { %1766 = vmatprep.subr.bf16.mxu1 %v1911_v1  ;;  %v1459_v1 = vld [vmem:[%s2314_s5] ss:$0 sm:$0xff] }
 0x357   : > { %1767 = vmatpush3.bf16.msra.mxu1 %v1900_v20 }
 0x35a   : > { %1769 = vmatmul.mubr.bf16.vlgmr.msra.gmra.mrb[12].mxu1 %v1177_v3 }
 0x407   : > { %v1153_v21 = vpop.f32.mrb[8].mxu0 }
 0x408   : > { %v1750_v22 = vpop.f32.mrb[9].mxu0 }
 0x409   : > { %v1156_v23 = vpop.f32.mrb[10].mxu0 }
 0x40a   : > { %v1751_v24 = vpop.f32.mrb[11].mxu0 }
 0x40d   : > { %v1065_v25 = vpop.f32.mrb[8].mxu1 }
 0x40e   : > { %v1154_v26 = vadd.f32 %v1153_v21, %v1065_v25  ;;  %v1730_v27 = vpop.f32.mrb[9].mxu1 }
 0x40f   : > { %v1068_v28 = vpop.f32.mrb[10].mxu1 }
 0x410   : > { %v1731_v29 = vpop.f32.mrb[11].mxu1 }
 0x42d   : > { %v1261_v31 = vpop.f32.mrb[12].mxu1 }
 0x42e   : > { %v1267_v32 = vadd.f32 %v1261_v31, %v1154_v26  ;;  %v1770_v34 = vpop.f32.mrb[13].mxu1 }
 0x42f   : > { %v1264_v35 = vpop.f32.mrb[14].mxu1 }
 0x430   : > { %v1275_v36 = vadd.f32 %v1459_v1, %v1267_v32  ;;  %v1771_v37 = vpop.f32.mrb[15].mxu1 }
 0x432   : > { %v1280_v38 = vadd.f32 %v1278_v33, %v1275_v36 }
 0x434   : > { %v1281_v39 = vpack.c.bf16 %v1280_v38, %v1280_v38 }
 0x436   : > { %1282 = vst [vmem:[%s246_s15] sm:$0x3] %v1281_v39 }
 0x437 PF: > { %s16_s21 = sadd.s32 1, %s1909_s21  }
 0x438   : > { %p13_p4 = scmp.ge.s32.totalorder %s16_s21, 4  }
 0x43a   :  { %15 = sbr.rel (!%p13_p4) target bundleno = 1 (0x1), region = 78 }

</bundles_post_ra>
